<compile_context>
chip_gen: v5e
topology: v5e:2x2
jax: 0.10.0
libtpu: 0.0.40
codegen_flags: <defaults>
</compile_context>

<pallas_src>
import numpy as np
import jax
import jax.numpy as jnp
from jax.experimental import pallas as pl
from jax.experimental.pallas import tpu as pltpu

BN_EPS = 1e-5
_SLAB_LANES = 256          # max Cout (fc1)
_SCRATCH_ROWS = 32         # max padded length is 22
_SCRATCH_COLS = 128        # max Cin that ever goes through the scratch


def _align(n, m=16):
    return ((n + m - 1) // m) * m


# --------------------------------------------------------------------- helpers
class _KeyGen:
    """Inexhaustible deterministic key stream."""

    def __init__(self, key):
        self._key = key
        self._i = 0

    def __call__(self):
        self._i += 1
        return jax.random.fold_in(self._key, self._i)


def _fold_bn(bn, bias, c):
    """Fold eval-mode BatchNorm1d (+ optional conv bias) into scale/shift (c,)."""
    if bn is not None:
        gamma, beta, mean, var = bn
        scale = gamma / jnp.sqrt(var + BN_EPS)
        shift = beta - mean * scale
    else:
        scale = jnp.ones((c,), jnp.float32)
        shift = jnp.zeros((c,), jnp.float32)
    if bias is not None:
        shift = shift + scale * bias
    return scale.astype(jnp.float32), shift.astype(jnp.float32)


# ----------------------------------------------------------------- plan builder
def _build_plan(input_nc=4, ngf=32, n_blocks=3, seq_l=16):
    """Static (shape-only) lowering plan: layer metas + slab layout."""
    metas = []
    w_chunks = {}              # name -> (row_off, rows, cols)
    w_off = [0]
    ss_off = [0]

    def alloc_w(name, rows, cols):
        off = w_off[0]
        w_chunks[name] = (off, rows, cols)
        w_off[0] = off + _align(rows)
        return off

    def alloc_ss():
        r = ss_off[0]
        ss_off[0] += 2
        return r

    def conv(name, cin, cout, K, lin, *, stride=1, pad=0, pad_mode="zero",
             act="none", residual=None, save_as=None, pool=False):
        lp = lin + 2 * pad
        lout = (lp - K) // stride + 1
        woff = alloc_w(name, K * cin, cout)
        ssr = alloc_ss()
        metas.append(dict(kind="conv", name=name, cin=cin, cout=cout, K=K,
                          stride=stride, pad=pad, pad_mode=pad_mode, lin=lin,
                          lout=lout, lp=lp, w_off=woff, ss_row=ssr, act=act,
                          residual=residual, save_as=save_as, pool=pool))
        return lout // 2 if pool else lout

    def convt(name, cin, cout, lin, act="relu"):
        lout = 2 * lin
        we = alloc_w(name + "_we", cin, cout)
        wo = alloc_w(name + "_wo", 2 * cin, cout)
        pe = alloc_w(name + "_pe", lout, lin)
        po = alloc_w(name + "_po", lout, lin)
        ssr = alloc_ss()
        metas.append(dict(kind="convt", name=name, cin=cin, cout=cout, lin=lin,
                          lout=lout, we_off=we, wo_off=wo, pe_off=pe, po_off=po,
                          ss_row=ssr, act=act))
        return lout

    # ---- model1 ----
    L = seq_l
    L = conv("c1", input_nc, ngf, 7, L, pad=3, pad_mode="reflect", act="relu")
    L = conv("d0", ngf, 2 * ngf, 3, L, stride=2, pad=1, act="relu")
    L = conv("d1", 2 * ngf, 4 * ngf, 3, L, stride=2, pad=1, act="relu")
    dim = 4 * ngf
    for i in range(n_blocks):
        key = f"blk{i}"
        L = conv(f"{key}_a", dim, dim, 3, L, pad=1, pad_mode="reflect",
                 act="relu", save_as=key)
        # Dropout(0.5) is identity in eval mode.
        L = conv(f"{key}_b", dim, dim, 3, L, pad=1, pad_mode="reflect",
                 act="none", residual=key)
    L = convt("u0", dim, dim // 2, L)
    L = convt("u1", dim // 2, dim // 4, L)
    L = conv("cf", ngf, input_nc, 7, L, pad=3, pad_mode="reflect", act="tanh")

    # ---- layer3 / layer4 / layer5 (max-pool fused via strided slices) ----
    L = conv("l3", input_nc, 100, 7, L, pad=3, act="relu", pool=True)
    L = conv("l5", 100, 100, 3, L, pad=1, act="relu", pool=True)

    # ---- fc: fc1 is a K=L "conv" (this folds the NCW flatten permutation
    # into the packed weight), fc2 is a K=1 conv, fc3 a VPU lane reduction.
    L = conv("fc1", 100, 256, L, L, pad=0, act="relu")
    L = conv("fc2", 256, 128, 1, 1, pad=0, act="relu")
    fc3_row = ss_off[0]
    ss_off[0] += 2
    metas.append(dict(kind="reduce", w_row=fc3_row, b_row=fc3_row + 1, width=128))

    return dict(metas=metas, w_chunks=w_chunks,
                w_rows=_align(w_off[0]), ss_rows=_align(ss_off[0], 8))


# ---------------------------------------------------------------- operand packing
def _conv_params(p, name):
    if name == "c1":
        return p["c1_w"], None, p["c1_bn"]
    if name == "d0":
        return p["d0_w"], None, p["d0_bn"]
    if name == "d1":
        return p["d1_w"], None, p["d1_bn"]
    if name.startswith("blk"):
        i = int(name[3])
        b = p["blocks"][i]
        if name.endswith("_a"):
            return b["w1"], None, b["bn1"]
        return b["w2"], None, b["bn2"]
    if name == "cf":
        return p["cf_w"], p["cf_b"], None
    if name == "l3":
        return p["l3_w"], p["l3_b"], p["l3_bn"]
    if name == "l5":
        return p["l5_w"], p["l5_b"], p["l5_bn"]
    raise KeyError(name)


def _pack_operands(p, plan):
    """Build the bf16 weight slab and the f32 scale/shift slab (done once)."""
    chunks = plan["w_chunks"]
    w_slab = jnp.zeros((plan["w_rows"], _SLAB_LANES), jnp.float32)
    ss_slab = jnp.zeros((plan["ss_rows"], _SLAB_LANES), jnp.float32)

    def set_w(slab, name, mat):
        off, rows, cols = chunks[name]
        mat = jnp.asarray(mat, jnp.float32)
        assert mat.shape == (rows, cols), (name, mat.shape, (rows, cols))
        return slab.at[off:off + rows, 0:cols].set(mat)

    def set_ss(slab, row, scale, shift):
        c = scale.shape[0]
        slab = slab.at[row, 0:c].set(scale)
        return slab.at[row + 1, 0:c].set(shift)

    for m in plan["metas"]:
        if m["kind"] == "conv":
            name = m["name"]
            if name == "fc1":
                K, C, n = m["K"], m["cin"], m["cout"]
                # PyTorch flatten of NCW is channel-major (c*L + l); our im2col
                # columns are (l*C + c) -> permute the Linear weight once here.
                wmat = p["fc1_w"].reshape(n, C, K).transpose(2, 1, 0).reshape(K * C, n)
                scale, shift = _fold_bn(None, p["fc1_b"], n)
            elif name == "fc2":
                wmat = p["fc2_w"].T
                scale, shift = _fold_bn(None, p["fc2_b"], m["cout"])
            else:
                w, bias, bn = _conv_params(p, name)
                # Conv1d weight (Cout, Cin, K) -> (K*Cin, Cout), rows = (k, c).
                wmat = jnp.transpose(w, (2, 1, 0)).reshape(m["K"] * m["cin"], m["cout"])
                scale, shift = _fold_bn(bn, bias, m["cout"])
            w_slab = set_w(w_slab, name, wmat)
            ss_slab = set_ss(ss_slab, m["ss_row"], scale, shift)

        elif m["kind"] == "convt":
            name = m["name"]
            w = p[name + "_w"]                       # (Cin, Cout, K=3), bias=False
            # out[2m]   = x[m] @ W[:,:,1]
            # out[2m+1] = x[m] @ W[:,:,2] + x[m+1] @ W[:,:,0]
            w_slab = set_w(w_slab, name + "_we", w[:, :, 1])
            w_slab = set_w(w_slab, name + "_wo",
                           jnp.concatenate([w[:, :, 2], w[:, :, 0]], axis=0))
            lh, lout = m["lin"], m["lout"]
            pe = np.zeros((lout, lh), np.float32)
            po = np.zeros((lout, lh), np.float32)
            pe[2 * np.arange(lh), np.arange(lh)] = 1.0
            po[2 * np.arange(lh) + 1, np.arange(lh)] = 1.0
            w_slab = set_w(w_slab, name + "_pe", pe)
            w_slab = set_w(w_slab, name + "_po", po)
            scale, shift = _fold_bn(p[name + "_bn"], None, m["cout"])
            ss_slab = set_ss(ss_slab, m["ss_row"], scale, shift)

        else:  # reduce: fc3 (Linear 128 -> 1)
            ss_slab = ss_slab.at[m["w_row"], 0:m["width"]].set(
                p["fc3_w"].reshape(-1).astype(jnp.float32))
            ss_slab = ss_slab.at[m["b_row"], 0].set(p["fc3_b"][0].astype(jnp.float32))

    return w_slab.astype(jnp.bfloat16), ss_slab


# ----------------------------------------------------------------------- kernel
def _make_kernel(plan):
    metas = plan["metas"]

    def kernel(x_ref, w_ref, ss_ref, out_ref, scratch):
        f32 = jnp.float32
        bf16 = jnp.bfloat16
        cur = x_ref[...].astype(f32)                 # (L0, Cin), channels on lanes
        saved = {}                                   # only the 3 resnet-block inputs

        def epilogue(acc, m):
            r, co = m["ss_row"], m["cout"]
            return acc * ss_ref[r:r + 1, 0:co] + ss_ref[r + 1:r + 2, 0:co]

        def activation(acc, act):
            if act == "relu":
                return jnp.maximum(acc, 0.0)
            if act == "tanh":
                return jnp.tanh(acc)
            return acc

        for m in metas:
            if m["kind"] == "conv":
                K, s, p = m["K"], m["stride"], m["pad"]
                cin, cout = m["cin"], m["cout"]
                lin, lout, lp = m["lin"], m["lout"], m["lp"]
                if m["save_as"] is not None:
                    saved[m["save_as"]] = cur

                if K == 1 and p == 0:                # fc2: im2col == input
                    cols = cur
                else:
                    # ---- fill padded input into VMEM scratch ----
                    scratch[p:p + lin, 0:cin] = cur
                    if p > 0:
                        if m["pad_mode"] == "reflect":
                            for i in range(p):
                                scratch[i:i + 1, 0:cin] = cur[p - i:p - i + 1, :]
                                scratch[p + lin + i:p + lin + i + 1, 0:cin] = \
                                    cur[lin - 2 - i:lin - 1 - i, :]
                        else:                        # zero padding
                            zp = jnp.zeros((p, cin), f32)
                            scratch[0:p, 0:cin] = zp
                            scratch[p + lin:lp, 0:cin] = zp
                    # ---- im2col: K shifted (and strided) sublane slices ----
                    taps = []
                    for k in range(K):
                        if s == 1:
                            taps.append(scratch[k:k + lout, 0:cin])
                        else:
                            t = scratch[pl.ds(k, lout, s), :]
                            taps.append(t[:, 0:cin] if cin != _SCRATCH_COLS else t)
                    cols = taps[0] if K == 1 else jnp.concatenate(taps, axis=-1)

                w = w_ref[m["w_off"]:m["w_off"] + K * cin, 0:cout]
                acc = jnp.dot(cols.astype(bf16), w, preferred_element_type=f32)
                acc = epilogue(acc, m)
                if m["residual"] is not None:
                    acc = acc + saved[m["residual"]]       # resnet skip (f32)
                acc = activation(acc, m["act"])
                if m["pool"]:                              # MaxPool1d(2,2) on VPU
                    lo2 = lout // 2
                    scratch[0:lout, 0:cout] = acc
                    e = scratch[pl.ds(0, lo2, 2), :]
                    o = scratch[pl.ds(1, lo2, 2), :]
                    acc = jnp.maximum(e[:, 0:cout], o[:, 0:cout])
                cur = acc

            elif m["kind"] == "convt":
                cin, cout = m["cin"], m["cout"]
                lin, lout = m["lin"], m["lout"]
                xb = cur.astype(bf16)
                we = w_ref[m["we_off"]:m["we_off"] + cin, 0:cout]
                even = jnp.dot(xb, we, preferred_element_type=f32)
                # shifted-by-one input with a trailing zero row (odd outputs)
                scratch[0:lin, 0:cin] = cur
                scratch[lin:lin + 1, 0:cin] = jnp.zeros((1, cin), f32)
                xs = scratch[1:lin + 1, 0:cin]
                cols = jnp.concatenate([cur, xs], axis=-1)
                wo = w_ref[m["wo_off"]:m["wo_off"] + 2 * cin, 0:cout]
                odd = jnp.dot(cols.astype(bf16), wo, preferred_element_type=f32)
                even = activation(epilogue(even, m), m["act"])
                odd = activation(epilogue(odd, m), m["act"])
                # interleave even/odd output rows with two tiny 0/1 matmuls
                pe = w_ref[m["pe_off"]:m["pe_off"] + lout, 0:lin]
                po = w_ref[m["po_off"]:m["po_off"] + lout, 0:lin]
                cur = (jnp.dot(pe, even.astype(bf16), preferred_element_type=f32) +
                       jnp.dot(po, odd.astype(bf16), preferred_element_type=f32))

            else:  # reduce: fc3 Linear(128 -> 1) as a VPU lane reduction
                wrow = ss_ref[m["w_row"]:m["w_row"] + 1, 0:m["width"]]
                b = ss_ref[m["b_row"]:m["b_row"] + 1, 0:1]
                cur = jnp.sum(cur * wrow, axis=-1, keepdims=True) + b

        out_ref[...] = jnp.broadcast_to(cur, out_ref.shape)

    return kernel


# ---------------------------------------------------------------------- forward
def make_hanwen_forward(params, *, input_nc=4, ngf=32, n_blocks=3, seq_l=16):
    """Build the plan, pack slabs and return a jitted forward fn(x)->(B,)."""
    plan = _build_plan(input_nc=input_nc, ngf=ngf, n_blocks=n_blocks, seq_l=seq_l)
    w_slab, ss_slab = _pack_operands(params, plan)          # hoisted, done once
    kernel = _make_kernel(plan)
    L0, C0 = seq_l, input_nc

    def fwd(x, w, ss):
        B = x.shape[0]
        x_lc = jnp.transpose(x, (0, 2, 1)).astype(jnp.float32)   # NCW -> (B, L, C)
        out = pl.pallas_call(
            kernel,
            out_shape=jax.ShapeDtypeStruct((B, 8, 128), jnp.float32),
            grid=(B,),
            in_specs=[
                pl.BlockSpec((None, L0, C0), lambda b: (b, 0, 0)),
                pl.BlockSpec(tuple(w.shape), lambda b: (0, 0)),
                pl.BlockSpec(tuple(ss.shape), lambda b: (0, 0)),
            ],
            out_specs=pl.BlockSpec((None, 8, 128), lambda b: (b, 0, 0)),
            scratch_shapes=[pltpu.VMEM((_SCRATCH_ROWS, _SCRATCH_COLS), jnp.float32)],
            compiler_params=pltpu.CompilerParams(
                dimension_semantics=("parallel",)),
        )(x_lc, w, ss)
        return out[:, 0, 0]                                   # squeeze(-1) -> (B,)

    fwd_jit = jax.jit(fwd)

    def run(x):
        return fwd_jit(x, w_slab, ss_slab)

    return run


# ------------------------------------------------------- params (PyTorch layouts)
def init_params(key, input_nc=4, ngf=32, n_blocks=3, seq_l=16):
    kg = _KeyGen(key)

    def w_init(shape, scale=0.1):
        return scale * jax.random.normal(kg(), shape, jnp.float32)

    def bn_init(c):
        gamma = 1.0 + 0.05 * jax.random.normal(kg(), (c,), jnp.float32)
        beta = 0.05 * jax.random.normal(kg(), (c,), jnp.float32)
        mean = 0.05 * jax.random.normal(kg(), (c,), jnp.float32)
        var = 0.5 + jnp.abs(0.1 * jax.random.normal(kg(), (c,), jnp.float32))
        return (gamma, beta, mean, var)

    p = {}
    p["c1_w"], p["c1_bn"] = w_init((ngf, input_nc, 7)), bn_init(ngf)
    p["d0_w"], p["d0_bn"] = w_init((2 * ngf, ngf, 3)), bn_init(2 * ngf)
    p["d1_w"], p["d1_bn"] = w_init((4 * ngf, 2 * ngf, 3)), bn_init(4 * ngf)
    dim = 4 * ngf
    p["blocks"] = [{"w1": w_init((dim, dim, 3)), "bn1": bn_init(dim),
                    "w2": w_init((dim, dim, 3)), "bn2": bn_init(dim)}
                   for _ in range(n_blocks)]
    p["u0_w"], p["u0_bn"] = w_init((4 * ngf, 2 * ngf, 3)), bn_init(2 * ngf)  # (Cin,Cout,K)
    p["u1_w"], p["u1_bn"] = w_init((2 * ngf, ngf, 3)), bn_init(ngf)
    p["cf_w"], p["cf_b"] = w_init((input_nc, ngf, 7)), w_init((input_nc,))
    p["l3_w"], p["l3_b"], p["l3_bn"] = w_init((100, input_nc, 7)), w_init((100,)), bn_init(100)
    p["l5_w"], p["l5_b"], p["l5_bn"] = w_init((100, 100, 3)), w_init((100,)), bn_init(100)
    fc_in = 100 * (seq_l // 2 // 2)
    p["fc1_w"], p["fc1_b"] = w_init((256, fc_in)), w_init((256,))
    p["fc2_w"], p["fc2_b"] = w_init((128, 256)), w_init((128,))
    p["fc3_w"], p["fc3_b"] = w_init((1, 128)), w_init((1,))
    return p


# --------------------------------------------------------------------- __main__
if __name__ == "__main__":
    B, C_IN, SEQ_L = 2, 4, 16
    key = jax.random.PRNGKey(0)
    k_params, k_x = jax.random.split(key)
    params = init_params(k_params, input_nc=C_IN, seq_l=SEQ_L)
    x = jax.random.normal(k_x, (B, C_IN, SEQ_L), jnp.float32)

    forward = make_hanwen_forward(params, input_nc=C_IN, seq_l=SEQ_L)
    out = jax.block_until_ready(forward(x))
    assert out.shape == (B,), out.shape
    assert jnp.all(jnp.isfinite(out))
    print("KERNEL_OK")
</pallas_src>

<mosaic_0001>
module attributes {stable_mosaic.version = 11 : i64} {
  func.func @kernel(%arg0: i32, %arg1: memref<1x16x4xf32, #tpu.memory_space<vmem>>, %arg2: memref<4480x256xbf16, #tpu.memory_space<vmem>>, %arg3: memref<40x256xf32, #tpu.memory_space<vmem>>, %arg4: memref<1x8x128xf32, #tpu.memory_space<vmem>>, %arg5: memref<32x128xf32, #tpu.memory_space<vmem>>) attributes {dimension_semantics = [#tpu.dimension_semantics<parallel>], iteration_bounds = array<i64: 2>, scalar_prefetch = 0 : i64, scratch_operands = 1 : i64, tpu.core_type = #tpu.core_type<tc>, window_params = [{transform_indices = @transform_0, window_bounds = array<i64: 1, 16, 4>}, {pipeline_mode = #tpu.pipeline_mode<synchronous>, transform_indices = @transform_1, window_bounds = array<i64: 4480, 256>}, {pipeline_mode = #tpu.pipeline_mode<synchronous>, transform_indices = @transform_2, window_bounds = array<i64: 40, 256>}, {transform_indices = @transform_3, window_bounds = array<i64: 1, 8, 128>}]} {
    %c0 = arith.constant 0 : index
    %c0_0 = arith.constant 0 : index
    %c0_1 = arith.constant 0 : index
    %0 = vector.load %arg1[%c0, %c0_0, %c0_1] : memref<1x16x4xf32, #tpu.memory_space<vmem>>, vector<1x16x4xf32>
    %1 = vector.shape_cast %0 : vector<1x16x4xf32> to vector<16x4xf32>
    %c3 = arith.constant 3 : index
    %c0_2 = arith.constant 0 : index
    %2 = vector.load %arg5[%c3, %c0_2] : memref<32x128xf32, #tpu.memory_space<vmem>>, vector<16x4xf32>
    tpu.vector_store %arg5[%c3, %c0_2], %1 {strides = array<i32>} : memref<32x128xf32, #tpu.memory_space<vmem>>, vector<16x4xf32>,
    %3 = vector.extract_strided_slice %1 {offsets = [3, 0], sizes = [1, 4], strides = [1, 1]} : vector<16x4xf32> to vector<1x4xf32>
    %c0_3 = arith.constant 0 : index
    %c0_4 = arith.constant 0 : index
    %4 = vector.load %arg5[%c0_3, %c0_4] : memref<32x128xf32, #tpu.memory_space<vmem>>, vector<1x4xf32>
    tpu.vector_store %arg5[%c0_3, %c0_4], %3 {strides = array<i32>} : memref<32x128xf32, #tpu.memory_space<vmem>>, vector<1x4xf32>,
    %5 = vector.extract_strided_slice %1 {offsets = [14, 0], sizes = [1, 4], strides = [1, 1]} : vector<16x4xf32> to vector<1x4xf32>
    %c19 = arith.constant 19 : index
    %c0_5 = arith.constant 0 : index
    %6 = vector.load %arg5[%c19, %c0_5] : memref<32x128xf32, #tpu.memory_space<vmem>>, vector<1x4xf32>
    tpu.vector_store %arg5[%c19, %c0_5], %5 {strides = array<i32>} : memref<32x128xf32, #tpu.memory_space<vmem>>, vector<1x4xf32>,
    %7 = vector.extract_strided_slice %1 {offsets = [2, 0], sizes = [1, 4], strides = [1, 1]} : vector<16x4xf32> to vector<1x4xf32>
    %c1 = arith.constant 1 : index
    %c0_6 = arith.constant 0 : index
    %8 = vector.load %arg5[%c1, %c0_6] : memref<32x128xf32, #tpu.memory_space<vmem>>, vector<1x4xf32>
    tpu.vector_store %arg5[%c1, %c0_6], %7 {strides = array<i32>} : memref<32x128xf32, #tpu.memory_space<vmem>>, vector<1x4xf32>,
    %9 = vector.extract_strided_slice %1 {offsets = [13, 0], sizes = [1, 4], strides = [1, 1]} : vector<16x4xf32> to vector<1x4xf32>
    %c20 = arith.constant 20 : index
    %c0_7 = arith.constant 0 : index
    %10 = vector.load %arg5[%c20, %c0_7] : memref<32x128xf32, #tpu.memory_space<vmem>>, vector<1x4xf32>
    tpu.vector_store %arg5[%c20, %c0_7], %9 {strides = array<i32>} : memref<32x128xf32, #tpu.memory_space<vmem>>, vector<1x4xf32>,
    %11 = vector.extract_strided_slice %1 {offsets = [1, 0], sizes = [1, 4], strides = [1, 1]} : vector<16x4xf32> to vector<1x4xf32>
    %c2 = arith.constant 2 : index
    %c0_8 = arith.constant 0 : index
    %12 = vector.load %arg5[%c2, %c0_8] : memref<32x128xf32, #tpu.memory_space<vmem>>, vector<1x4xf32>
    tpu.vector_store %arg5[%c2, %c0_8], %11 {strides = array<i32>} : memref<32x128xf32, #tpu.memory_space<vmem>>, vector<1x4xf32>,
    %13 = vector.extract_strided_slice %1 {offsets = [12, 0], sizes = [1, 4], strides = [1, 1]} : vector<16x4xf32> to vector<1x4xf32>
    %c21 = arith.constant 21 : index
    %c0_9 = arith.constant 0 : index
    %14 = vector.load %arg5[%c21, %c0_9] : memref<32x128xf32, #tpu.memory_space<vmem>>, vector<1x4xf32>
    tpu.vector_store %arg5[%c21, %c0_9], %13 {strides = array<i32>} : memref<32x128xf32, #tpu.memory_space<vmem>>, vector<1x4xf32>,
    %c0_10 = arith.constant 0 : index
    %c0_11 = arith.constant 0 : index
    %15 = vector.load %arg5[%c0_10, %c0_11] : memref<32x128xf32, #tpu.memory_space<vmem>>, vector<16x4xf32>
    %c1_12 = arith.constant 1 : index
    %c0_13 = arith.constant 0 : index
    %16 = vector.load %arg5[%c1_12, %c0_13] : memref<32x128xf32, #tpu.memory_space<vmem>>, vector<16x4xf32>
    %c2_14 = arith.constant 2 : index
    %c0_15 = arith.constant 0 : index
    %17 = vector.load %arg5[%c2_14, %c0_15] : memref<32x128xf32, #tpu.memory_space<vmem>>, vector<16x4xf32>
    %c3_16 = arith.constant 3 : index
    %c0_17 = arith.constant 0 : index
    %18 = vector.load %arg5[%c3_16, %c0_17] : memref<32x128xf32, #tpu.memory_space<vmem>>, vector<16x4xf32>
    %c4 = arith.constant 4 : index
    %c0_18 = arith.constant 0 : index
    %19 = vector.load %arg5[%c4, %c0_18] : memref<32x128xf32, #tpu.memory_space<vmem>>, vector<16x4xf32>
    %c5 = arith.constant 5 : index
    %c0_19 = arith.constant 0 : index
    %20 = vector.load %arg5[%c5, %c0_19] : memref<32x128xf32, #tpu.memory_space<vmem>>, vector<16x4xf32>
    %c6 = arith.constant 6 : index
    %c0_20 = arith.constant 0 : index
    %21 = vector.load %arg5[%c6, %c0_20] : memref<32x128xf32, #tpu.memory_space<vmem>>, vector<16x4xf32>
    %22 = tpu.concatenate %15, %16, %17, %18, %19, %20, %21 in 1 : vector<16x4xf32>, vector<16x4xf32>, vector<16x4xf32>, vector<16x4xf32>, vector<16x4xf32>, vector<16x4xf32>, vector<16x4xf32> -> vector<16x28xf32>
    %c0_21 = arith.constant 0 : index
    %c0_22 = arith.constant 0 : index
    %23 = vector.load %arg2[%c0_21, %c0_22] : memref<4480x256xbf16, #tpu.memory_space<vmem>>, vector<28x32xbf16>
    %24 = arith.truncf %22 : vector<16x28xf32> to vector<16x28xbf16>
    %cst = arith.constant dense<0.000000e+00> : vector<16x32xf32>
    %25 = tpu.matmul %24, %23, %cst {dimension_numbers = #tpu.dot_dimension_numbers<[1], [0], [0], [1], [0, 0, 1, 1], [], []>} : vector<16x28xbf16>, vector<28x32xbf16>, vector<16x32xf32> -> vector<16x32xf32>
    %c0_23 = arith.constant 0 : index
    %c0_24 = arith.constant 0 : index
    %26 = vector.load %arg3[%c0_23, %c0_24] : memref<40x256xf32, #tpu.memory_space<vmem>>, vector<1x32xf32>
    %27 = vector.broadcast %26 : vector<1x32xf32> to vector<16x32xf32>
    %28 = arith.mulf %25, %27 : vector<16x32xf32>
    %c1_25 = arith.constant 1 : index
    %c0_26 = arith.constant 0 : index
    %29 = vector.load %arg3[%c1_25, %c0_26] : memref<40x256xf32, #tpu.memory_space<vmem>>, vector<1x32xf32>
    %30 = vector.broadcast %29 : vector<1x32xf32> to vector<16x32xf32>
    %31 = arith.addf %28, %30 : vector<16x32xf32>
    %cst_27 = arith.constant 0.000000e+00 : f32
    %32 = vector.broadcast %cst_27 : f32 to vector<16x32xf32>
    %33 = arith.maximumf %31, %32 : vector<16x32xf32>
    %c1_28 = arith.constant 1 : index
    %c0_29 = arith.constant 0 : index
    %34 = vector.load %arg5[%c1_28, %c0_29] : memref<32x128xf32, #tpu.memory_space<vmem>>, vector<16x32xf32>
    tpu.vector_store %arg5[%c1_28, %c0_29], %33 {strides = array<i32>} : memref<32x128xf32, #tpu.memory_space<vmem>>, vector<16x32xf32>,
    %cst_30 = arith.constant 0.000000e+00 : f32
    %35 = vector.broadcast %cst_30 : f32 to vector<1x32xf32>
    %c0_31 = arith.constant 0 : index
    %c0_32 = arith.constant 0 : index
    %36 = vector.load %arg5[%c0_31, %c0_32] : memref<32x128xf32, #tpu.memory_space<vmem>>, vector<1x32xf32>
    tpu.vector_store %arg5[%c0_31, %c0_32], %35 {strides = array<i32>} : memref<32x128xf32, #tpu.memory_space<vmem>>, vector<1x32xf32>,
    %c17 = arith.constant 17 : index
    %c0_33 = arith.constant 0 : index
    %37 = vector.load %arg5[%c17, %c0_33] : memref<32x128xf32, #tpu.memory_space<vmem>>, vector<1x32xf32>
    tpu.vector_store %arg5[%c17, %c0_33], %35 {strides = array<i32>} : memref<32x128xf32, #tpu.memory_space<vmem>>, vector<1x32xf32>,
    %c0_34 = arith.constant 0 : index
    %c0_35 = arith.constant 0 : index
    %38 = tpu.strided_load %arg5[%c0_34, %c0_35] {strides = array<i32: 2, 1>} : memref<32x128xf32, #tpu.memory_space<vmem>>, vector<8x128xf32>
    %39 = vector.extract_strided_slice %38 {offsets = [0, 0], sizes = [8, 32], strides = [1, 1]} : vector<8x128xf32> to vector<8x32xf32>
    %c1_36 = arith.constant 1 : index
    %c0_37 = arith.constant 0 : index
    %40 = tpu.strided_load %arg5[%c1_36, %c0_37] {strides = array<i32: 2, 1>} : memref<32x128xf32, #tpu.memory_space<vmem>>, vector<8x128xf32>
    %41 = vector.extract_strided_slice %40 {offsets = [0, 0], sizes = [8, 32], strides = [1, 1]} : vector<8x128xf32> to vector<8x32xf32>
    %c2_38 = arith.constant 2 : index
    %c0_39 = arith.constant 0 : index
    %42 = tpu.strided_load %arg5[%c2_38, %c0_39] {strides = array<i32: 2, 1>} : memref<32x128xf32, #tpu.memory_space<vmem>>, vector<8x128xf32>
    %43 = vector.extract_strided_slice %42 {offsets = [0, 0], sizes = [8, 32], strides = [1, 1]} : vector<8x128xf32> to vector<8x32xf32>
    %44 = tpu.concatenate %39, %41, %43 in 1 : vector<8x32xf32>, vector<8x32xf32>, vector<8x32xf32> -> vector<8x96xf32>
    %c32 = arith.constant 32 : index
    %c0_40 = arith.constant 0 : index
    %45 = vector.load %arg2[%c32, %c0_40] : memref<4480x256xbf16, #tpu.memory_space<vmem>>, vector<96x64xbf16>
    %46 = arith.truncf %44 : vector<8x96xf32> to vector<8x96xbf16>
    %cst_41 = arith.constant dense<0.000000e+00> : vector<8x64xf32>
    %47 = tpu.matmul %46, %45, %cst_41 {dimension_numbers = #tpu.dot_dimension_numbers<[1], [0], [0], [1], [0, 0, 1, 1], [], []>} : vector<8x96xbf16>, vector<96x64xbf16>, vector<8x64xf32> -> vector<8x64xf32>
    %c2_42 = arith.constant 2 : index
    %c0_43 = arith.constant 0 : index
    %48 = vector.load %arg3[%c2_42, %c0_43] : memref<40x256xf32, #tpu.memory_space<vmem>>, vector<1x64xf32>
    %49 = vector.broadcast %48 : vector<1x64xf32> to vector<8x64xf32>
    %50 = arith.mulf %47, %49 : vector<8x64xf32>
    %c3_44 = arith.constant 3 : index
    %c0_45 = arith.constant 0 : index
    %51 = vector.load %arg3[%c3_44, %c0_45] : memref<40x256xf32, #tpu.memory_space<vmem>>, vector<1x64xf32>
    %52 = vector.broadcast %51 : vector<1x64xf32> to vector<8x64xf32>
    %53 = arith.addf %50, %52 : vector<8x64xf32>
    %cst_46 = arith.constant 0.000000e+00 : f32
    %54 = vector.broadcast %cst_46 : f32 to vector<8x64xf32>
    %55 = arith.maximumf %53, %54 : vector<8x64xf32>
    %c1_47 = arith.constant 1 : index
    %c0_48 = arith.constant 0 : index
    %56 = vector.load %arg5[%c1_47, %c0_48] : memref<32x128xf32, #tpu.memory_space<vmem>>, vector<8x64xf32>
    tpu.vector_store %arg5[%c1_47, %c0_48], %55 {strides = array<i32>} : memref<32x128xf32, #tpu.memory_space<vmem>>, vector<8x64xf32>,
    %cst_49 = arith.constant 0.000000e+00 : f32
    %57 = vector.broadcast %cst_49 : f32 to vector<1x64xf32>
    %c0_50 = arith.constant 0 : index
    %c0_51 = arith.constant 0 : index
    %58 = vector.load %arg5[%c0_50, %c0_51] : memref<32x128xf32, #tpu.memory_space<vmem>>, vector<1x64xf32>
    tpu.vector_store %arg5[%c0_50, %c0_51], %57 {strides = array<i32>} : memref<32x128xf32, #tpu.memory_space<vmem>>, vector<1x64xf32>,
    %c9 = arith.constant 9 : index
    %c0_52 = arith.constant 0 : index
    %59 = vector.load %arg5[%c9, %c0_52] : memref<32x128xf32, #tpu.memory_space<vmem>>, vector<1x64xf32>
    tpu.vector_store %arg5[%c9, %c0_52], %57 {strides = array<i32>} : memref<32x128xf32, #tpu.memory_space<vmem>>, vector<1x64xf32>,
    %c0_53 = arith.constant 0 : index
    %c0_54 = arith.constant 0 : index
    %60 = tpu.strided_load %arg5[%c0_53, %c0_54] {strides = array<i32: 2, 1>} : memref<32x128xf32, #tpu.memory_space<vmem>>, vector<4x128xf32>
    %61 = vector.extract_strided_slice %60 {offsets = [0, 0], sizes = [4, 64], strides = [1, 1]} : vector<4x128xf32> to vector<4x64xf32>
    %c1_55 = arith.constant 1 : index
    %c0_56 = arith.constant 0 : index
    %62 = tpu.strided_load %arg5[%c1_55, %c0_56] {strides = array<i32: 2, 1>} : memref<32x128xf32, #tpu.memory_space<vmem>>, vector<4x128xf32>
    %63 = vector.extract_strided_slice %62 {offsets = [0, 0], sizes = [4, 64], strides = [1, 1]} : vector<4x128xf32> to vector<4x64xf32>
    %c2_57 = arith.constant 2 : index
    %c0_58 = arith.constant 0 : index
    %64 = tpu.strided_load %arg5[%c2_57, %c0_58] {strides = array<i32: 2, 1>} : memref<32x128xf32, #tpu.memory_space<vmem>>, vector<4x128xf32>
    %65 = vector.extract_strided_slice %64 {offsets = [0, 0], sizes = [4, 64], strides = [1, 1]} : vector<4x128xf32> to vector<4x64xf32>
    %66 = tpu.concatenate %61, %63, %65 in 1 : vector<4x64xf32>, vector<4x64xf32>, vector<4x64xf32> -> vector<4x192xf32>
    %c128 = arith.constant 128 : index
    %c0_59 = arith.constant 0 : index
    %67 = vector.load %arg2[%c128, %c0_59] : memref<4480x256xbf16, #tpu.memory_space<vmem>>, vector<192x128xbf16>
    %68 = arith.truncf %66 : vector<4x192xf32> to vector<4x192xbf16>
    %cst_60 = arith.constant dense<0.000000e+00> : vector<4x128xf32>
    %69 = tpu.matmul %68, %67, %cst_60 {dimension_numbers = #tpu.dot_dimension_numbers<[1], [0], [0], [1], [0, 0, 1, 1], [], []>} : vector<4x192xbf16>, vector<192x128xbf16>, vector<4x128xf32> -> vector<4x128xf32>
    %c4_61 = arith.constant 4 : index
    %c0_62 = arith.constant 0 : index
    %70 = vector.load %arg3[%c4_61, %c0_62] : memref<40x256xf32, #tpu.memory_space<vmem>>, vector<1x128xf32>
    %71 = vector.broadcast %70 : vector<1x128xf32> to vector<4x128xf32>
    %72 = arith.mulf %69, %71 : vector<4x128xf32>
    %c5_63 = arith.constant 5 : index
    %c0_64 = arith.constant 0 : index
    %73 = vector.load %arg3[%c5_63, %c0_64] : memref<40x256xf32, #tpu.memory_space<vmem>>, vector<1x128xf32>
    %74 = vector.broadcast %73 : vector<1x128xf32> to vector<4x128xf32>
    %75 = arith.addf %72, %74 : vector<4x128xf32>
    %cst_65 = arith.constant 0.000000e+00 : f32
    %76 = vector.broadcast %cst_65 : f32 to vector<4x128xf32>
    %77 = arith.maximumf %75, %76 : vector<4x128xf32>
    %c1_66 = arith.constant 1 : index
    %c0_67 = arith.constant 0 : index
    %78 = vector.load %arg5[%c1_66, %c0_67] : memref<32x128xf32, #tpu.memory_space<vmem>>, vector<4x128xf32>
    tpu.vector_store %arg5[%c1_66, %c0_67], %77 {strides = array<i32>} : memref<32x128xf32, #tpu.memory_space<vmem>>, vector<4x128xf32>,
    %79 = vector.extract_strided_slice %77 {offsets = [1, 0], sizes = [1, 128], strides = [1, 1]} : vector<4x128xf32> to vector<1x128xf32>
    %c0_68 = arith.constant 0 : index
    %c0_69 = arith.constant 0 : index
    %80 = vector.load %arg5[%c0_68, %c0_69] : memref<32x128xf32, #tpu.memory_space<vmem>>, vector<1x128xf32>
    tpu.vector_store %arg5[%c0_68, %c0_69], %79 {strides = array<i32>} : memref<32x128xf32, #tpu.memory_space<vmem>>, vector<1x128xf32>,
    %81 = vector.extract_strided_slice %77 {offsets = [2, 0], sizes = [1, 128], strides = [1, 1]} : vector<4x128xf32> to vector<1x128xf32>
    %c5_70 = arith.constant 5 : index
    %c0_71 = arith.constant 0 : index
    %82 = vector.load %arg5[%c5_70, %c0_71] : memref<32x128xf32, #tpu.memory_space<vmem>>, vector<1x128xf32>
    tpu.vector_store %arg5[%c5_70, %c0_71], %81 {strides = array<i32>} : memref<32x128xf32, #tpu.memory_space<vmem>>, vector<1x128xf32>,
    %c0_72 = arith.constant 0 : index
    %c0_73 = arith.constant 0 : index
    %83 = vector.load %arg5[%c0_72, %c0_73] : memref<32x128xf32, #tpu.memory_space<vmem>>, vector<4x128xf32>
    %c1_74 = arith.constant 1 : index
    %c0_75 = arith.constant 0 : index
    %84 = vector.load %arg5[%c1_74, %c0_75] : memref<32x128xf32, #tpu.memory_space<vmem>>, vector<4x128xf32>
    %c2_76 = arith.constant 2 : index
    %c0_77 = arith.constant 0 : index
    %85 = vector.load %arg5[%c2_76, %c0_77] : memref<32x128xf32, #tpu.memory_space<vmem>>, vector<4x128xf32>
    %86 = tpu.concatenate %83, %84, %85 in 1 : vector<4x128xf32>, vector<4x128xf32>, vector<4x128xf32> -> vector<4x384xf32>
    %c320 = arith.constant 320 : index
    %c0_78 = arith.constant 0 : index
    %87 = vector.load %arg2[%c320, %c0_78] : memref<4480x256xbf16, #tpu.memory_space<vmem>>, vector<384x128xbf16>
    %88 = arith.truncf %86 : vector<4x384xf32> to vector<4x384xbf16>
    %cst_79 = arith.constant dense<0.000000e+00> : vector<4x128xf32>
    %89 = tpu.matmul %88, %87, %cst_79 {dimension_numbers = #tpu.dot_dimension_numbers<[1], [0], [0], [1], [0, 0, 1, 1], [], []>} : vector<4x384xbf16>, vector<384x128xbf16>, vector<4x128xf32> -> vector<4x128xf32>
    %c6_80 = arith.constant 6 : index
    %c0_81 = arith.constant 0 : index
    %90 = vector.load %arg3[%c6_80, %c0_81] : memref<40x256xf32, #tpu.memory_space<vmem>>, vector<1x128xf32>
    %91 = vector.broadcast %90 : vector<1x128xf32> to vector<4x128xf32>
    %92 = arith.mulf %89, %91 : vector<4x128xf32>
    %c7 = arith.constant 7 : index
    %c0_82 = arith.constant 0 : index
    %93 = vector.load %arg3[%c7, %c0_82] : memref<40x256xf32, #tpu.memory_space<vmem>>, vector<1x128xf32>
    %94 = vector.broadcast %93 : vector<1x128xf32> to vector<4x128xf32>
    %95 = arith.addf %92, %94 : vector<4x128xf32>
    %cst_83 = arith.constant 0.000000e+00 : f32
    %96 = vector.broadcast %cst_83 : f32 to vector<4x128xf32>
    %97 = arith.maximumf %95, %96 : vector<4x128xf32>
    %c1_84 = arith.constant 1 : index
    %c0_85 = arith.constant 0 : index
    %98 = vector.load %arg5[%c1_84, %c0_85] : memref<32x128xf32, #tpu.memory_space<vmem>>, vector<4x128xf32>
    tpu.vector_store %arg5[%c1_84, %c0_85], %97 {strides = array<i32>} : memref<32x128xf32, #tpu.memory_space<vmem>>, vector<4x128xf32>,
    %99 = vector.extract_strided_slice %97 {offsets = [1, 0], sizes = [1, 128], strides = [1, 1]} : vector<4x128xf32> to vector<1x128xf32>
    %c0_86 = arith.constant 0 : index
    %c0_87 = arith.constant 0 : index
    %100 = vector.load %arg5[%c0_86, %c0_87] : memref<32x128xf32, #tpu.memory_space<vmem>>, vector<1x128xf32>
    tpu.vector_store %arg5[%c0_86, %c0_87], %99 {strides = array<i32>} : memref<32x128xf32, #tpu.memory_space<vmem>>, vector<1x128xf32>,
    %101 = vector.extract_strided_slice %97 {offsets = [2, 0], sizes = [1, 128], strides = [1, 1]} : vector<4x128xf32> to vector<1x128xf32>
    %c5_88 = arith.constant 5 : index
    %c0_89 = arith.constant 0 : index
    %102 = vector.load %arg5[%c5_88, %c0_89] : memref<32x128xf32, #tpu.memory_space<vmem>>, vector<1x128xf32>
    tpu.vector_store %arg5[%c5_88, %c0_89], %101 {strides = array<i32>} : memref<32x128xf32, #tpu.memory_space<vmem>>, vector<1x128xf32>,
    %c0_90 = arith.constant 0 : index
    %c0_91 = arith.constant 0 : index
    %103 = vector.load %arg5[%c0_90, %c0_91] : memref<32x128xf32, #tpu.memory_space<vmem>>, vector<4x128xf32>
    %c1_92 = arith.constant 1 : index
    %c0_93 = arith.constant 0 : index
    %104 = vector.load %arg5[%c1_92, %c0_93] : memref<32x128xf32, #tpu.memory_space<vmem>>, vector<4x128xf32>
    %c2_94 = arith.constant 2 : index
    %c0_95 = arith.constant 0 : index
    %105 = vector.load %arg5[%c2_94, %c0_95] : memref<32x128xf32, #tpu.memory_space<vmem>>, vector<4x128xf32>
    %106 = tpu.concatenate %103, %104, %105 in 1 : vector<4x128xf32>, vector<4x128xf32>, vector<4x128xf32> -> vector<4x384xf32>
    %c704 = arith.constant 704 : index
    %c0_96 = arith.constant 0 : index
    %107 = vector.load %arg2[%c704, %c0_96] : memref<4480x256xbf16, #tpu.memory_space<vmem>>, vector<384x128xbf16>
    %108 = arith.truncf %106 : vector<4x384xf32> to vector<4x384xbf16>
    %cst_97 = arith.constant dense<0.000000e+00> : vector<4x128xf32>
    %109 = tpu.matmul %108, %107, %cst_97 {dimension_numbers = #tpu.dot_dimension_numbers<[1], [0], [0], [1], [0, 0, 1, 1], [], []>} : vector<4x384xbf16>, vector<384x128xbf16>, vector<4x128xf32> -> vector<4x128xf32>
    %c8 = arith.constant 8 : index
    %c0_98 = arith.constant 0 : index
    %110 = vector.load %arg3[%c8, %c0_98] : memref<40x256xf32, #tpu.memory_space<vmem>>, vector<1x128xf32>
    %111 = vector.broadcast %110 : vector<1x128xf32> to vector<4x128xf32>
    %112 = arith.mulf %109, %111 : vector<4x128xf32>
    %c9_99 = arith.constant 9 : index
    %c0_100 = arith.constant 0 : index
    %113 = vector.load %arg3[%c9_99, %c0_100] : memref<40x256xf32, #tpu.memory_space<vmem>>, vector<1x128xf32>
    %114 = vector.broadcast %113 : vector<1x128xf32> to vector<4x128xf32>
    %115 = arith.addf %112, %114 : vector<4x128xf32>
    %116 = arith.addf %115, %77 : vector<4x128xf32>
    %c1_101 = arith.constant 1 : index
    %c0_102 = arith.constant 0 : index
    %117 = vector.load %arg5[%c1_101, %c0_102] : memref<32x128xf32, #tpu.memory_space<vmem>>, vector<4x128xf32>
    tpu.vector_store %arg5[%c1_101, %c0_102], %116 {strides = array<i32>} : memref<32x128xf32, #tpu.memory_space<vmem>>, vector<4x128xf32>,
    %118 = vector.extract_strided_slice %116 {offsets = [1, 0], sizes = [1, 128], strides = [1, 1]} : vector<4x128xf32> to vector<1x128xf32>
    %c0_103 = arith.constant 0 : index
    %c0_104 = arith.constant 0 : index
    %119 = vector.load %arg5[%c0_103, %c0_104] : memref<32x128xf32, #tpu.memory_space<vmem>>, vector<1x128xf32>
    tpu.vector_store %arg5[%c0_103, %c0_104], %118 {strides = array<i32>} : memref<32x128xf32, #tpu.memory_space<vmem>>, vector<1x128xf32>,
    %120 = vector.extract_strided_slice %116 {offsets = [2, 0], sizes = [1, 128], strides = [1, 1]} : vector<4x128xf32> to vector<1x128xf32>
    %c5_105 = arith.constant 5 : index
    %c0_106 = arith.constant 0 : index
    %121 = vector.load %arg5[%c5_105, %c0_106] : memref<32x128xf32, #tpu.memory_space<vmem>>, vector<1x128xf32>
    tpu.vector_store %arg5[%c5_105, %c0_106], %120 {strides = array<i32>} : memref<32x128xf32, #tpu.memory_space<vmem>>, vector<1x128xf32>,
    %c0_107 = arith.constant 0 : index
    %c0_108 = arith.constant 0 : index
    %122 = vector.load %arg5[%c0_107, %c0_108] : memref<32x128xf32, #tpu.memory_space<vmem>>, vector<4x128xf32>
    %c1_109 = arith.constant 1 : index
    %c0_110 = arith.constant 0 : index
    %123 = vector.load %arg5[%c1_109, %c0_110] : memref<32x128xf32, #tpu.memory_space<vmem>>, vector<4x128xf32>
    %c2_111 = arith.constant 2 : index
    %c0_112 = arith.constant 0 : index
    %124 = vector.load %arg5[%c2_111, %c0_112] : memref<32x128xf32, #tpu.memory_space<vmem>>, vector<4x128xf32>
    %125 = tpu.concatenate %122, %123, %124 in 1 : vector<4x128xf32>, vector<4x128xf32>, vector<4x128xf32> -> vector<4x384xf32>
    %c1088 = arith.constant 1088 : index
    %c0_113 = arith.constant 0 : index
    %126 = vector.load %arg2[%c1088, %c0_113] : memref<4480x256xbf16, #tpu.memory_space<vmem>>, vector<384x128xbf16>
    %127 = arith.truncf %125 : vector<4x384xf32> to vector<4x384xbf16>
    %cst_114 = arith.constant dense<0.000000e+00> : vector<4x128xf32>
    %128 = tpu.matmul %127, %126, %cst_114 {dimension_numbers = #tpu.dot_dimension_numbers<[1], [0], [0], [1], [0, 0, 1, 1], [], []>} : vector<4x384xbf16>, vector<384x128xbf16>, vector<4x128xf32> -> vector<4x128xf32>
    %c10 = arith.constant 10 : index
    %c0_115 = arith.constant 0 : index
    %129 = vector.load %arg3[%c10, %c0_115] : memref<40x256xf32, #tpu.memory_space<vmem>>, vector<1x128xf32>
    %130 = vector.broadcast %129 : vector<1x128xf32> to vector<4x128xf32>
    %131 = arith.mulf %128, %130 : vector<4x128xf32>
    %c11 = arith.constant 11 : index
    %c0_116 = arith.constant 0 : index
    %132 = vector.load %arg3[%c11, %c0_116] : memref<40x256xf32, #tpu.memory_space<vmem>>, vector<1x128xf32>
    %133 = vector.broadcast %132 : vector<1x128xf32> to vector<4x128xf32>
    %134 = arith.addf %131, %133 : vector<4x128xf32>
    %cst_117 = arith.constant 0.000000e+00 : f32
    %135 = vector.broadcast %cst_117 : f32 to vector<4x128xf32>
    %136 = arith.maximumf %134, %135 : vector<4x128xf32>
    %c1_118 = arith.constant 1 : index
    %c0_119 = arith.constant 0 : index
    %137 = vector.load %arg5[%c1_118, %c0_119] : memref<32x128xf32, #tpu.memory_space<vmem>>, vector<4x128xf32>
    tpu.vector_store %arg5[%c1_118, %c0_119], %136 {strides = array<i32>} : memref<32x128xf32, #tpu.memory_space<vmem>>, vector<4x128xf32>,
    %138 = vector.extract_strided_slice %136 {offsets = [1, 0], sizes = [1, 128], strides = [1, 1]} : vector<4x128xf32> to vector<1x128xf32>
    %c0_120 = arith.constant 0 : index
    %c0_121 = arith.constant 0 : index
    %139 = vector.load %arg5[%c0_120, %c0_121] : memref<32x128xf32, #tpu.memory_space<vmem>>, vector<1x128xf32>
    tpu.vector_store %arg5[%c0_120, %c0_121], %138 {strides = array<i32>} : memref<32x128xf32, #tpu.memory_space<vmem>>, vector<1x128xf32>,
    %140 = vector.extract_strided_slice %136 {offsets = [2, 0], sizes = [1, 128], strides = [1, 1]} : vector<4x128xf32> to vector<1x128xf32>
    %c5_122 = arith.constant 5 : index
    %c0_123 = arith.constant 0 : index
    %141 = vector.load %arg5[%c5_122, %c0_123] : memref<32x128xf32, #tpu.memory_space<vmem>>, vector<1x128xf32>
    tpu.vector_store %arg5[%c5_122, %c0_123], %140 {strides = array<i32>} : memref<32x128xf32, #tpu.memory_space<vmem>>, vector<1x128xf32>,
    %c0_124 = arith.constant 0 : index
    %c0_125 = arith.constant 0 : index
    %142 = vector.load %arg5[%c0_124, %c0_125] : memref<32x128xf32, #tpu.memory_space<vmem>>, vector<4x128xf32>
    %c1_126 = arith.constant 1 : index
    %c0_127 = arith.constant 0 : index
    %143 = vector.load %arg5[%c1_126, %c0_127] : memref<32x128xf32, #tpu.memory_space<vmem>>, vector<4x128xf32>
    %c2_128 = arith.constant 2 : index
    %c0_129 = arith.constant 0 : index
    %144 = vector.load %arg5[%c2_128, %c0_129] : memref<32x128xf32, #tpu.memory_space<vmem>>, vector<4x128xf32>
    %145 = tpu.concatenate %142, %143, %144 in 1 : vector<4x128xf32>, vector<4x128xf32>, vector<4x128xf32> -> vector<4x384xf32>
    %c1472 = arith.constant 1472 : index
    %c0_130 = arith.constant 0 : index
    %146 = vector.load %arg2[%c1472, %c0_130] : memref<4480x256xbf16, #tpu.memory_space<vmem>>, vector<384x128xbf16>
    %147 = arith.truncf %145 : vector<4x384xf32> to vector<4x384xbf16>
    %cst_131 = arith.constant dense<0.000000e+00> : vector<4x128xf32>
    %148 = tpu.matmul %147, %146, %cst_131 {dimension_numbers = #tpu.dot_dimension_numbers<[1], [0], [0], [1], [0, 0, 1, 1], [], []>} : vector<4x384xbf16>, vector<384x128xbf16>, vector<4x128xf32> -> vector<4x128xf32>
    %c12 = arith.constant 12 : index
    %c0_132 = arith.constant 0 : index
    %149 = vector.load %arg3[%c12, %c0_132] : memref<40x256xf32, #tpu.memory_space<vmem>>, vector<1x128xf32>
    %150 = vector.broadcast %149 : vector<1x128xf32> to vector<4x128xf32>
    %151 = arith.mulf %148, %150 : vector<4x128xf32>
    %c13 = arith.constant 13 : index
    %c0_133 = arith.constant 0 : index
    %152 = vector.load %arg3[%c13, %c0_133] : memref<40x256xf32, #tpu.memory_space<vmem>>, vector<1x128xf32>
    %153 = vector.broadcast %152 : vector<1x128xf32> to vector<4x128xf32>
    %154 = arith.addf %151, %153 : vector<4x128xf32>
    %155 = arith.addf %154, %116 : vector<4x128xf32>
    %c1_134 = arith.constant 1 : index
    %c0_135 = arith.constant 0 : index
    %156 = vector.load %arg5[%c1_134, %c0_135] : memref<32x128xf32, #tpu.memory_space<vmem>>, vector<4x128xf32>
    tpu.vector_store %arg5[%c1_134, %c0_135], %155 {strides = array<i32>} : memref<32x128xf32, #tpu.memory_space<vmem>>, vector<4x128xf32>,
    %157 = vector.extract_strided_slice %155 {offsets = [1, 0], sizes = [1, 128], strides = [1, 1]} : vector<4x128xf32> to vector<1x128xf32>
    %c0_136 = arith.constant 0 : index
    %c0_137 = arith.constant 0 : index
    %158 = vector.load %arg5[%c0_136, %c0_137] : memref<32x128xf32, #tpu.memory_space<vmem>>, vector<1x128xf32>
    tpu.vector_store %arg5[%c0_136, %c0_137], %157 {strides = array<i32>} : memref<32x128xf32, #tpu.memory_space<vmem>>, vector<1x128xf32>,
    %159 = vector.extract_strided_slice %155 {offsets = [2, 0], sizes = [1, 128], strides = [1, 1]} : vector<4x128xf32> to vector<1x128xf32>
    %c5_138 = arith.constant 5 : index
    %c0_139 = arith.constant 0 : index
    %160 = vector.load %arg5[%c5_138, %c0_139] : memref<32x128xf32, #tpu.memory_space<vmem>>, vector<1x128xf32>
    tpu.vector_store %arg5[%c5_138, %c0_139], %159 {strides = array<i32>} : memref<32x128xf32, #tpu.memory_space<vmem>>, vector<1x128xf32>,
    %c0_140 = arith.constant 0 : index
    %c0_141 = arith.constant 0 : index
    %161 = vector.load %arg5[%c0_140, %c0_141] : memref<32x128xf32, #tpu.memory_space<vmem>>, vector<4x128xf32>
    %c1_142 = arith.constant 1 : index
    %c0_143 = arith.constant 0 : index
    %162 = vector.load %arg5[%c1_142, %c0_143] : memref<32x128xf32, #tpu.memory_space<vmem>>, vector<4x128xf32>
    %c2_144 = arith.constant 2 : index
    %c0_145 = arith.constant 0 : index
    %163 = vector.load %arg5[%c2_144, %c0_145] : memref<32x128xf32, #tpu.memory_space<vmem>>, vector<4x128xf32>
    %164 = tpu.concatenate %161, %162, %163 in 1 : vector<4x128xf32>, vector<4x128xf32>, vector<4x128xf32> -> vector<4x384xf32>
    %c1856 = arith.constant 1856 : index
    %c0_146 = arith.constant 0 : index
    %165 = vector.load %arg2[%c1856, %c0_146] : memref<4480x256xbf16, #tpu.memory_space<vmem>>, vector<384x128xbf16>
    %166 = arith.truncf %164 : vector<4x384xf32> to vector<4x384xbf16>
    %cst_147 = arith.constant dense<0.000000e+00> : vector<4x128xf32>
    %167 = tpu.matmul %166, %165, %cst_147 {dimension_numbers = #tpu.dot_dimension_numbers<[1], [0], [0], [1], [0, 0, 1, 1], [], []>} : vector<4x384xbf16>, vector<384x128xbf16>, vector<4x128xf32> -> vector<4x128xf32>
    %c14 = arith.constant 14 : index
    %c0_148 = arith.constant 0 : index
    %168 = vector.load %arg3[%c14, %c0_148] : memref<40x256xf32, #tpu.memory_space<vmem>>, vector<1x128xf32>
    %169 = vector.broadcast %168 : vector<1x128xf32> to vector<4x128xf32>
    %170 = arith.mulf %167, %169 : vector<4x128xf32>
    %c15 = arith.constant 15 : index
    %c0_149 = arith.constant 0 : index
    %171 = vector.load %arg3[%c15, %c0_149] : memref<40x256xf32, #tpu.memory_space<vmem>>, vector<1x128xf32>
    %172 = vector.broadcast %171 : vector<1x128xf32> to vector<4x128xf32>
    %173 = arith.addf %170, %172 : vector<4x128xf32>
    %cst_150 = arith.constant 0.000000e+00 : f32
    %174 = vector.broadcast %cst_150 : f32 to vector<4x128xf32>
    %175 = arith.maximumf %173, %174 : vector<4x128xf32>
    %c1_151 = arith.constant 1 : index
    %c0_152 = arith.constant 0 : index
    %176 = vector.load %arg5[%c1_151, %c0_152] : memref<32x128xf32, #tpu.memory_space<vmem>>, vector<4x128xf32>
    tpu.vector_store %arg5[%c1_151, %c0_152], %175 {strides = array<i32>} : memref<32x128xf32, #tpu.memory_space<vmem>>, vector<4x128xf32>,
    %177 = vector.extract_strided_slice %175 {offsets = [1, 0], sizes = [1, 128], strides = [1, 1]} : vector<4x128xf32> to vector<1x128xf32>
    %c0_153 = arith.constant 0 : index
    %c0_154 = arith.constant 0 : index
    %178 = vector.load %arg5[%c0_153, %c0_154] : memref<32x128xf32, #tpu.memory_space<vmem>>, vector<1x128xf32>
    tpu.vector_store %arg5[%c0_153, %c0_154], %177 {strides = array<i32>} : memref<32x128xf32, #tpu.memory_space<vmem>>, vector<1x128xf32>,
    %179 = vector.extract_strided_slice %175 {offsets = [2, 0], sizes = [1, 128], strides = [1, 1]} : vector<4x128xf32> to vector<1x128xf32>
    %c5_155 = arith.constant 5 : index
    %c0_156 = arith.constant 0 : index
    %180 = vector.load %arg5[%c5_155, %c0_156] : memref<32x128xf32, #tpu.memory_space<vmem>>, vector<1x128xf32>
    tpu.vector_store %arg5[%c5_155, %c0_156], %179 {strides = array<i32>} : memref<32x128xf32, #tpu.memory_space<vmem>>, vector<1x128xf32>,
    %c0_157 = arith.constant 0 : index
    %c0_158 = arith.constant 0 : index
    %181 = vector.load %arg5[%c0_157, %c0_158] : memref<32x128xf32, #tpu.memory_space<vmem>>, vector<4x128xf32>
    %c1_159 = arith.constant 1 : index
    %c0_160 = arith.constant 0 : index
    %182 = vector.load %arg5[%c1_159, %c0_160] : memref<32x128xf32, #tpu.memory_space<vmem>>, vector<4x128xf32>
    %c2_161 = arith.constant 2 : index
    %c0_162 = arith.constant 0 : index
    %183 = vector.load %arg5[%c2_161, %c0_162] : memref<32x128xf32, #tpu.memory_space<vmem>>, vector<4x128xf32>
    %184 = tpu.concatenate %181, %182, %183 in 1 : vector<4x128xf32>, vector<4x128xf32>, vector<4x128xf32> -> vector<4x384xf32>
    %c2240 = arith.constant 2240 : index
    %c0_163 = arith.constant 0 : index
    %185 = vector.load %arg2[%c2240, %c0_163] : memref<4480x256xbf16, #tpu.memory_space<vmem>>, vector<384x128xbf16>
    %186 = arith.truncf %184 : vector<4x384xf32> to vector<4x384xbf16>
    %cst_164 = arith.constant dense<0.000000e+00> : vector<4x128xf32>
    %187 = tpu.matmul %186, %185, %cst_164 {dimension_numbers = #tpu.dot_dimension_numbers<[1], [0], [0], [1], [0, 0, 1, 1], [], []>} : vector<4x384xbf16>, vector<384x128xbf16>, vector<4x128xf32> -> vector<4x128xf32>
    %c16 = arith.constant 16 : index
    %c0_165 = arith.constant 0 : index
    %188 = vector.load %arg3[%c16, %c0_165] : memref<40x256xf32, #tpu.memory_space<vmem>>, vector<1x128xf32>
    %189 = vector.broadcast %188 : vector<1x128xf32> to vector<4x128xf32>
    %190 = arith.mulf %187, %189 : vector<4x128xf32>
    %c17_166 = arith.constant 17 : index
    %c0_167 = arith.constant 0 : index
    %191 = vector.load %arg3[%c17_166, %c0_167] : memref<40x256xf32, #tpu.memory_space<vmem>>, vector<1x128xf32>
    %192 = vector.broadcast %191 : vector<1x128xf32> to vector<4x128xf32>
    %193 = arith.addf %190, %192 : vector<4x128xf32>
    %194 = arith.addf %193, %155 : vector<4x128xf32>
    %195 = arith.truncf %194 : vector<4x128xf32> to vector<4x128xbf16>
    %c2624 = arith.constant 2624 : index
    %c0_168 = arith.constant 0 : index
    %196 = vector.load %arg2[%c2624, %c0_168] : memref<4480x256xbf16, #tpu.memory_space<vmem>>, vector<128x64xbf16>
    %cst_169 = arith.constant dense<0.000000e+00> : vector<4x64xf32>
    %197 = tpu.matmul %195, %196, %cst_169 {dimension_numbers = #tpu.dot_dimension_numbers<[1], [0], [0], [1], [0, 0, 1, 1], [], []>} : vector<4x128xbf16>, vector<128x64xbf16>, vector<4x64xf32> -> vector<4x64xf32>
    %c0_170 = arith.constant 0 : index
    %c0_171 = arith.constant 0 : index
    %198 = vector.load %arg5[%c0_170, %c0_171] : memref<32x128xf32, #tpu.memory_space<vmem>>, vector<4x128xf32>
    tpu.vector_store %arg5[%c0_170, %c0_171], %194 {strides = array<i32>} : memref<32x128xf32, #tpu.memory_space<vmem>>, vector<4x128xf32>,
    %cst_172 = arith.constant 0.000000e+00 : f32
    %199 = vector.broadcast %cst_172 : f32 to vector<1x128xf32>
    %c4_173 = arith.constant 4 : index
    %c0_174 = arith.constant 0 : index
    %200 = vector.load %arg5[%c4_173, %c0_174] : memref<32x128xf32, #tpu.memory_space<vmem>>, vector<1x128xf32>
    tpu.vector_store %arg5[%c4_173, %c0_174], %199 {strides = array<i32>} : memref<32x128xf32, #tpu.memory_space<vmem>>, vector<1x128xf32>,
    %c1_175 = arith.constant 1 : index
    %c0_176 = arith.constant 0 : index
    %201 = vector.load %arg5[%c1_175, %c0_176] : memref<32x128xf32, #tpu.memory_space<vmem>>, vector<4x128xf32>
    %202 = tpu.concatenate %194, %201 in 1 : vector<4x128xf32>, vector<4x128xf32> -> vector<4x256xf32>
    %c2752 = arith.constant 2752 : index
    %c0_177 = arith.constant 0 : index
    %203 = vector.load %arg2[%c2752, %c0_177] : memref<4480x256xbf16, #tpu.memory_space<vmem>>, vector<256x64xbf16>
    %204 = arith.truncf %202 : vector<4x256xf32> to vector<4x256xbf16>
    %cst_178 = arith.constant dense<0.000000e+00> : vector<4x64xf32>
    %205 = tpu.matmul %204, %203, %cst_178 {dimension_numbers = #tpu.dot_dimension_numbers<[1], [0], [0], [1], [0, 0, 1, 1], [], []>} : vector<4x256xbf16>, vector<256x64xbf16>, vector<4x64xf32> -> vector<4x64xf32>
    %c18 = arith.constant 18 : index
    %c0_179 = arith.constant 0 : index
    %206 = vector.load %arg3[%c18, %c0_179] : memref<40x256xf32, #tpu.memory_space<vmem>>, vector<1x64xf32>
    %207 = vector.broadcast %206 : vector<1x64xf32> to vector<4x64xf32>
    %208 = arith.mulf %197, %207 : vector<4x64xf32>
    %c19_180 = arith.constant 19 : index
    %c0_181 = arith.constant 0 : index
    %209 = vector.load %arg3[%c19_180, %c0_181] : memref<40x256xf32, #tpu.memory_space<vmem>>, vector<1x64xf32>
    %210 = vector.broadcast %209 : vector<1x64xf32> to vector<4x64xf32>
    %211 = arith.addf %208, %210 : vector<4x64xf32>
    %cst_182 = arith.constant 0.000000e+00 : f32
    %212 = vector.broadcast %cst_182 : f32 to vector<4x64xf32>
    %213 = arith.maximumf %211, %212 : vector<4x64xf32>
    %c18_183 = arith.constant 18 : index
    %c0_184 = arith.constant 0 : index
    %214 = vector.load %arg3[%c18_183, %c0_184] : memref<40x256xf32, #tpu.memory_space<vmem>>, vector<1x64xf32>
    %215 = vector.broadcast %214 : vector<1x64xf32> to vector<4x64xf32>
    %216 = arith.mulf %205, %215 : vector<4x64xf32>
    %c19_185 = arith.constant 19 : index
    %c0_186 = arith.constant 0 : index
    %217 = vector.load %arg3[%c19_185, %c0_186] : memref<40x256xf32, #tpu.memory_space<vmem>>, vector<1x64xf32>
    %218 = vector.broadcast %217 : vector<1x64xf32> to vector<4x64xf32>
    %219 = arith.addf %216, %218 : vector<4x64xf32>
    %cst_187 = arith.constant 0.000000e+00 : f32
    %220 = vector.broadcast %cst_187 : f32 to vector<4x64xf32>
    %221 = arith.maximumf %219, %220 : vector<4x64xf32>
    %c3008 = arith.constant 3008 : index
    %c0_188 = arith.constant 0 : index
    %222 = vector.load %arg2[%c3008, %c0_188] : memref<4480x256xbf16, #tpu.memory_space<vmem>>, vector<8x4xbf16>
    %c3024 = arith.constant 3024 : index
    %c0_189 = arith.constant 0 : index
    %223 = vector.load %arg2[%c3024, %c0_189] : memref<4480x256xbf16, #tpu.memory_space<vmem>>, vector<8x4xbf16>
    %224 = arith.truncf %213 : vector<4x64xf32> to vector<4x64xbf16>
    %cst_190 = arith.constant dense<0.000000e+00> : vector<8x64xf32>
    %225 = tpu.matmul %222, %224, %cst_190 {dimension_numbers = #tpu.dot_dimension_numbers<[1], [0], [0], [1], [0, 0, 1, 1], [], []>} : vector<8x4xbf16>, vector<4x64xbf16>, vector<8x64xf32> -> vector<8x64xf32>
    %226 = arith.truncf %221 : vector<4x64xf32> to vector<4x64xbf16>
    %cst_191 = arith.constant dense<0.000000e+00> : vector<8x64xf32>
    %227 = tpu.matmul %223, %226, %cst_191 {dimension_numbers = #tpu.dot_dimension_numbers<[1], [0], [0], [1], [0, 0, 1, 1], [], []>} : vector<8x4xbf16>, vector<4x64xbf16>, vector<8x64xf32> -> vector<8x64xf32>
    %228 = arith.addf %225, %227 : vector<8x64xf32>
    %229 = arith.truncf %228 : vector<8x64xf32> to vector<8x64xbf16>
    %c3040 = arith.constant 3040 : index
    %c0_192 = arith.constant 0 : index
    %230 = vector.load %arg2[%c3040, %c0_192] : memref<4480x256xbf16, #tpu.memory_space<vmem>>, vector<64x32xbf16>
    %cst_193 = arith.constant dense<0.000000e+00> : vector<8x32xf32>
    %231 = tpu.matmul %229, %230, %cst_193 {dimension_numbers = #tpu.dot_dimension_numbers<[1], [0], [0], [1], [0, 0, 1, 1], [], []>} : vector<8x64xbf16>, vector<64x32xbf16>, vector<8x32xf32> -> vector<8x32xf32>
    %c0_194 = arith.constant 0 : index
    %c0_195 = arith.constant 0 : index
    %232 = vector.load %arg5[%c0_194, %c0_195] : memref<32x128xf32, #tpu.memory_space<vmem>>, vector<8x64xf32>
    tpu.vector_store %arg5[%c0_194, %c0_195], %228 {strides = array<i32>} : memref<32x128xf32, #tpu.memory_space<vmem>>, vector<8x64xf32>,
    %cst_196 = arith.constant 0.000000e+00 : f32
    %233 = vector.broadcast %cst_196 : f32 to vector<1x64xf32>
    %c8_197 = arith.constant 8 : index
    %c0_198 = arith.constant 0 : index
    %234 = vector.load %arg5[%c8_197, %c0_198] : memref<32x128xf32, #tpu.memory_space<vmem>>, vector<1x64xf32>
    tpu.vector_store %arg5[%c8_197, %c0_198], %233 {strides = array<i32>} : memref<32x128xf32, #tpu.memory_space<vmem>>, vector<1x64xf32>,
    %c1_199 = arith.constant 1 : index
    %c0_200 = arith.constant 0 : index
    %235 = vector.load %arg5[%c1_199, %c0_200] : memref<32x128xf32, #tpu.memory_space<vmem>>, vector<8x64xf32>
    %236 = tpu.concatenate %228, %235 in 1 : vector<8x64xf32>, vector<8x64xf32> -> vector<8x128xf32>
    %c3104 = arith.constant 3104 : index
    %c0_201 = arith.constant 0 : index
    %237 = vector.load %arg2[%c3104, %c0_201] : memref<4480x256xbf16, #tpu.memory_space<vmem>>, vector<128x32xbf16>
    %238 = arith.truncf %236 : vector<8x128xf32> to vector<8x128xbf16>
    %cst_202 = arith.constant dense<0.000000e+00> : vector<8x32xf32>
    %239 = tpu.matmul %238, %237, %cst_202 {dimension_numbers = #tpu.dot_dimension_numbers<[1], [0], [0], [1], [0, 0, 1, 1], [], []>} : vector<8x128xbf16>, vector<128x32xbf16>, vector<8x32xf32> -> vector<8x32xf32>
    %c20_203 = arith.constant 20 : index
    %c0_204 = arith.constant 0 : index
    %240 = vector.load %arg3[%c20_203, %c0_204] : memref<40x256xf32, #tpu.memory_space<vmem>>, vector<1x32xf32>
    %241 = vector.broadcast %240 : vector<1x32xf32> to vector<8x32xf32>
    %242 = arith.mulf %231, %241 : vector<8x32xf32>
    %c21_205 = arith.constant 21 : index
    %c0_206 = arith.constant 0 : index
    %243 = vector.load %arg3[%c21_205, %c0_206] : memref<40x256xf32, #tpu.memory_space<vmem>>, vector<1x32xf32>
    %244 = vector.broadcast %243 : vector<1x32xf32> to vector<8x32xf32>
    %245 = arith.addf %242, %244 : vector<8x32xf32>
    %cst_207 = arith.constant 0.000000e+00 : f32
    %246 = vector.broadcast %cst_207 : f32 to vector<8x32xf32>
    %247 = arith.maximumf %245, %246 : vector<8x32xf32>
    %c20_208 = arith.constant 20 : index
    %c0_209 = arith.constant 0 : index
    %248 = vector.load %arg3[%c20_208, %c0_209] : memref<40x256xf32, #tpu.memory_space<vmem>>, vector<1x32xf32>
    %249 = vector.broadcast %248 : vector<1x32xf32> to vector<8x32xf32>
    %250 = arith.mulf %239, %249 : vector<8x32xf32>
    %c21_210 = arith.constant 21 : index
    %c0_211 = arith.constant 0 : index
    %251 = vector.load %arg3[%c21_210, %c0_211] : memref<40x256xf32, #tpu.memory_space<vmem>>, vector<1x32xf32>
    %252 = vector.broadcast %251 : vector<1x32xf32> to vector<8x32xf32>
    %253 = arith.addf %250, %252 : vector<8x32xf32>
    %cst_212 = arith.constant 0.000000e+00 : f32
    %254 = vector.broadcast %cst_212 : f32 to vector<8x32xf32>
    %255 = arith.maximumf %253, %254 : vector<8x32xf32>
    %c3232 = arith.constant 3232 : index
    %c0_213 = arith.constant 0 : index
    %256 = vector.load %arg2[%c3232, %c0_213] : memref<4480x256xbf16, #tpu.memory_space<vmem>>, vector<16x8xbf16>
    %c3248 = arith.constant 3248 : index
    %c0_214 = arith.constant 0 : index
    %257 = vector.load %arg2[%c3248, %c0_214] : memref<4480x256xbf16, #tpu.memory_space<vmem>>, vector<16x8xbf16>
    %258 = arith.truncf %247 : vector<8x32xf32> to vector<8x32xbf16>
    %cst_215 = arith.constant dense<0.000000e+00> : vector<16x32xf32>
    %259 = tpu.matmul %256, %258, %cst_215 {dimension_numbers = #tpu.dot_dimension_numbers<[1], [0], [0], [1], [0, 0, 1, 1], [], []>} : vector<16x8xbf16>, vector<8x32xbf16>, vector<16x32xf32> -> vector<16x32xf32>
    %260 = arith.truncf %255 : vector<8x32xf32> to vector<8x32xbf16>
    %cst_216 = arith.constant dense<0.000000e+00> : vector<16x32xf32>
    %261 = tpu.matmul %257, %260, %cst_216 {dimension_numbers = #tpu.dot_dimension_numbers<[1], [0], [0], [1], [0, 0, 1, 1], [], []>} : vector<16x8xbf16>, vector<8x32xbf16>, vector<16x32xf32> -> vector<16x32xf32>
    %262 = arith.addf %259, %261 : vector<16x32xf32>
    %c3_217 = arith.constant 3 : index
    %c0_218 = arith.constant 0 : index
    %263 = vector.load %arg5[%c3_217, %c0_218] : memref<32x128xf32, #tpu.memory_space<vmem>>, vector<16x32xf32>
    tpu.vector_store %arg5[%c3_217, %c0_218], %262 {strides = array<i32>} : memref<32x128xf32, #tpu.memory_space<vmem>>, vector<16x32xf32>,
    %264 = vector.extract_strided_slice %262 {offsets = [3, 0], sizes = [1, 32], strides = [1, 1]} : vector<16x32xf32> to vector<1x32xf32>
    %c0_219 = arith.constant 0 : index
    %c0_220 = arith.constant 0 : index
    %265 = vector.load %arg5[%c0_219, %c0_220] : memref<32x128xf32, #tpu.memory_space<vmem>>, vector<1x32xf32>
    tpu.vector_store %arg5[%c0_219, %c0_220], %264 {strides = array<i32>} : memref<32x128xf32, #tpu.memory_space<vmem>>, vector<1x32xf32>,
    %266 = vector.extract_strided_slice %262 {offsets = [14, 0], sizes = [1, 32], strides = [1, 1]} : vector<16x32xf32> to vector<1x32xf32>
    %c19_221 = arith.constant 19 : index
    %c0_222 = arith.constant 0 : index
    %267 = vector.load %arg5[%c19_221, %c0_222] : memref<32x128xf32, #tpu.memory_space<vmem>>, vector<1x32xf32>
    tpu.vector_store %arg5[%c19_221, %c0_222], %266 {strides = array<i32>} : memref<32x128xf32, #tpu.memory_space<vmem>>, vector<1x32xf32>,
    %268 = vector.extract_strided_slice %262 {offsets = [2, 0], sizes = [1, 32], strides = [1, 1]} : vector<16x32xf32> to vector<1x32xf32>
    %c1_223 = arith.constant 1 : index
    %c0_224 = arith.constant 0 : index
    %269 = vector.load %arg5[%c1_223, %c0_224] : memref<32x128xf32, #tpu.memory_space<vmem>>, vector<1x32xf32>
    tpu.vector_store %arg5[%c1_223, %c0_224], %268 {strides = array<i32>} : memref<32x128xf32, #tpu.memory_space<vmem>>, vector<1x32xf32>,
    %270 = vector.extract_strided_slice %262 {offsets = [13, 0], sizes = [1, 32], strides = [1, 1]} : vector<16x32xf32> to vector<1x32xf32>
    %c20_225 = arith.constant 20 : index
    %c0_226 = arith.constant 0 : index
    %271 = vector.load %arg5[%c20_225, %c0_226] : memref<32x128xf32, #tpu.memory_space<vmem>>, vector<1x32xf32>
    tpu.vector_store %arg5[%c20_225, %c0_226], %270 {strides = array<i32>} : memref<32x128xf32, #tpu.memory_space<vmem>>, vector<1x32xf32>,
    %272 = vector.extract_strided_slice %262 {offsets = [1, 0], sizes = [1, 32], strides = [1, 1]} : vector<16x32xf32> to vector<1x32xf32>
    %c2_227 = arith.constant 2 : index
    %c0_228 = arith.constant 0 : index
    %273 = vector.load %arg5[%c2_227, %c0_228] : memref<32x128xf32, #tpu.memory_space<vmem>>, vector<1x32xf32>
    tpu.vector_store %arg5[%c2_227, %c0_228], %272 {strides = array<i32>} : memref<32x128xf32, #tpu.memory_space<vmem>>, vector<1x32xf32>,
    %274 = vector.extract_strided_slice %262 {offsets = [12, 0], sizes = [1, 32], strides = [1, 1]} : vector<16x32xf32> to vector<1x32xf32>
    %c21_229 = arith.constant 21 : index
    %c0_230 = arith.constant 0 : index
    %275 = vector.load %arg5[%c21_229, %c0_230] : memref<32x128xf32, #tpu.memory_space<vmem>>, vector<1x32xf32>
    tpu.vector_store %arg5[%c21_229, %c0_230], %274 {strides = array<i32>} : memref<32x128xf32, #tpu.memory_space<vmem>>, vector<1x32xf32>,
    %c0_231 = arith.constant 0 : index
    %c0_232 = arith.constant 0 : index
    %276 = vector.load %arg5[%c0_231, %c0_232] : memref<32x128xf32, #tpu.memory_space<vmem>>, vector<16x32xf32>
    %c1_233 = arith.constant 1 : index
    %c0_234 = arith.constant 0 : index
    %277 = vector.load %arg5[%c1_233, %c0_234] : memref<32x128xf32, #tpu.memory_space<vmem>>, vector<16x32xf32>
    %c2_235 = arith.constant 2 : index
    %c0_236 = arith.constant 0 : index
    %278 = vector.load %arg5[%c2_235, %c0_236] : memref<32x128xf32, #tpu.memory_space<vmem>>, vector<16x32xf32>
    %c3_237 = arith.constant 3 : index
    %c0_238 = arith.constant 0 : index
    %279 = vector.load %arg5[%c3_237, %c0_238] : memref<32x128xf32, #tpu.memory_space<vmem>>, vector<16x32xf32>
    %c4_239 = arith.constant 4 : index
    %c0_240 = arith.constant 0 : index
    %280 = vector.load %arg5[%c4_239, %c0_240] : memref<32x128xf32, #tpu.memory_space<vmem>>, vector<16x32xf32>
    %c5_241 = arith.constant 5 : index
    %c0_242 = arith.constant 0 : index
    %281 = vector.load %arg5[%c5_241, %c0_242] : memref<32x128xf32, #tpu.memory_space<vmem>>, vector<16x32xf32>
    %c6_243 = arith.constant 6 : index
    %c0_244 = arith.constant 0 : index
    %282 = vector.load %arg5[%c6_243, %c0_244] : memref<32x128xf32, #tpu.memory_space<vmem>>, vector<16x32xf32>
    %283 = tpu.concatenate %276, %277, %278, %279, %280, %281, %282 in 1 : vector<16x32xf32>, vector<16x32xf32>, vector<16x32xf32>, vector<16x32xf32>, vector<16x32xf32>, vector<16x32xf32>, vector<16x32xf32> -> vector<16x224xf32>
    %c3264 = arith.constant 3264 : index
    %c0_245 = arith.constant 0 : index
    %284 = vector.load %arg2[%c3264, %c0_245] : memref<4480x256xbf16, #tpu.memory_space<vmem>>, vector<224x4xbf16>
    %285 = arith.truncf %283 : vector<16x224xf32> to vector<16x224xbf16>
    %cst_246 = arith.constant dense<0.000000e+00> : vector<16x4xf32>
    %286 = tpu.matmul %285, %284, %cst_246 {dimension_numbers = #tpu.dot_dimension_numbers<[1], [0], [0], [1], [0, 0, 1, 1], [], []>} : vector<16x224xbf16>, vector<224x4xbf16>, vector<16x4xf32> -> vector<16x4xf32>
    %c22 = arith.constant 22 : index
    %c0_247 = arith.constant 0 : index
    %287 = vector.load %arg3[%c22, %c0_247] : memref<40x256xf32, #tpu.memory_space<vmem>>, vector<1x4xf32>
    %288 = vector.broadcast %287 : vector<1x4xf32> to vector<16x4xf32>
    %289 = arith.mulf %286, %288 : vector<16x4xf32>
    %c23 = arith.constant 23 : index
    %c0_248 = arith.constant 0 : index
    %290 = vector.load %arg3[%c23, %c0_248] : memref<40x256xf32, #tpu.memory_space<vmem>>, vector<1x4xf32>
    %291 = vector.broadcast %290 : vector<1x4xf32> to vector<16x4xf32>
    %292 = arith.addf %289, %291 : vector<16x4xf32>
    %293 = math.tanh %292 : vector<16x4xf32>
    %c3_249 = arith.constant 3 : index
    %c0_250 = arith.constant 0 : index
    %294 = vector.load %arg5[%c3_249, %c0_250] : memref<32x128xf32, #tpu.memory_space<vmem>>, vector<16x4xf32>
    tpu.vector_store %arg5[%c3_249, %c0_250], %293 {strides = array<i32>} : memref<32x128xf32, #tpu.memory_space<vmem>>, vector<16x4xf32>,
    %cst_251 = arith.constant 0.000000e+00 : f32
    %295 = vector.broadcast %cst_251 : f32 to vector<3x4xf32>
    %c0_252 = arith.constant 0 : index
    %c0_253 = arith.constant 0 : index
    %296 = vector.load %arg5[%c0_252, %c0_253] : memref<32x128xf32, #tpu.memory_space<vmem>>, vector<3x4xf32>
    tpu.vector_store %arg5[%c0_252, %c0_253], %295 {strides = array<i32>} : memref<32x128xf32, #tpu.memory_space<vmem>>, vector<3x4xf32>,
    %c19_254 = arith.constant 19 : index
    %c0_255 = arith.constant 0 : index
    %297 = vector.load %arg5[%c19_254, %c0_255] : memref<32x128xf32, #tpu.memory_space<vmem>>, vector<3x4xf32>
    tpu.vector_store %arg5[%c19_254, %c0_255], %295 {strides = array<i32>} : memref<32x128xf32, #tpu.memory_space<vmem>>, vector<3x4xf32>,
    %c0_256 = arith.constant 0 : index
    %c0_257 = arith.constant 0 : index
    %298 = vector.load %arg5[%c0_256, %c0_257] : memref<32x128xf32, #tpu.memory_space<vmem>>, vector<16x4xf32>
    %c1_258 = arith.constant 1 : index
    %c0_259 = arith.constant 0 : index
    %299 = vector.load %arg5[%c1_258, %c0_259] : memref<32x128xf32, #tpu.memory_space<vmem>>, vector<16x4xf32>
    %c2_260 = arith.constant 2 : index
    %c0_261 = arith.constant 0 : index
    %300 = vector.load %arg5[%c2_260, %c0_261] : memref<32x128xf32, #tpu.memory_space<vmem>>, vector<16x4xf32>
    %c3_262 = arith.constant 3 : index
    %c0_263 = arith.constant 0 : index
    %301 = vector.load %arg5[%c3_262, %c0_263] : memref<32x128xf32, #tpu.memory_space<vmem>>, vector<16x4xf32>
    %c4_264 = arith.constant 4 : index
    %c0_265 = arith.constant 0 : index
    %302 = vector.load %arg5[%c4_264, %c0_265] : memref<32x128xf32, #tpu.memory_space<vmem>>, vector<16x4xf32>
    %c5_266 = arith.constant 5 : index
    %c0_267 = arith.constant 0 : index
    %303 = vector.load %arg5[%c5_266, %c0_267] : memref<32x128xf32, #tpu.memory_space<vmem>>, vector<16x4xf32>
    %c6_268 = arith.constant 6 : index
    %c0_269 = arith.constant 0 : index
    %304 = vector.load %arg5[%c6_268, %c0_269] : memref<32x128xf32, #tpu.memory_space<vmem>>, vector<16x4xf32>
    %305 = tpu.concatenate %298, %299, %300, %301, %302, %303, %304 in 1 : vector<16x4xf32>, vector<16x4xf32>, vector<16x4xf32>, vector<16x4xf32>, vector<16x4xf32>, vector<16x4xf32>, vector<16x4xf32> -> vector<16x28xf32>
    %c3488 = arith.constant 3488 : index
    %c0_270 = arith.constant 0 : index
    %306 = vector.load %arg2[%c3488, %c0_270] : memref<4480x256xbf16, #tpu.memory_space<vmem>>, vector<28x100xbf16>
    %307 = arith.truncf %305 : vector<16x28xf32> to vector<16x28xbf16>
    %cst_271 = arith.constant dense<0.000000e+00> : vector<16x100xf32>
    %308 = tpu.matmul %307, %306, %cst_271 {dimension_numbers = #tpu.dot_dimension_numbers<[1], [0], [0], [1], [0, 0, 1, 1], [], []>} : vector<16x28xbf16>, vector<28x100xbf16>, vector<16x100xf32> -> vector<16x100xf32>
    %c24 = arith.constant 24 : index
    %c0_272 = arith.constant 0 : index
    %309 = vector.load %arg3[%c24, %c0_272] : memref<40x256xf32, #tpu.memory_space<vmem>>, vector<1x100xf32>
    %310 = vector.broadcast %309 : vector<1x100xf32> to vector<16x100xf32>
    %311 = arith.mulf %308, %310 : vector<16x100xf32>
    %c25 = arith.constant 25 : index
    %c0_273 = arith.constant 0 : index
    %312 = vector.load %arg3[%c25, %c0_273] : memref<40x256xf32, #tpu.memory_space<vmem>>, vector<1x100xf32>
    %313 = vector.broadcast %312 : vector<1x100xf32> to vector<16x100xf32>
    %314 = arith.addf %311, %313 : vector<16x100xf32>
    %cst_274 = arith.constant 0.000000e+00 : f32
    %315 = vector.broadcast %cst_274 : f32 to vector<16x100xf32>
    %316 = arith.maximumf %314, %315 : vector<16x100xf32>
    %c0_275 = arith.constant 0 : index
    %c0_276 = arith.constant 0 : index
    %317 = vector.load %arg5[%c0_275, %c0_276] : memref<32x128xf32, #tpu.memory_space<vmem>>, vector<16x100xf32>
    tpu.vector_store %arg5[%c0_275, %c0_276], %316 {strides = array<i32>} : memref<32x128xf32, #tpu.memory_space<vmem>>, vector<16x100xf32>,
    %c0_277 = arith.constant 0 : index
    %c0_278 = arith.constant 0 : index
    %318 = tpu.strided_load %arg5[%c0_277, %c0_278] {strides = array<i32: 2, 1>} : memref<32x128xf32, #tpu.memory_space<vmem>>, vector<8x128xf32>
    %c1_279 = arith.constant 1 : index
    %c0_280 = arith.constant 0 : index
    %319 = tpu.strided_load %arg5[%c1_279, %c0_280] {strides = array<i32: 2, 1>} : memref<32x128xf32, #tpu.memory_space<vmem>>, vector<8x128xf32>
    %320 = vector.extract_strided_slice %318 {offsets = [0, 0], sizes = [8, 100], strides = [1, 1]} : vector<8x128xf32> to vector<8x100xf32>
    %321 = vector.extract_strided_slice %319 {offsets = [0, 0], sizes = [8, 100], strides = [1, 1]} : vector<8x128xf32> to vector<8x100xf32>
    %322 = arith.maximumf %320, %321 : vector<8x100xf32>
    %c1_281 = arith.constant 1 : index
    %c0_282 = arith.constant 0 : index
    %323 = vector.load %arg5[%c1_281, %c0_282] : memref<32x128xf32, #tpu.memory_space<vmem>>, vector<8x100xf32>
    tpu.vector_store %arg5[%c1_281, %c0_282], %322 {strides = array<i32>} : memref<32x128xf32, #tpu.memory_space<vmem>>, vector<8x100xf32>,
    %cst_283 = arith.constant 0.000000e+00 : f32
    %324 = vector.broadcast %cst_283 : f32 to vector<1x100xf32>
    %c0_284 = arith.constant 0 : index
    %c0_285 = arith.constant 0 : index
    %325 = vector.load %arg5[%c0_284, %c0_285] : memref<32x128xf32, #tpu.memory_space<vmem>>, vector<1x100xf32>
    tpu.vector_store %arg5[%c0_284, %c0_285], %324 {strides = array<i32>} : memref<32x128xf32, #tpu.memory_space<vmem>>, vector<1x100xf32>,
    %c9_286 = arith.constant 9 : index
    %c0_287 = arith.constant 0 : index
    %326 = vector.load %arg5[%c9_286, %c0_287] : memref<32x128xf32, #tpu.memory_space<vmem>>, vector<1x100xf32>
    tpu.vector_store %arg5[%c9_286, %c0_287], %324 {strides = array<i32>} : memref<32x128xf32, #tpu.memory_space<vmem>>, vector<1x100xf32>,
    %c0_288 = arith.constant 0 : index
    %c0_289 = arith.constant 0 : index
    %327 = vector.load %arg5[%c0_288, %c0_289] : memref<32x128xf32, #tpu.memory_space<vmem>>, vector<8x100xf32>
    %c1_290 = arith.constant 1 : index
    %c0_291 = arith.constant 0 : index
    %328 = vector.load %arg5[%c1_290, %c0_291] : memref<32x128xf32, #tpu.memory_space<vmem>>, vector<8x100xf32>
    %c2_292 = arith.constant 2 : index
    %c0_293 = arith.constant 0 : index
    %329 = vector.load %arg5[%c2_292, %c0_293] : memref<32x128xf32, #tpu.memory_space<vmem>>, vector<8x100xf32>
    %330 = tpu.concatenate %327, %328, %329 in 1 : vector<8x100xf32>, vector<8x100xf32>, vector<8x100xf32> -> vector<8x300xf32>
    %c3520 = arith.constant 3520 : index
    %c0_294 = arith.constant 0 : index
    %331 = vector.load %arg2[%c3520, %c0_294] : memref<4480x256xbf16, #tpu.memory_space<vmem>>, vector<300x100xbf16>
    %332 = arith.truncf %330 : vector<8x300xf32> to vector<8x300xbf16>
    %cst_295 = arith.constant dense<0.000000e+00> : vector<8x100xf32>
    %333 = tpu.matmul %332, %331, %cst_295 {dimension_numbers = #tpu.dot_dimension_numbers<[1], [0], [0], [1], [0, 0, 1, 1], [], []>} : vector<8x300xbf16>, vector<300x100xbf16>, vector<8x100xf32> -> vector<8x100xf32>
    %c26 = arith.constant 26 : index
    %c0_296 = arith.constant 0 : index
    %334 = vector.load %arg3[%c26, %c0_296] : memref<40x256xf32, #tpu.memory_space<vmem>>, vector<1x100xf32>
    %335 = vector.broadcast %334 : vector<1x100xf32> to vector<8x100xf32>
    %336 = arith.mulf %333, %335 : vector<8x100xf32>
    %c27 = arith.constant 27 : index
    %c0_297 = arith.constant 0 : index
    %337 = vector.load %arg3[%c27, %c0_297] : memref<40x256xf32, #tpu.memory_space<vmem>>, vector<1x100xf32>
    %338 = vector.broadcast %337 : vector<1x100xf32> to vector<8x100xf32>
    %339 = arith.addf %336, %338 : vector<8x100xf32>
    %cst_298 = arith.constant 0.000000e+00 : f32
    %340 = vector.broadcast %cst_298 : f32 to vector<8x100xf32>
    %341 = arith.maximumf %339, %340 : vector<8x100xf32>
    %c0_299 = arith.constant 0 : index
    %c0_300 = arith.constant 0 : index
    %342 = vector.load %arg5[%c0_299, %c0_300] : memref<32x128xf32, #tpu.memory_space<vmem>>, vector<8x100xf32>
    tpu.vector_store %arg5[%c0_299, %c0_300], %341 {strides = array<i32>} : memref<32x128xf32, #tpu.memory_space<vmem>>, vector<8x100xf32>,
    %c0_301 = arith.constant 0 : index
    %c0_302 = arith.constant 0 : index
    %343 = tpu.strided_load %arg5[%c0_301, %c0_302] {strides = array<i32: 2, 1>} : memref<32x128xf32, #tpu.memory_space<vmem>>, vector<4x128xf32>
    %c1_303 = arith.constant 1 : index
    %c0_304 = arith.constant 0 : index
    %344 = tpu.strided_load %arg5[%c1_303, %c0_304] {strides = array<i32: 2, 1>} : memref<32x128xf32, #tpu.memory_space<vmem>>, vector<4x128xf32>
    %345 = vector.extract_strided_slice %343 {offsets = [0, 0], sizes = [4, 100], strides = [1, 1]} : vector<4x128xf32> to vector<4x100xf32>
    %346 = vector.extract_strided_slice %344 {offsets = [0, 0], sizes = [4, 100], strides = [1, 1]} : vector<4x128xf32> to vector<4x100xf32>
    %347 = arith.maximumf %345, %346 : vector<4x100xf32>
    %c0_305 = arith.constant 0 : index
    %c0_306 = arith.constant 0 : index
    %348 = vector.load %arg5[%c0_305, %c0_306] : memref<32x128xf32, #tpu.memory_space<vmem>>, vector<4x100xf32>
    tpu.vector_store %arg5[%c0_305, %c0_306], %347 {strides = array<i32>} : memref<32x128xf32, #tpu.memory_space<vmem>>, vector<4x100xf32>,
    %c0_307 = arith.constant 0 : index
    %c0_308 = arith.constant 0 : index
    %349 = vector.load %arg5[%c0_307, %c0_308] : memref<32x128xf32, #tpu.memory_space<vmem>>, vector<1x100xf32>
    %c1_309 = arith.constant 1 : index
    %c0_310 = arith.constant 0 : index
    %350 = vector.load %arg5[%c1_309, %c0_310] : memref<32x128xf32, #tpu.memory_space<vmem>>, vector<1x100xf32>
    %c2_311 = arith.constant 2 : index
    %c0_312 = arith.constant 0 : index
    %351 = vector.load %arg5[%c2_311, %c0_312] : memref<32x128xf32, #tpu.memory_space<vmem>>, vector<1x100xf32>
    %c3_313 = arith.constant 3 : index
    %c0_314 = arith.constant 0 : index
    %352 = vector.load %arg5[%c3_313, %c0_314] : memref<32x128xf32, #tpu.memory_space<vmem>>, vector<1x100xf32>
    %353 = tpu.concatenate %349, %350, %351, %352 in 1 : vector<1x100xf32>, vector<1x100xf32>, vector<1x100xf32>, vector<1x100xf32> -> vector<1x400xf32>
    %c3824 = arith.constant 3824 : index
    %c0_315 = arith.constant 0 : index
    %354 = vector.load %arg2[%c3824, %c0_315] : memref<4480x256xbf16, #tpu.memory_space<vmem>>, vector<400x256xbf16>
    %355 = arith.truncf %353 : vector<1x400xf32> to vector<1x400xbf16>
    %cst_316 = arith.constant dense<0.000000e+00> : vector<1x256xf32>
    %356 = tpu.matmul %355, %354, %cst_316 {dimension_numbers = #tpu.dot_dimension_numbers<[1], [0], [0], [1], [0, 0, 1, 1], [], []>} : vector<1x400xbf16>, vector<400x256xbf16>, vector<1x256xf32> -> vector<1x256xf32>
    %c28 = arith.constant 28 : index
    %c0_317 = arith.constant 0 : index
    %357 = vector.load %arg3[%c28, %c0_317] : memref<40x256xf32, #tpu.memory_space<vmem>>, vector<1x256xf32>
    %358 = arith.mulf %356, %357 : vector<1x256xf32>
    %c29 = arith.constant 29 : index
    %c0_318 = arith.constant 0 : index
    %359 = vector.load %arg3[%c29, %c0_318] : memref<40x256xf32, #tpu.memory_space<vmem>>, vector<1x256xf32>
    %360 = arith.addf %358, %359 : vector<1x256xf32>
    %cst_319 = arith.constant 0.000000e+00 : f32
    %361 = vector.broadcast %cst_319 : f32 to vector<1x256xf32>
    %362 = arith.maximumf %360, %361 : vector<1x256xf32>
    %c4224 = arith.constant 4224 : index
    %c0_320 = arith.constant 0 : index
    %363 = vector.load %arg2[%c4224, %c0_320] : memref<4480x256xbf16, #tpu.memory_space<vmem>>, vector<256x128xbf16>
    %364 = arith.truncf %362 : vector<1x256xf32> to vector<1x256xbf16>
    %cst_321 = arith.constant dense<0.000000e+00> : vector<1x128xf32>
    %365 = tpu.matmul %364, %363, %cst_321 {dimension_numbers = #tpu.dot_dimension_numbers<[1], [0], [0], [1], [0, 0, 1, 1], [], []>} : vector<1x256xbf16>, vector<256x128xbf16>, vector<1x128xf32> -> vector<1x128xf32>
    %c30 = arith.constant 30 : index
    %c0_322 = arith.constant 0 : index
    %366 = vector.load %arg3[%c30, %c0_322] : memref<40x256xf32, #tpu.memory_space<vmem>>, vector<1x128xf32>
    %367 = arith.mulf %365, %366 : vector<1x128xf32>
    %c31 = arith.constant 31 : index
    %c0_323 = arith.constant 0 : index
    %368 = vector.load %arg3[%c31, %c0_323] : memref<40x256xf32, #tpu.memory_space<vmem>>, vector<1x128xf32>
    %369 = arith.addf %367, %368 : vector<1x128xf32>
    %cst_324 = arith.constant 0.000000e+00 : f32
    %370 = vector.broadcast %cst_324 : f32 to vector<1x128xf32>
    %371 = arith.maximumf %369, %370 : vector<1x128xf32>
    %c32_325 = arith.constant 32 : index
    %c0_326 = arith.constant 0 : index
    %372 = vector.load %arg3[%c32_325, %c0_326] : memref<40x256xf32, #tpu.memory_space<vmem>>, vector<1x128xf32>
    %c33 = arith.constant 33 : index
    %c0_327 = arith.constant 0 : index
    %373 = vector.load %arg3[%c33, %c0_327] : memref<40x256xf32, #tpu.memory_space<vmem>>, vector<1x1xf32>
    %374 = arith.mulf %371, %372 : vector<1x128xf32>
    %cst_328 = arith.constant dense<0.000000e+00> : vector<1xf32>
    %375 = vector.multi_reduction <add>, %374, %cst_328 [1] : vector<1x128xf32> to vector<1xf32>
    %376 = vector.shape_cast %375 : vector<1xf32> to vector<1x1xf32>
    %377 = arith.addf %376, %373 : vector<1x1xf32>
    %378 = vector.shape_cast %377 : vector<1x1xf32> to vector<1x1xf32>
    %379 = vector.broadcast %378 : vector<1x1xf32> to vector<8x128xf32>
    %c0_329 = arith.constant 0 : index
    %c0_330 = arith.constant 0 : index
    %c0_331 = arith.constant 0 : index
    %380 = vector.load %arg4[%c0_329, %c0_330, %c0_331] : memref<1x8x128xf32, #tpu.memory_space<vmem>>, vector<1x8x128xf32>
    %381 = vector.shape_cast %380 : vector<1x8x128xf32> to vector<8x128xf32>
    %382 = vector.shape_cast %379 : vector<8x128xf32> to vector<1x8x128xf32>
    tpu.vector_store %arg4[%c0_329, %c0_330, %c0_331], %382 {strides = array<i32>} : memref<1x8x128xf32, #tpu.memory_space<vmem>>, vector<1x8x128xf32>,
    return
  }
  func.func @transform_0(%arg0: i32) -> (i32, i32, i32) {
    %c0_i32 = arith.constant 0 : i32
    %c0_i32_0 = arith.constant 0 : i32
    %c0_i32_1 = arith.constant 0 : i32
    return %arg0, %c0_i32, %c0_i32_0 : i32, i32, i32
  }
  func.func @transform_1(%arg0: i32) -> (i32, i32) {
    %c0_i32 = arith.constant 0 : i32
    %c0_i32_0 = arith.constant 0 : i32
    %c0_i32_1 = arith.constant 0 : i32
    return %c0_i32, %c0_i32_0 : i32, i32
  }
  func.func @transform_2(%arg0: i32) -> (i32, i32) {
    %c0_i32 = arith.constant 0 : i32
    %c0_i32_0 = arith.constant 0 : i32
    %c0_i32_1 = arith.constant 0 : i32
    return %c0_i32, %c0_i32_0 : i32, i32
  }
  func.func @transform_3(%arg0: i32) -> (i32, i32, i32) {
    %c0_i32 = arith.constant 0 : i32
    %c0_i32_0 = arith.constant 0 : i32
    %c0_i32_1 = arith.constant 0 : i32
    return %arg0, %c0_i32, %c0_i32_0 : i32, i32, i32
  }
}

</mosaic_0001>

<bundles_post_ra>
// kernel: fwd.1
= control target key start
LH: loop header
LB: loop body
LE: loop exit
PB: predicated region body
PF: predicated region fallthrough
CT: control target
= control target key end

     0   :  { %8 = vsyncpa [#allocation4], 0  ;;  %s5800_s0 = inlined_call_operand.vmem [shape: f32[2,16,4], index: 0, kind: input, shape index: {}]   ;;  %s5801_s1 = inlined_call_operand.hbm [shape: bf16[4480,256], index: 1, kind: input, shape index: {}]   ;;  %s5802_s2 = inlined_call_operand.hbm [shape: f32[40,256], index: 2, kind: input, shape index: {}]   ;;  %s5803_s3 = inlined_call_operand.vmem [shape: f32[2,8,128], index: 3, kind: output, shape index: {}]  }
   0x1   :  { %9 = vsyncpa [#allocation6], 0  ;;  %s5623_s12 = smov 0  }
   0x2 LB: > { %s125_s15 = sshll.u32 %s5801_s1, 4  ;;  %s3828_s16 = sadd.s32 4294967295, %s5582_s12   ;;  %s5582_s12 = sphi %s5623_s12, %s15_s12   ;;  %s126_s15 = int_to_ptr.hbm [resolvable:$true] %s125_s15 }
   0x3   : > { %p3830_p0 = scmp.ge.s32.totalorder %s5582_s12, 1  ;;  %p114_p1 = scmp.lt.s32.totalorder %s5582_s12, 3 }
   0x4   : > { %p5388_p2 = scmp.eq.s32.totalorder %s3828_s16, 0  ;;  %s5584_s18 = smov [#allocation3]  }
   0x5   : > { %p5634_p3 = pnand %p3830_p0, %p114_p1  ;;  %s127_s19 = sshll.u32 %s5584_s18, 4  ;;  %s128_s19 = int_to_ptr.vmem [resolvable:$true] %s127_s19 }
   0x6   : > { %s139_s22 = sshll.u32 %s5802_s2, 4  ;;  %s5585_s23 = smov [#allocation5]   ;;  %s140_s22 = int_to_ptr.hbm [resolvable:$true] %s139_s22 }
   0x7   : > { %p5381_p4 = pneg %p5634_p3  ;;  %s141_s24 = sshll.u32 %s5585_s23, 4  ;;  %s142_s24 = int_to_ptr.vmem [resolvable:$true] %s141_s24 }
   0x8   : > { %s5586_s25 = smov 128   ;;  %s5587_s26 = smov 8  }
   0x9   : > { %p5382_p5 = pnand %p5388_p2, %p5381_p4  ;;  %s5588_s27 = smov 256  }
   0xa   : > { %s5589_s28 = smov 16   ;;  %165 = sbr.rel (%p5634_p3) target bundleno = 3885 (0xf2d), region = 32 }
   0xb   : > { %5384 = dma.hbm_to_vmem [thread:$0]  (!%p5382_p5), %s126_s15, 71680, %s128_s19, [#allocation4], %s5586_s25, %s5586_s25, %s5587_s26  }
   0xc   : > { %5387 = dma.hbm_to_vmem [thread:$0]  (!%p5382_p5), %s140_s22, 1280, %s142_s24, [#allocation6], %s5588_s27, %s5588_s27, %s5589_s28  }
   0xf   : > { %5573 = dma.done.wait (%p5388_p2), [#allocation4], 71680  }
  0x10   : > { %5575 = vsyncadd (%p5388_p2), [#allocation4], 4294895616 }
  0x11   : > { %5577 = dma.done.wait (%p5388_p2), [#allocation6], 1280  }
  0x12   : > { %5579 = vsyncadd (%p5388_p2), [#allocation6], 4294966016  ;;  %p194_p6 = scmp.lt.s32.totalorder %s3828_s16, 1  ;;  %vm206_vm0 = vcmask 31744   ;;  %vm209_vm1 = vcmask 27651   ;;  %vm211_vm2 = vcmask 30726  }
  0x13   : > { %vm213_vm3 = vcmask 26626   ;;  %vm215_vm4 = vcmask 29701   ;;  %vm217_vm5 = vcmask 25601   ;;  %vm219_vm6 = vcmask 28676   ;;  %s5590_s6 = smov 12   ;;  %s5592_s7 = smov 20  }
  0x14   : > { %s5808_s16 = smov (!%p194_p6, %s3828_s16), 1  ;;  %vm349_vm7 = vcmask 253952   ;;  %v5591_v14 = vmov 0.0   ;;  %s5593_s8 = smov 4   ;;  %v3846_v22 = vld [vmem:[#allocation3 + $0x10] sm:$0xf] }
  0x15   : > { %s5067_s29 = sshll.u32 %s5808_s16, 4  ;;  %s5594_s9 = smov 16   ;;  %v5069_v23 = vld [vmem:[#allocation3 + $0x14] sm:$0x30]  ;;  %vm320_vm8 = vcmask 1045504   ;;  %vm285_vm9 = vcmask 64512  }
  0x16   : > { %s198_s5 = scalar_lea.vmem %s5800_s0, %s5067_s29  ;;  %s5595_s10 = smov 24   ;;  %v3847_v24 = vor.u32 %v5069_v23, %v3846_v22  ;;  %v3842_v26 = vld [vmem:[#allocation3] sm:$0xf]  ;;  %v5068_v27 = vld [vmem:[#allocation3 + $0x4] sm:$0xf0]  ;;  %vm288_vm10 = vcmask 97280  }
  0x17   : > { %v204_v0 = vld [vmem:[%s198_s5] sm:$0xff]  ;;  %v205_v1 = vld [vmem:[%s198_s5 + $0x8] sm:$0xff]  ;;  %s5596_s11 = smov 8   ;;  %v3843_v28 = vor.u32 %v5068_v27, %v3842_v26  ;;  %vm291_vm11 = vcmask 130048   ;;  %vm294_vm12 = vcmask 162816   ;;  %vm297_vm13 = vcmask 195584  }
  0x18   : > { %207 = vst.msk [vmem:[#allocation2 + $0x3] sm:$0xff] %vm206_vm0, %v204_v0  ;;  %v322_v25 = vsel %vm320_vm8, %v3847_v24, 0  ;;  %vm5804_vm14 = vcmask 228352   ;;  %v3871_v61 = vld [vmem:[#allocation3 + $0x70] sm:$0xf]  ;;  %vm346_vm15 = vcmask 261120  }
  0x19   : > { %208 = vst.msk [vmem:[#allocation2 + $0xb] sm:$0xff] %vm206_vm0, %v205_v1  ;;  %330 = vmatpush.bf16.msra.mxu0 %v322_v25  ;;  %v5075_v62 = vld [vmem:[#allocation3 + $0x74] sm:$0xf0]  ;;  %v3867_v63 = vld [vmem:[#allocation3 + $0x60] sm:$0xf]  ;;  %s5597_s13 = smov 64  }
  0x1a   : > { %210 = vst.msk [vmem:[#allocation2 - $0x3] sm:$0x8] %vm209_vm1, %v204_v0  ;;  %s5598_s14 = smov 32   ;;  %v3851_v25 = vld [vmem:[#allocation3 + $0x20] sm:$0xf]  ;;  %vm366_vm1 = vcmask 523264  }
  0x1b   : > { %212 = vst.msk [vmem:[#allocation2 + $0xd] sm:$0x40] %vm211_vm2, %v205_v1  ;;  %v5070_v26 = vld [vmem:[#allocation3 + $0x24] sm:$0xf0]  ;;  %vm417_vm2 = vcmask 785408   ;;  %s5599_s15 = smov 96  }
  0x1c   : > { %214 = vst.msk [vmem:[#allocation2 - $0x1] sm:$0x4] %vm213_vm3, %v204_v0  ;;  %v3852_v27 = vor.u32 %v5070_v26, %v3851_v25  ;;  %vm440_vm3 = vcmask 516096   ;;  %v5103_v25 = vld [vmem:[#allocation3 + $0x234] sm:$0xf0]  ;;  %s5600_s17 = smov 72  }
  0x1d   : > { %216 = vst.msk [vmem:[#allocation2 + $0xf] sm:$0x20] %vm215_vm4, %v205_v1  ;;  %331 = vmatpush.bf16.msra.mxu0 %v3843_v28  ;;  %v4017_v26 = vld [vmem:[#allocation3 + $0x2b0] sm:$0xf]  ;;  %vm2304_vm4 = vcmask 1041408   ;;  %s5601_s18 = smov 100  }
  0x1e   : > { %218 = vst.msk [vmem:[#allocation2 + $0x1] sm:$0x2] %vm217_vm5, %v204_v0  ;;  %v3872_v0 = vor.u32 %v5075_v62, %v3871_v61  ;;  %v436_v62 = vld [vmem:[#allocation5 + $0x3] ss:$0 sm:$0xff]  ;;  %vm2497_vm5 = vcmask 1043456   ;;  %s5602_s19 = smov 44  }
  0x1f   : > { %220 = vst.msk [vmem:[#allocation2 + $0x11] sm:$0x10] %vm219_vm6, %v205_v1  ;;  %v227_v2 = vld [vmem:[#allocation2 + $0x3] sm:$0xff]  ;;  %vm2542_vm6 = vcmask 257027   ;;  %s3839_s20 = sshll.u32 %s5808_s16, 3 }
  0x20   : > { %v228_v3 = vld [vmem:[#allocation2 + $0xb] sm:$0xff]  ;;  %423 = vmatpush.bf16.msra.mxu1 %v3872_v0  ;;  %s202_s23 = scalar_lea.vmem %s5803_s3, %s3839_s20 }
  0x21   : > { %v231_v4 = vld [vmem:[#allocation2 + $0x5] sm:$0xff]  ;;  %v5429_v5 = vpack.i.bf16 %v228_v3, %v227_v2  ;;  %v3863_v3 = vld [vmem:[#allocation3 + $0x50] sm:$0xf] }
  0x22   : > { %v224_v6 = vld [vmem:[#allocation2 + $0x9] sm:$0xff] }
  0x23   : > { %v229_v7 = vld [vmem:[#allocation2 + $0x4] sm:$0xff]  ;;  %5430 = vrot.lane.b32.xlu1 %v5429_v5, %s5590_s6  ;;  %v230_v11 = vld [vmem:[#allocation2 + $0xc] sm:$0xff]  ;;  %v338_v5 = vld [vmem:[#allocation5] ss:$0 sm:$0xff] }
  0x24   : > { %v232_v8 = vld [vmem:[#allocation2 + $0xd] sm:$0xff]  ;;  %v5434_v18 = vpack.i.bf16 %v230_v11, %v229_v7  ;;  %v5074_v1 = vld [vmem:[#allocation3 + $0x64] sm:$0xf0]  ;;  %v3859_v7 = vld [vmem:[#allocation3 + $0x40] sm:$0xf] }
  0x25   : > { %v223_v9 = vld [vmem:[#allocation2 + $0x1] sm:$0xff]  ;;  %v5439_v12 = vpack.i.bf16 %v232_v8, %v231_v4  ;;  %v226_v15 = vld [vmem:[#allocation2 + $0xa] sm:$0xff]  ;;  %v3868_v2 = vor.u32 %v5074_v1, %v3867_v63  ;;  %v5073_v4 = vld [vmem:[#allocation3 + $0x54] sm:$0xf0] }
  0x26   : > { %v221_v10 = vld [vmem:[#allocation2] sm:$0xff]  ;;  %v5419_v13 = vpack.i.bf16 %v224_v6, %v223_v9  ;;  %v234_v16 = vld [vmem:[#allocation2 + $0xe] sm:$0xff]  ;;  %v3864_v6 = vor.u32 %v5073_v4, %v3863_v3  ;;  %v5072_v8 = vld [vmem:[#allocation3 + $0x44] sm:$0xf0] }
  0x27   : > { %350 = vst.msk [vmem:[#allocation2] sm:$0x1] %vm349_vm7, %v5591_v14  ;;  %5440 = vrot.lane.b32.xlu2 %v5439_v12, %s5592_s7  ;;  %v233_v17 = vld [vmem:[#allocation2 + $0x6] sm:$0xff]  ;;  %424 = vmatpush.bf16.msra.mxu1 %v3868_v2  ;;  %v3860_v12 = vor.u32 %v5072_v8, %v3859_v7  ;;  %v3884_v1 = vld [vmem:[#allocation3 + $0xa0] sm:$0xf] }
  0x28   : > { %351 = vst.msk [vmem:[#allocation2 + $0x11] sm:$0x1] %vm349_vm7, %v5591_v14  ;;  %5420 = vrot.lane.b32.xlu0 %v5419_v13, %s5593_s8  ;;  %v225_v19 = vld [vmem:[#allocation2 + $0x2] sm:$0xff]  ;;  %v5444_v20 = vpack.i.bf16 %v234_v16, %v233_v17  ;;  %v5071_v16 = vld [vmem:[#allocation3 + $0x34] sm:$0xf0]  ;;  %vm2550_vm7 = vcmask 254977  }
  0x29   : > { %v5424_v21 = vpack.i.bf16 %v226_v15, %v225_v19  ;;  %v222_v35 = vld [vmem:[#allocation2 + $0x8] sm:$0xff]  ;;  %v3855_v15 = vld [vmem:[#allocation3 + $0x30] sm:$0xf]  ;;  %v5077_v7 = vld [vmem:[#allocation3 + $0x94] sm:$0xf0] }
  0x2a   : > { %v5078_v2 = vld [vmem:[#allocation3 + $0xa4] sm:$0xf0] }
  0x2b   : > { %5435 = vrot.lane.b32.xlu1 %v5434_v18, %s5594_s9  ;;  %425 = vmatpush.bf16.msra.mxu1 %v3864_v6  ;;  %v3856_v18 = vor.u32 %v5071_v16, %v3855_v15  ;;  %v3880_v6 = vld [vmem:[#allocation3 + $0x90] sm:$0xf]  ;;  %v5076_v15 = vld [vmem:[#allocation3 + $0x84] sm:$0xf0] }
  0x2f   : > { %5445 = vrot.lane.b32.xlu2 %v5444_v20, %s5595_s10  ;;  %426 = vmatpush.bf16.msra.mxu1 %v3860_v12 }
  0x30   : > { %5425 = vrot.lane.b32.xlu0 %v5424_v21, %s5596_s11 }
  0x33   : > { %427 = vmatpush.bf16.msra.mxu1 %v3856_v18 }
  0x37   : > { %428 = vmatpush.bf16.msra.mxu1 %v3852_v27  ;;  %v5111_v27 = vld [vmem:[#allocation3 + $0x2b4] sm:$0xf0] }
  0x81   : > { %v5441_v30 = vpop.permute.xlu2 %5440 }
  0x82   : > { %v5443_v36 = vunpack.i.h.bf16 %v5441_v30  ;;  %v5442_v51 = vunpack.i.l.bf16 %v5441_v30 }
  0x89   : > { %v5446_v38 = vpop.permute.xlu2 %5445 }
  0x8a   : > { %v5448_v49 = vunpack.i.h.bf16 %v5446_v38  ;;  %v5447_v50 = vunpack.i.l.bf16 %v5446_v38  ;;  %v5086_v38 = vld [vmem:[#allocation3 + $0x124] sm:$0xf0] }
  0x95   : > { %v5431_v29 = vpop.permute.xlu1 %5430 }
  0x96   : > { %v5433_v45 = vunpack.i.h.bf16 %v5431_v29  ;;  %v5432_v46 = vunpack.i.l.bf16 %v5431_v29 }
  0x9a   : > { %v5421_v31 = vpop.permute.xlu0 %5420 }
  0x9b   : > { %v5423_v32 = vunpack.i.h.bf16 %v5421_v31  ;;  %v5422_v33 = vunpack.i.l.bf16 %v5421_v31 }
  0x9d   : > { %v5436_v34 = vpop.permute.xlu1 %5435  ;;  %v283_v43 = vsel %vm206_vm0, %v221_v10, %v5422_v33  ;;  %v284_v44 = vsel %vm206_vm0, %v222_v35, %v5423_v32  ;;  %v341_v10 = vld [vmem:[#allocation5 + $0x1] ss:$0 sm:$0xff]  ;;  %v5087_v35 = vld [vmem:[#allocation3 + $0x134] sm:$0xf0] }
  0x9e   : > { %v5438_v41 = vunpack.i.h.bf16 %v5436_v34  ;;  %v5437_v42 = vunpack.i.l.bf16 %v5436_v34  ;;  %v3920_v34 = vld [vmem:[#allocation3 + $0x130] sm:$0xf] }
  0xa2   : > { %v5426_v37 = vpop.permute.xlu0 %5425 }
  0xa3   : > { %v5428_v39 = vunpack.i.h.bf16 %v5426_v37  ;;  %v5427_v40 = vunpack.i.l.bf16 %v5426_v37  ;;  %v3916_v37 = vld [vmem:[#allocation3 + $0x120] sm:$0xf] }
  0xa5   : > { %v286_v47 = vsel %vm285_vm9, %v283_v43, %v5427_v40  ;;  %v287_v48 = vsel %vm285_vm9, %v284_v44, %v5428_v39  ;;  %v3917_v39 = vor.u32 %v5086_v38, %v3916_v37  ;;  %v3912_v40 = vld [vmem:[#allocation3 + $0x110] sm:$0xf]  ;;  %v3908_v43 = vld [vmem:[#allocation3 + $0x100] sm:$0xf]  ;;  %v5084_v44 = vld [vmem:[#allocation3 + $0x104] sm:$0xf0] }
  0xa6   : > { %v289_v52 = vsel %vm288_vm10, %v286_v47, %v5432_v46  ;;  %v290_v53 = vsel %vm288_vm10, %v287_v48, %v5433_v45  ;;  %v3909_v45 = vor.u32 %v5084_v44, %v3908_v43  ;;  %v3904_v46 = vld [vmem:[#allocation3 + $0xf0] sm:$0xf]  ;;  %v5083_v47 = vld [vmem:[#allocation3 + $0xf4] sm:$0xf0]  ;;  %v3900_v48 = vld [vmem:[#allocation3 + $0xe0] sm:$0xf] }
  0xa7   : > { %v292_v54 = vsel %vm291_vm11, %v289_v52, %v5437_v42  ;;  %v293_v55 = vsel %vm291_vm11, %v290_v53, %v5438_v41  ;;  %v5085_v41 = vld [vmem:[#allocation3 + $0x114] sm:$0xf0]  ;;  %v3896_v52 = vld [vmem:[#allocation3 + $0xd0] sm:$0xf] }
  0xa8   : > { %v295_v56 = vsel %vm294_vm12, %v292_v54, %v5442_v51  ;;  %v296_v57 = vsel %vm294_vm12, %v293_v55, %v5443_v36  ;;  %v3921_v36 = vor.u32 %v5087_v35, %v3920_v34  ;;  %v3913_v42 = vor.u32 %v5085_v41, %v3912_v40  ;;  %v5081_v53 = vld [vmem:[#allocation3 + $0xd4] sm:$0xf0]  ;;  %v3892_v55 = vld [vmem:[#allocation3 + $0xc0] sm:$0xf]  ;;  %v5102_v34 = vld [vmem:[#allocation3 + $0x224] sm:$0xf0] }
  0xa9   : > { %v298_v58 = vsel %vm297_vm13, %v295_v56, %v5447_v50  ;;  %v299_v59 = vsel %vm297_vm13, %v296_v57, %v5448_v49  ;;  %v3905_v49 = vor.u32 %v5083_v47, %v3904_v46  ;;  %v5082_v50 = vld [vmem:[#allocation3 + $0xe4] sm:$0xf0]  ;;  %v3897_v54 = vor.u32 %v5081_v53, %v3896_v52  ;;  %v4013_v35 = vld [vmem:[#allocation3 + $0x2a0] sm:$0xf]  ;;  %v5093_v40 = vld [vmem:[#allocation3 + $0x194] sm:$0xf0] }
  0xaa   : > { %v304_v60 = vpack.c.bf16 %v299_v59, %v298_v58  ;;  %569 = vmatpush.bf16.msra.mxu3 %v3921_v36  ;;  %v3901_v51 = vor.u32 %v5082_v50, %v3900_v48  ;;  %v5080_v56 = vld [vmem:[#allocation3 + $0xc4] sm:$0xf0]  ;;  %v434_v58 = vld [vmem:[#allocation5 + $0x2] ss:$0 sm:$0xff]  ;;  %v3888_v59 = vld [vmem:[#allocation3 + $0xb0] sm:$0xf] }
  0xab   : > { %552 = vmatpush.bf16.msra.mxu2 %v3905_v49  ;;  %v3893_v57 = vor.u32 %v5080_v56, %v3892_v55  ;;  %v5110_v36 = vld [vmem:[#allocation3 + $0x2a4] sm:$0xf0]  ;;  %v3977_v41 = vld [vmem:[#allocation3 + $0x210] sm:$0xf]  ;;  %v5109_v44 = vld [vmem:[#allocation3 + $0x294] sm:$0xf0] }
  0xac   : > { %3848 = vmatmul.msk.bf16.vlgmr.msra.gmra.mxu0 %vm5804_vm14, %v304_v60  ;;  %v5079_v60 = vld [vmem:[#allocation3 + $0xb4] sm:$0xf0]  ;;  %v4014_v38 = vor.u32 %v5110_v36, %v4013_v35  ;;  %v4009_v43 = vld [vmem:[#allocation3 + $0x290] sm:$0xf]  ;;  %v3941_v50 = vld [vmem:[#allocation3 + $0x180] sm:$0xf] }
  0xad   : > { %v3889_v0 = vor.u32 %v5079_v60, %v3888_v59  ;;  %v4010_v47 = vor.u32 %v5109_v44, %v4009_v43  ;;  %v3973_v52 = vld [vmem:[#allocation3 + $0x200] sm:$0xf]  ;;  %v5108_v56 = vld [vmem:[#allocation3 + $0x284] sm:$0xf0]  ;;  %v3937_v59 = vld [vmem:[#allocation3 + $0x170] sm:$0xf] }
  0xae   : > { %570 = vmatpush.bf16.msra.mxu3 %v3917_v39  ;;  %v3945_v39 = vld [vmem:[#allocation3 + $0x190] sm:$0xf]  ;;  %v4005_v55 = vld [vmem:[#allocation3 + $0x280] sm:$0xf]  ;;  %v5091_v60 = vld [vmem:[#allocation3 + $0x174] sm:$0xf0] }
  0xaf   : > { %553 = vmatpush.bf16.msra.mxu2 %v3901_v51  ;;  %v5092_v51 = vld [vmem:[#allocation3 + $0x184] sm:$0xf0]  ;;  %v5127_v36 = vld [vmem:[#allocation3 + $0x3b4] sm:$0xf0]  ;;  %v580_v44 = vld [vmem:[#allocation5 + $0x5] ss:$0 sm:$0xff] }
  0xb0   : > { %v3942_v53 = vor.u32 %v5092_v51, %v3941_v50  ;;  %vm2552_vm14 = vcmask 258052  }
  0xb2   : > { %571 = vmatpush.bf16.msra.mxu3 %v3913_v42  ;;  %v5101_v42 = vld [vmem:[#allocation3 + $0x214] sm:$0xf0] }
  0xb3   : > { %554 = vmatpush.bf16.msra.mxu2 %v3897_v54  ;;  %v3978_v46 = vor.u32 %v5101_v42, %v3977_v41  ;;  %v5100_v54 = vld [vmem:[#allocation3 + $0x204] sm:$0xf0]  ;;  %v578_v42 = vld [vmem:[#allocation5 + $0x4] ss:$0 sm:$0xff] }
  0xb6   : > { %572 = vmatpush.bf16.msra.mxu3 %v3909_v45  ;;  %v3946_v45 = vor.u32 %v5093_v40, %v3945_v39 }
  0xb7   : > { %555 = vmatpush.bf16.msra.mxu2 %v3893_v57  ;;  %v3974_v57 = vor.u32 %v5100_v54, %v3973_v52 }
  0xbb   : > { %556 = vmatpush.bf16.msra.mxu2 %v3889_v0  ;;  %v4001_v0 = vld [vmem:[#allocation3 + $0x270] sm:$0xf] }
 0x129   : > { %v333_v9 = vpop.f32.mrf.mxu0 }
 0x12a   : > { %v339_v11 = vmul.f32 %v338_v5, %v333_v9  ;;  %v3881_v9 = vor.u32 %v5077_v7, %v3880_v6  ;;  %v3965_v6 = vld [vmem:[#allocation3 + $0x1e0] sm:$0xf] }
 0x12c   : > { %v342_v13 = vadd.f32 %v341_v10, %v339_v11 }
 0x12e   : > { %v344_v17 = vmax.f32 %v342_v13, 0.0  ;;  %v3876_v13 = vld [vmem:[#allocation3 + $0x80] sm:$0xf] }
 0x12f   : > { %v3877_v16 = vor.u32 %v5076_v15, %v3876_v13  ;;  %v3929_v13 = vld [vmem:[#allocation3 + $0x150] sm:$0xf]  ;;  %v5089_v15 = vld [vmem:[#allocation3 + $0x154] sm:$0xf0] }
 0x130   : > { %347 = vst.msk [vmem:[#allocation2 + $0x1] sm:$0xff] %vm346_vm15, %v344_v17 }
 0x131   : > { %v335_v19 = vpop.f32.mrf.mxu0 }
 0x132   : > { %v340_v20 = vmul.f32 %v338_v5, %v335_v19  ;;  %v3885_v5 = vor.u32 %v5078_v2, %v3884_v1  ;;  %v5107_v2 = vld [vmem:[#allocation3 + $0x274] sm:$0xf0] }
 0x134   : > { %v343_v21 = vadd.f32 %v341_v10, %v340_v20  ;;  %557 = vmatpush.bf16.msra.mxu2 %v3885_v5  ;;  %v5090_v5 = vld [vmem:[#allocation3 + $0x164] sm:$0xf0] }
 0x136   : > { %v345_v22 = vmax.f32 %v343_v21, 0.0  ;;  %v3953_v21 = vld [vmem:[#allocation3 + $0x1b0] sm:$0xf] }
 0x138   : > { %348 = vst.msk [vmem:[#allocation2 + $0x9] sm:$0xff] %vm346_vm15, %v345_v22  ;;  %558 = vmatpush.bf16.msra.mxu2 %v3881_v9  ;;  %v5095_v22 = vld [vmem:[#allocation3 + $0x1b4] sm:$0xf0]  ;;  %v3997_v9 = vld [vmem:[#allocation3 + $0x260] sm:$0xf] }
 0x13c   : > { %559 = vmatpush.bf16.msra.mxu2 %v3877_v16  ;;  %v3961_v16 = vld [vmem:[#allocation3 + $0x1d0] sm:$0xf] }
 0x13f   : > { %v356_v23 = vld [vmem:[#allocation2 + $0x2] ss:$2 sm:$0xff]  ;;  %v354_v24 = vld [vmem:[#allocation2 + $0x1] ss:$2 sm:$0xff] }
 0x140   : > { %362 = vrot.lane.b32.xlu1 %v356_v23, %s5597_s13  ;;  %358 = vrot.lane.b32.xlu0 %v354_v24, %s5598_s14  ;;  %v352_v28 = vld [vmem:[#allocation2] ss:$2 sm:$0xff]  ;;  %442 = vst.msk [vmem:[#allocation2 + $0x9] sm:$0x1] %vm440_vm3, %v5591_v14  ;;  %v3985_v23 = vld [vmem:[#allocation3 + $0x230] sm:$0xf]  ;;  %v3954_v24 = vor.u32 %v5095_v22, %v3953_v21 }
 0x141   : > { %441 = vst.msk [vmem:[#allocation2] sm:$0x1] %vm440_vm3, %v5591_v14 }
 0x142   : > { %784 = vmatpush.bf16.msrb.mxu0 %v3954_v24  ;;  %v5088_v24 = vld [vmem:[#allocation3 + $0x144] sm:$0xf0] }
 0x1b2   : > { %v363_v29 = vpop.permute.xlu1 %362  ;;  %v359_v30 = vpop.permute.xlu0 %358 }
 0x1b3   : > { %v365_v31 = vsel %vm346_vm15, %v352_v28, %v359_v30  ;;  %v3986_v28 = vor.u32 %v5103_v25, %v3985_v23  ;;  %v3949_v30 = vld [vmem:[#allocation3 + $0x1a0] sm:$0xf] }
 0x1b4   : > { %v367_v32 = vsel %vm366_vm1, %v365_v31, %v363_v29  ;;  %v4018_v29 = vor.u32 %v5111_v27, %v4017_v26  ;;  %v5094_v31 = vld [vmem:[#allocation3 + $0x1a4] sm:$0xf0]  ;;  %v3925_v23 = vld [vmem:[#allocation3 + $0x140] sm:$0xf] }
 0x1b5   : > { %v380_v33 = vpack.c.bf16 %v367_v32, %v367_v32  ;;  %v3981_v32 = vld [vmem:[#allocation3 + $0x220] sm:$0xf]  ;;  %797 = vmatpush.bf16.msrb.mxu3 %v3986_v28  ;;  %v3926_v26 = vor.u32 %v5088_v24, %v3925_v23  ;;  %v5096_v27 = vld [vmem:[#allocation3 + $0x1c4] sm:$0xf0]  ;;  %v5123_v23 = vld [vmem:[#allocation3 + $0x374] sm:$0xf0] }
 0x1b6   : > { %810 = vmatpush.bf16.msrb.mxu1 %v4018_v29  ;;  %v3982_v37 = vor.u32 %v5102_v34, %v3981_v32  ;;  %v3957_v25 = vld [vmem:[#allocation3 + $0x1c0] sm:$0xf]  ;;  %v5104_v29 = vld [vmem:[#allocation3 + $0x244] sm:$0xf0]  ;;  %v4049_v32 = vld [vmem:[#allocation3 + $0x330] sm:$0xf] }
 0x1b7   : > { %3873 = vmatmul.msk.bf16.vlgmr.msra.gmra.mxu1 %vm417_vm2, %v380_v33  ;;  %v3950_v33 = vor.u32 %v5094_v31, %v3949_v30  ;;  %v3989_v28 = vld [vmem:[#allocation3 + $0x240] sm:$0xf]  ;;  %v3958_v30 = vor.u32 %v5096_v27, %v3957_v25  ;;  %v4081_v34 = vld [vmem:[#allocation3 + $0x3b0] sm:$0xf] }
 0x1b8   : > { %v3990_v31 = vor.u32 %v5104_v29, %v3989_v28  ;;  %v4082_v39 = vor.u32 %v5127_v36, %v4081_v34  ;;  %v4097_v24 = vld [vmem:[#allocation3 + $0x3f0] sm:$0xf]  ;;  %v4029_v28 = vld [vmem:[#allocation3 + $0x2e0] sm:$0xf]  ;;  %v5114_v29 = vld [vmem:[#allocation3 + $0x2e4] sm:$0xf0] }
 0x1b9   : > { %785 = vmatpush.bf16.msrb.mxu0 %v3950_v33  ;;  %798 = vmatpush.bf16.msrb.mxu3 %v3982_v37  ;;  %v5119_v33 = vld [vmem:[#allocation3 + $0x334] sm:$0xf0]  ;;  %v4113_v37 = vld [vmem:[#allocation3 + $0x430] sm:$0xf]  ;;  %v5130_v34 = vld [vmem:[#allocation3 + $0x3e4] sm:$0xf0] }
 0x1ba   : > { %811 = vmatpush.bf16.msrb.mxu1 %v4014_v38  ;;  %v4050_v35 = vor.u32 %v5119_v33, %v4049_v32  ;;  %v5135_v38 = vld [vmem:[#allocation3 + $0x434] sm:$0xf0]  ;;  %v5122_v32 = vld [vmem:[#allocation3 + $0x364] sm:$0xf0]  ;;  %v4093_v33 = vld [vmem:[#allocation3 + $0x3e0] sm:$0xf] }
 0x1bb   : > { %v4114_v40 = vor.u32 %v5135_v38, %v4113_v37  ;;  %v4094_v36 = vor.u32 %v5130_v34, %v4093_v33  ;;  %v4025_v37 = vld [vmem:[#allocation3 + $0x2d0] sm:$0xf]  ;;  %v5113_v38 = vld [vmem:[#allocation3 + $0x2d4] sm:$0xf0] }
 0x1bc   : > { %1029 = vmatpush.bf16.msrb.mxu2 %v4050_v35  ;;  %v5149_v34 = vld [vmem:[#allocation3 + $0x514] sm:$0xf0] }
 0x1bd   : > { %786 = vmatpush.bf16.msrb.mxu0 %v3946_v45  ;;  %799 = vmatpush.bf16.msrb.mxu3 %v3978_v46 }
 0x1be   : > { %812 = vmatpush.bf16.msrb.mxu1 %v4010_v47 }
 0x1c1   : > { %787 = vmatpush.bf16.msrb.mxu0 %v3942_v53  ;;  %800 = vmatpush.bf16.msrb.mxu3 %v3974_v57  ;;  %v4077_v57 = vld [vmem:[#allocation3 + $0x3a0] sm:$0xf] }
 0x234   : > { %v430_v61 = vpop.f32.mrf.mxu1 }
 0x235   : > { %v435_v63 = vmul.f32 %v434_v58, %v430_v61  ;;  %v4006_v58 = vor.u32 %v5108_v56, %v4005_v55  ;;  %v3938_v61 = vor.u32 %v5091_v60, %v3937_v59  ;;  %v5118_v56 = vld [vmem:[#allocation3 + $0x324] sm:$0xf0]  ;;  %v4109_v60 = vld [vmem:[#allocation3 + $0x420] sm:$0xf] }
 0x236   : > { %v5126_v59 = vld [vmem:[#allocation3 + $0x3a4] sm:$0xf0] }
 0x237   : > { %v437_v3 = vadd.f32 %v436_v62, %v435_v63  ;;  %813 = vmatpush.bf16.msrb.mxu1 %v4006_v58  ;;  %v3969_v62 = vld [vmem:[#allocation3 + $0x1f0] sm:$0xf]  ;;  %v5099_v63 = vld [vmem:[#allocation3 + $0x1f4] sm:$0xf0]  ;;  %788 = vmatpush.bf16.msrb.mxu0 %v3938_v61  ;;  %v5134_v61 = vld [vmem:[#allocation3 + $0x424] sm:$0xf0] }
 0x238   : > { %v3970_v1 = vor.u32 %v5099_v63, %v3969_v62  ;;  %v4078_v62 = vor.u32 %v5126_v59, %v4077_v57  ;;  %v4110_v63 = vor.u32 %v5134_v61, %v4109_v60  ;;  %v5143_v57 = vld [vmem:[#allocation3 + $0x4b4] sm:$0xf0]  ;;  %v4209_v61 = vld [vmem:[#allocation3 + $0x5b0] sm:$0xf] }
 0x239   : > { %v438_v4 = vmax.f32 %v437_v3, 0.0  ;;  %v4002_v3 = vor.u32 %v5107_v2, %v4001_v0  ;;  %v4041_v0 = vld [vmem:[#allocation3 + $0x310] sm:$0xf]  ;;  %v5151_v60 = vld [vmem:[#allocation3 + $0x534] sm:$0xf0] }
 0x23a   : > { %801 = vmatpush.bf16.msrb.mxu3 %v3970_v1  ;;  %v5117_v1 = vld [vmem:[#allocation3 + $0x314] sm:$0xf0]  ;;  %v4073_v2 = vld [vmem:[#allocation3 + $0x390] sm:$0xf] }
 0x23b   : > { %439 = vst.msk [vmem:[#allocation2 + $0x1] sm:$0xff] %vm366_vm1, %v438_v4  ;;  %v3933_v4 = vld [vmem:[#allocation3 + $0x160] sm:$0xf]  ;;  %814 = vmatpush.bf16.msrb.mxu1 %v4002_v3  ;;  %v4042_v3 = vor.u32 %v5117_v1, %v4041_v0 }
 0x23c   : > { %v432_v8 = vpop.f32.mrf.mxu1  ;;  %v3934_v7 = vor.u32 %v5090_v5, %v3933_v4  ;;  %v5125_v4 = vld [vmem:[#allocation3 + $0x394] sm:$0xf0]  ;;  %v4105_v5 = vld [vmem:[#allocation3 + $0x410] sm:$0xf] }
 0x23d   : > { %v5098_v8 = vld [vmem:[#allocation3 + $0x1e4] sm:$0xf0] }
 0x23e   : > { %789 = vmatpush.bf16.msrb.mxu0 %v3934_v7  ;;  %v4074_v7 = vor.u32 %v5125_v4, %v4073_v2 }
 0x242   : > { %v444_v10 = vld [vmem:[#allocation2 + $0x1] ss:$2 sm:$0xf]  ;;  %v445_v11 = vld [vmem:[#allocation2 + $0x2] ss:$2 sm:$0xf] }
 0x243   : > { %447 = vrot.lane.b32.xlu2 %v444_v10, %s5597_s13  ;;  %v476_v12 = vpack.c.bf16 %v445_v11, %v445_v11  ;;  %2390 = vst.msk [vmem:[#allocation2 + $0x8] sm:$0x1] %vm440_vm3, %v5591_v14  ;;  %v443_v17 = vld [vmem:[#allocation2] ss:$2 sm:$0xf]  ;;  %v3966_v11 = vor.u32 %v5098_v8, %v3965_v6  ;;  %vm2546_vm3 = vcmask 256002  }
 0x244   : > { %v5106_v10 = vld [vmem:[#allocation3 + $0x264] sm:$0xf0]  ;;  %v5133_v6 = vld [vmem:[#allocation3 + $0x414] sm:$0xf0] }
 0x245   : > { %3922 = vmatmul.msk.bf16.vlgmr.msra.gmra.mxu3 %vm366_vm1, %v476_v12  ;;  %v3998_v12 = vor.u32 %v5106_v10, %v3997_v9  ;;  %v4106_v8 = vor.u32 %v5133_v6, %v4105_v5  ;;  %v4037_v9 = vld [vmem:[#allocation3 + $0x300] sm:$0xf]  ;;  %v5116_v10 = vld [vmem:[#allocation3 + $0x304] sm:$0xf0]  ;;  %v823_v5 = vld [vmem:[#allocation5 + $0x6] ss:$0 sm:$0xff] }
 0x246   : > { %802 = vmatpush.bf16.msrb.mxu3 %v3966_v11  ;;  %v4069_v11 = vld [vmem:[#allocation3 + $0x380] sm:$0xf] }
 0x247   : > { %815 = vmatpush.bf16.msrb.mxu1 %v3998_v12  ;;  %v4038_v12 = vor.u32 %v5116_v10, %v4037_v9  ;;  %v825_v9 = vld [vmem:[#allocation5 + $0x7] ss:$0 sm:$0xff] }
 0x29d   : > { %v448_v18 = vpop.permute.xlu2 %447 }
 0x29e   : > { %v450_v19 = vsel %vm366_vm1, %v443_v17, %v448_v18  ;;  %v3930_v17 = vor.u32 %v5089_v15, %v3929_v13  ;;  %v5097_v18 = vld [vmem:[#allocation3 + $0x1d4] sm:$0xf0]  ;;  %v5124_v13 = vld [vmem:[#allocation3 + $0x384] sm:$0xf0]  ;;  %v4101_v15 = vld [vmem:[#allocation3 + $0x400] sm:$0xf] }
 0x29f   : > { %v475_v20 = vpack.c.bf16 %v450_v19, %v450_v19  ;;  %v3993_v19 = vld [vmem:[#allocation3 + $0x250] sm:$0xf]  ;;  %v3962_v21 = vor.u32 %v5097_v18, %v3961_v16  ;;  %v5132_v16 = vld [vmem:[#allocation3 + $0x404] sm:$0xf0] }
 0x2a0   : > { %790 = vmatpush.bf16.msrb.mxu0 %v3930_v17  ;;  %v4070_v17 = vor.u32 %v5124_v13, %v4069_v11  ;;  %v4102_v18 = vor.u32 %v5132_v16, %v4101_v15 }
 0x2a1   : > { %560 = vmatmul.bf16.vlgmr.msra.gmra.mxu2 %v475_v20  ;;  %v5105_v20 = vld [vmem:[#allocation3 + $0x254] sm:$0xf0]  ;;  %803 = vmatpush.bf16.msrb.mxu3 %v3962_v21 }
 0x2a2   : > { %v3994_v22 = vor.u32 %v5105_v20, %v3993_v19  ;;  %v4033_v19 = vld [vmem:[#allocation3 + $0x2f0] sm:$0xf]  ;;  %v5115_v20 = vld [vmem:[#allocation3 + $0x2f4] sm:$0xf0] }
 0x2a3   : > { %v4034_v21 = vor.u32 %v5115_v20, %v4033_v19 }
 0x2a4   : > { %816 = vmatpush.bf16.msrb.mxu1 %v3994_v22  ;;  %791 = vmatpush.bf16.msrb.mxu0 %v3926_v26  ;;  %v4065_v22 = vld [vmem:[#allocation3 + $0x370] sm:$0xf]  ;;  %v5131_v26 = vld [vmem:[#allocation3 + $0x3f4] sm:$0xf0] }
 0x2a5   : > { %804 = vmatpush.bf16.msrb.mxu3 %v3958_v30  ;;  %v4066_v25 = vor.u32 %v5123_v23, %v4065_v22  ;;  %v4098_v27 = vor.u32 %v5131_v26, %v4097_v24  ;;  %v4061_v30 = vld [vmem:[#allocation3 + $0x360] sm:$0xf]  ;;  %v5142_v22 = vld [vmem:[#allocation3 + $0x4a4] sm:$0xf0] }
 0x2a6   : > { %v4062_v35 = vor.u32 %v5122_v32, %v4061_v30  ;;  %v4173_v23 = vld [vmem:[#allocation3 + $0x520] sm:$0xf]  ;;  %v4137_v30 = vld [vmem:[#allocation3 + $0x490] sm:$0xf] }
 0x2a7   : > { %v4205_v26 = vld [vmem:[#allocation3 + $0x5a0] sm:$0xf]  ;;  %v4169_v32 = vld [vmem:[#allocation3 + $0x510] sm:$0xf] }
 0x2a8   : > { %817 = vmatpush.bf16.msrb.mxu1 %v3990_v31  ;;  %1042 = vmatpush.bf16.msra.mxu0 %v4082_v39  ;;  %v4030_v31 = vor.u32 %v5114_v29, %v4029_v28  ;;  %v4057_v39 = vld [vmem:[#allocation3 + $0x350] sm:$0xf] }
 0x2a9   : > { %1055 = vmatpush.bf16.msra.mxu3 %v4114_v40  ;;  %v4026_v40 = vor.u32 %v5113_v38, %v4025_v37  ;;  %v4170_v37 = vor.u32 %v5149_v34, %v4169_v32 }
 0x2ac   : > { %1043 = vmatpush.bf16.msra.mxu0 %v4078_v62  ;;  %v5159_v62 = vld [vmem:[#allocation3 + $0x5b4] sm:$0xf0] }
 0x2ad   : > { %1056 = vmatpush.bf16.msra.mxu3 %v4110_v63  ;;  %v4210_v1 = vor.u32 %v5159_v62, %v4209_v61  ;;  %v5146_v62 = vld [vmem:[#allocation3 + $0x4e4] sm:$0xf0] }
 0x2b0   : > { %1044 = vmatpush.bf16.msra.mxu0 %v4074_v7 }
 0x2b1   : > { %1057 = vmatpush.bf16.msra.mxu3 %v4106_v8 }
 0x2b4   : > { %1045 = vmatpush.bf16.msra.mxu0 %v4070_v17 }
 0x2b5   : > { %1058 = vmatpush.bf16.msra.mxu3 %v4102_v18 }
 0x2b8   : > { %1046 = vmatpush.bf16.msra.mxu0 %v4066_v25  ;;  %v5150_v25 = vld [vmem:[#allocation3 + $0x524] sm:$0xf0] }
 0x2b9   : > { %1059 = vmatpush.bf16.msra.mxu3 %v4098_v27  ;;  %v5158_v27 = vld [vmem:[#allocation3 + $0x5a4] sm:$0xf0]  ;;  %v4174_v28 = vor.u32 %v5150_v25, %v4173_v23  ;;  %v5167_v23 = vld [vmem:[#allocation3 + $0x634] sm:$0xf0] }
 0x2ba   : > { %v4206_v29 = vor.u32 %v5158_v27, %v4205_v26  ;;  %v5175_v26 = vld [vmem:[#allocation3 + $0x6b4] sm:$0xf0]  ;;  %v4305_v27 = vld [vmem:[#allocation3 + $0x730] sm:$0xf] }
 0x2bc   : > { %1047 = vmatpush.bf16.msra.mxu0 %v4062_v35  ;;  %v4201_v35 = vld [vmem:[#allocation3 + $0x590] sm:$0xf] }
 0x2bd   : > { %1060 = vmatpush.bf16.msra.mxu3 %v4094_v36  ;;  %v5157_v36 = vld [vmem:[#allocation3 + $0x594] sm:$0xf0] }
 0x2be   : > { %v4202_v38 = vor.u32 %v5157_v36, %v4201_v35  ;;  %v1068_v35 = vld [vmem:[#allocation5 + $0x10] ss:$0 sm:$0xff] }
 0x2c8   : > { %v5699_v48 = vpop.f32.mrf.mxu3 }
 0x2d0   : > { %v576_v49 = vpop.f32.mrf.mxu3 }
 0x324   : > { %v561_v41 = vpop.f32.mrf.mxu2 }
 0x325   : > { %v575_v43 = vadd.f32 %v5699_v48, %v561_v41  ;;  %v4045_v48 = vld [vmem:[#allocation3 + $0x320] sm:$0xf]  ;;  %v5121_v41 = vld [vmem:[#allocation3 + $0x354] sm:$0xf0] }
 0x326   : > { %v4046_v58 = vor.u32 %v5118_v56, %v4045_v48  ;;  %v4145_v56 = vld [vmem:[#allocation3 + $0x4b0] sm:$0xf] }
 0x327   : > { %v579_v45 = vmul.f32 %v578_v42, %v575_v43  ;;  %v4089_v42 = vld [vmem:[#allocation3 + $0x3d0] sm:$0xf]  ;;  %v5129_v43 = vld [vmem:[#allocation3 + $0x3d4] sm:$0xf0]  ;;  %v4146_v59 = vor.u32 %v5143_v57, %v4145_v56 }
 0x328   : > { %1030 = vmatpush.bf16.msrb.mxu2 %v4046_v58  ;;  %v4177_v58 = vld [vmem:[#allocation3 + $0x530] sm:$0xf]  ;;  %v5155_v56 = vld [vmem:[#allocation3 + $0x574] sm:$0xf0] }
 0x329   : > { %v581_v46 = vadd.f32 %v580_v44, %v579_v45  ;;  %v4058_v44 = vor.u32 %v5121_v41, %v4057_v39  ;;  %v4090_v45 = vor.u32 %v5129_v43, %v4089_v42  ;;  %v4178_v0 = vor.u32 %v5151_v60, %v4177_v58  ;;  %1274 = vmatpush.bf16.msra.mxu1 %v4146_v59  ;;  %v4133_v39 = vld [vmem:[#allocation3 + $0x480] sm:$0xf]  ;;  %v5148_v43 = vld [vmem:[#allocation3 + $0x504] sm:$0xf0] }
 0x32a   : > { %v4165_v41 = vld [vmem:[#allocation3 + $0x500] sm:$0xf]  ;;  %v5138_v59 = vld [vmem:[#allocation3 + $0x464] sm:$0xf0] }
 0x32b   : > { %v5702_v47 = vmax.f32 %v581_v46, 0.0  ;;  %v4021_v46 = vld [vmem:[#allocation3 + $0x2c0] sm:$0xf]  ;;  %1048 = vmatpush.bf16.msra.mxu0 %v4058_v44  ;;  %1061 = vmatpush.bf16.msra.mxu3 %v4090_v45  ;;  %v5156_v45 = vld [vmem:[#allocation3 + $0x584] sm:$0xf0] }
 0x32c   : > { %v563_v49 = vpop.f32.mrf.mxu2  ;;  %1031 = vmatpush.bf16.msrb.mxu2 %v4042_v3  ;;  %v4197_v44 = vld [vmem:[#allocation3 + $0x580] sm:$0xf] }
 0x32d   : > { %584 = vst [vmem:[#allocation2 - $0x1] sm:$0x2] %v5702_v47  ;;  %v5112_v49 = vld [vmem:[#allocation3 + $0x2c4] sm:$0xf0]  ;;  %v4125_v58 = vld [vmem:[#allocation3 + $0x460] sm:$0xf] }
 0x32e   : > { %585 = vst [vmem:[#allocation2 + $0x3] sm:$0x4] %v5702_v47  ;;  %v4157_v60 = vld [vmem:[#allocation3 + $0x4e0] sm:$0xf]  ;;  %v4126_v61 = vor.u32 %v5138_v59, %v4125_v58  ;;  %v4233_v59 = vld [vmem:[#allocation3 + $0x610] sm:$0xf] }
 0x32f   : > { %583 = vst [vmem:[#allocation2 + $0x1] sm:$0xf] %v5702_v47 }
 0x330   : > { %1032 = vmatpush.bf16.msrb.mxu2 %v4038_v12 }
 0x334   : > { %1033 = vmatpush.bf16.msrb.mxu2 %v4034_v21  ;;  %v4141_v21 = vld [vmem:[#allocation3 + $0x4a0] sm:$0xf] }
 0x335   : > { %v4142_v24 = vor.u32 %v5142_v22, %v4141_v21  ;;  %v4241_v22 = vld [vmem:[#allocation3 + $0x630] sm:$0xf] }
 0x336   : > { %v586_v50 = vld [vmem:[#allocation2] sm:$0xf]  ;;  %v4242_v25 = vor.u32 %v5167_v23, %v4241_v22 }
 0x337   : > { %v588_v51 = vld [vmem:[#allocation2 + $0x2] sm:$0xf]  ;;  %v637_v53 = vpack.c.bf16 %v586_v50, %v586_v50  ;;  %1275 = vmatpush.bf16.msra.mxu1 %v4142_v24  ;;  %v4273_v24 = vld [vmem:[#allocation3 + $0x6b0] sm:$0xf] }
 0x338   : > { %v587_v52 = vld [vmem:[#allocation2 + $0x1] sm:$0xf]  ;;  %v639_v55 = vpack.c.bf16 %v588_v51, %v588_v51  ;;  %1034 = vmatpush.bf16.msrb.mxu2 %v4030_v31  ;;  %v4022_v51 = vor.u32 %v5112_v49, %v4021_v46  ;;  %v5141_v31 = vld [vmem:[#allocation3 + $0x494] sm:$0xf0]  ;;  %v4166_v46 = vor.u32 %v5148_v43, %v4165_v41  ;;  %v4198_v49 = vor.u32 %v5156_v45, %v4197_v44 }
 0x339   : > { %v638_v54 = vpack.c.bf16 %v587_v52, %v587_v52  ;;  %792 = vmatmul.bf16.vlgmr.msrb.gmra.mxu0 %v637_v53  ;;  %v4053_v50 = vld [vmem:[#allocation3 + $0x340] sm:$0xf]  ;;  %v5120_v52 = vld [vmem:[#allocation3 + $0x344] sm:$0xf0]  ;;  %v4138_v33 = vor.u32 %v5141_v31, %v4137_v30  ;;  %v4274_v30 = vor.u32 %v5175_v26, %v4273_v24 }
 0x33a   : > { %818 = vmatmul.bf16.vlgmr.msrb.gmra.mxu1 %v639_v55  ;;  %v4085_v53 = vld [vmem:[#allocation3 + $0x3c0] sm:$0xf]  ;;  %v4054_v55 = vor.u32 %v5120_v52, %v4053_v50  ;;  %v4129_v50 = vld [vmem:[#allocation3 + $0x470] sm:$0xf]  ;;  %v5162_v24 = vld [vmem:[#allocation3 + $0x5e4] sm:$0xf0] }
 0x33b   : > { %805 = vmatmul.bf16.vlgmr.msrb.gmra.mxu3 %v638_v54  ;;  %v5128_v54 = vld [vmem:[#allocation3 + $0x3c4] sm:$0xf0]  ;;  %1276 = vmatpush.bf16.msra.mxu1 %v4138_v33  ;;  %v4221_v23 = vld [vmem:[#allocation3 + $0x5e0] sm:$0xf] }
 0x33c   : > { %1035 = vmatpush.bf16.msrb.mxu2 %v4026_v40  ;;  %v4086_v48 = vor.u32 %v5128_v54, %v4085_v53  ;;  %1049 = vmatpush.bf16.msra.mxu0 %v4054_v55  ;;  %v5140_v40 = vld [vmem:[#allocation3 + $0x484] sm:$0xf0]  ;;  %v4161_v53 = vld [vmem:[#allocation3 + $0x4f0] sm:$0xf]  ;;  %v5147_v54 = vld [vmem:[#allocation3 + $0x4f4] sm:$0xf0]  ;;  %v4222_v26 = vor.u32 %v5162_v24, %v4221_v23 }
 0x33d   : > { %v4134_v42 = vor.u32 %v5140_v40, %v4133_v39  ;;  %v4193_v55 = vld [vmem:[#allocation3 + $0x570] sm:$0xf] }
 0x33e   : > { %1062 = vmatpush.bf16.msra.mxu3 %v4086_v48  ;;  %v4162_v48 = vor.u32 %v5147_v54, %v4161_v53  ;;  %v4194_v57 = vor.u32 %v5155_v56, %v4193_v55  ;;  %v5166_v53 = vld [vmem:[#allocation3 + $0x624] sm:$0xf0] }
 0x33f   : > { %1277 = vmatpush.bf16.msra.mxu1 %v4134_v42  ;;  %v5174_v55 = vld [vmem:[#allocation3 + $0x6a4] sm:$0xf0] }
 0x340   : > { %1036 = vmatpush.bf16.msrb.mxu2 %v4022_v51  ;;  %1300 = vmatpush.bf16.msrb.mxu0 %v4210_v1  ;;  %v5139_v51 = vld [vmem:[#allocation3 + $0x474] sm:$0xf0]  ;;  %v4158_v1 = vor.u32 %v5146_v62, %v4157_v60  ;;  %v5182_v56 = vld [vmem:[#allocation3 + $0x724] sm:$0xf0] }
 0x341   : > { %v4130_v52 = vor.u32 %v5139_v51, %v4129_v50  ;;  %v5165_v60 = vld [vmem:[#allocation3 + $0x614] sm:$0xf0] }
 0x342   : > { %1519 = vmatpush.bf16.msrb.mxu3 %v4242_v25  ;;  %v4234_v62 = vor.u32 %v5165_v60, %v4233_v59  ;;  %v4253_v25 = vld [vmem:[#allocation3 + $0x660] sm:$0xf] }
 0x343   : > { %1278 = vmatpush.bf16.msra.mxu1 %v4130_v52  ;;  %v4237_v52 = vld [vmem:[#allocation3 + $0x620] sm:$0xf] }
 0x344   : > { %1287 = vmatpush.bf16.msra.mxu2 %v4178_v0  ;;  %1301 = vmatpush.bf16.msrb.mxu0 %v4206_v29  ;;  %v5154_v0 = vld [vmem:[#allocation3 + $0x564] sm:$0xf0]  ;;  %v4238_v54 = vor.u32 %v5166_v53, %v4237_v52  ;;  %v4337_v53 = vld [vmem:[#allocation3 + $0x7b0] sm:$0xf] }
 0x346   : > { %1520 = vmatpush.bf16.msrb.mxu3 %v4238_v54  ;;  %v4369_v54 = vld [vmem:[#allocation3 + $0x830] sm:$0xf] }
 0x347   : > { %1279 = vmatpush.bf16.msra.mxu1 %v4126_v61  ;;  %v4265_v61 = vld [vmem:[#allocation3 + $0x690] sm:$0xf] }
 0x348   : > { %1288 = vmatpush.bf16.msra.mxu2 %v4174_v28  ;;  %1302 = vmatpush.bf16.msrb.mxu0 %v4202_v38  ;;  %v5183_v28 = vld [vmem:[#allocation3 + $0x734] sm:$0xf0]  ;;  %v1070_v38 = vld [vmem:[#allocation5 + $0x11] ss:$0 sm:$0xff] }
 0x349   : > { %v4306_v31 = vor.u32 %v5183_v28, %v4305_v27  ;;  %v5170_v27 = vld [vmem:[#allocation3 + $0x664] sm:$0xf0]  ;;  %v4285_v28 = vld [vmem:[#allocation3 + $0x6e0] sm:$0xf] }
 0x34a   : > { %1521 = vmatpush.bf16.msrb.mxu3 %v4234_v62 }
 0x34c   : > { %1289 = vmatpush.bf16.msra.mxu2 %v4170_v37  ;;  %1303 = vmatpush.bf16.msrb.mxu0 %v4198_v49 }
 0x350   : > { %1290 = vmatpush.bf16.msra.mxu2 %v4166_v46  ;;  %1304 = vmatpush.bf16.msrb.mxu0 %v4194_v57 }
 0x354   : > { %1291 = vmatpush.bf16.msra.mxu2 %v4162_v48  ;;  %v4301_v48 = vld [vmem:[#allocation3 + $0x720] sm:$0xf] }
 0x355   : > { %v4302_v58 = vor.u32 %v5182_v56, %v4301_v48  ;;  %v5199_v48 = vld [vmem:[#allocation3 + $0x834] sm:$0xf0]  ;;  %v4401_v56 = vld [vmem:[#allocation3 + $0x8b0] sm:$0xf] }
 0x356   : > { %v4370_v59 = vor.u32 %v5199_v48, %v4369_v54  ;;  %v4317_v54 = vld [vmem:[#allocation3 + $0x760] sm:$0xf] }
 0x357   : > { %v4349_v48 = vld [vmem:[#allocation3 + $0x7e0] sm:$0xf] }
 0x358   : > { %1292 = vmatpush.bf16.msra.mxu2 %v4158_v1  ;;  %v5181_v1 = vld [vmem:[#allocation3 + $0x714] sm:$0xf0] }
 0x3b6   : > { %v793_v63 = vpop.f32.mrf.mxu0 }
 0x3b7   : > { %v819_v2 = vpop.f32.mrf.mxu1 }
 0x3be   : > { %v806_v3 = vpop.f32.mrf.mxu3  ;;  %v795_v6 = vpop.f32.mrf.mxu0 }
 0x3bf   : > { %v807_v4 = vadd.f32 %v806_v3, %v793_v63  ;;  %v821_v8 = vpop.f32.mrf.mxu1  ;;  %v4189_v63 = vld [vmem:[#allocation3 + $0x560] sm:$0xf]  ;;  %v4121_v3 = vld [vmem:[#allocation3 + $0x450] sm:$0xf] }
 0x3c0   : > { %v4185_v8 = vld [vmem:[#allocation3 + $0x550] sm:$0xf] }
 0x3c1   : > { %v820_v7 = vadd.f32 %v819_v2, %v807_v4  ;;  %v4190_v2 = vor.u32 %v5154_v0, %v4189_v63  ;;  %v5137_v4 = vld [vmem:[#allocation3 + $0x454] sm:$0xf0]  ;;  %v4297_v0 = vld [vmem:[#allocation3 + $0x710] sm:$0xf] }
 0x3c2   : > { %v4122_v6 = vor.u32 %v5137_v4, %v4121_v3  ;;  %v5173_v63 = vld [vmem:[#allocation3 + $0x694] sm:$0xf0]  ;;  %v4298_v3 = vor.u32 %v5181_v1, %v4297_v0  ;;  %v4229_v4 = vld [vmem:[#allocation3 + $0x600] sm:$0xf]  ;;  %v1313_v0 = vld [vmem:[#allocation5 + $0x12] ss:$0 sm:$0xff] }
 0x3c3   : > { %v824_v10 = vmul.f32 %v823_v5, %v820_v7  ;;  %v4153_v5 = vld [vmem:[#allocation3 + $0x4d0] sm:$0xf]  ;;  %1305 = vmatpush.bf16.msrb.mxu0 %v4190_v2  ;;  %v5145_v7 = vld [vmem:[#allocation3 + $0x4d4] sm:$0xf0]  ;;  %v4266_v2 = vor.u32 %v5173_v63, %v4265_v61 }
 0x3c4   : > { %1280 = vmatpush.bf16.msra.mxu1 %v4122_v6  ;;  %v4261_v6 = vld [vmem:[#allocation3 + $0x680] sm:$0xf] }
 0x3c5   : > { %v826_v11 = vadd.f32 %v825_v9, %v824_v10  ;;  %v5153_v9 = vld [vmem:[#allocation3 + $0x554] sm:$0xf0]  ;;  %v4154_v10 = vor.u32 %v5145_v7, %v4153_v5  ;;  %v5164_v5 = vld [vmem:[#allocation3 + $0x604] sm:$0xf0] }
 0x3c6   : > { %v808_v12 = vpop.f32.mrf.mxu3  ;;  %v4230_v7 = vor.u32 %v5164_v5, %v4229_v4  ;;  %v1315_v4 = vld [vmem:[#allocation5 + $0x13] ss:$0 sm:$0xff] }
 0x3c7   : > { %v827_v13 = vmax.f32 %v826_v11, 0.0  ;;  %v4186_v11 = vor.u32 %v5153_v9, %v4185_v8  ;;  %v4117_v12 = vld [vmem:[#allocation3 + $0x440] sm:$0xf]  ;;  %1293 = vmatpush.bf16.msra.mxu2 %v4154_v10  ;;  %v5172_v8 = vld [vmem:[#allocation3 + $0x684] sm:$0xf0] }
 0x3c8   : > { %v4293_v9 = vld [vmem:[#allocation3 + $0x700] sm:$0xf]  ;;  %v5180_v10 = vld [vmem:[#allocation3 + $0x704] sm:$0xf0]  ;;  %1522 = vmatpush.bf16.msrb.mxu3 %v4230_v7 }
 0x3c9   : > { %829 = vst [vmem:[#allocation2 - $0x1] sm:$0x2] %v827_v13  ;;  %1306 = vmatpush.bf16.msrb.mxu0 %v4186_v11  ;;  %v4262_v11 = vor.u32 %v5172_v8, %v4261_v6 }
 0x3ca   : > { %830 = vst [vmem:[#allocation2 + $0x3] sm:$0x4] %v827_v13 }
 0x3cb   : > { %828 = vst [vmem:[#allocation2 + $0x1] sm:$0xf] %v827_v13  ;;  %v5136_v13 = vld [vmem:[#allocation3 + $0x444] sm:$0xf0] }
 0x3d2   : > { %v831_v15 = vld [vmem:[#allocation2] sm:$0xf] }
 0x3d3   : > { %v833_v16 = vld [vmem:[#allocation2 + $0x2] sm:$0xf]  ;;  %v882_v18 = vpack.c.bf16 %v831_v15, %v831_v15 }
 0x3d4   : > { %v832_v17 = vld [vmem:[#allocation2 + $0x1] sm:$0xf]  ;;  %v884_v20 = vpack.c.bf16 %v833_v16, %v833_v16  ;;  %v4118_v16 = vor.u32 %v5136_v13, %v4117_v12  ;;  %v4294_v12 = vor.u32 %v5180_v10, %v4293_v9  ;;  %v4225_v13 = vld [vmem:[#allocation3 + $0x5f0] sm:$0xf] }
 0x3d5   : > { %v883_v19 = vpack.c.bf16 %v832_v17, %v832_v17  ;;  %1037 = vmatmul.bf16.vlgmr.msrb.gmra.mxu2 %v882_v18  ;;  %v4149_v15 = vld [vmem:[#allocation3 + $0x4c0] sm:$0xf]  ;;  %v5144_v17 = vld [vmem:[#allocation3 + $0x4c4] sm:$0xf0] }
 0x3d6   : > { %1063 = vmatmul.bf16.vlgmr.msra.gmra.mxu3 %v884_v20  ;;  %v4181_v18 = vld [vmem:[#allocation3 + $0x540] sm:$0xf]  ;;  %v4150_v20 = vor.u32 %v5144_v17, %v4149_v15  ;;  %1281 = vmatpush.bf16.msra.mxu1 %v4118_v16  ;;  %v5163_v15 = vld [vmem:[#allocation3 + $0x5f4] sm:$0xf0]  ;;  %v4257_v17 = vld [vmem:[#allocation3 + $0x670] sm:$0xf] }
 0x3d7   : > { %1050 = vmatmul.bf16.vlgmr.msra.gmra.mxu0 %v883_v19  ;;  %v5152_v19 = vld [vmem:[#allocation3 + $0x544] sm:$0xf0]  ;;  %v4226_v16 = vor.u32 %v5163_v15, %v4225_v13 }
 0x3d8   : > { %v4182_v21 = vor.u32 %v5152_v19, %v4181_v18  ;;  %1294 = vmatpush.bf16.msra.mxu2 %v4150_v20  ;;  %v5171_v18 = vld [vmem:[#allocation3 + $0x674] sm:$0xf0]  ;;  %v4289_v19 = vld [vmem:[#allocation3 + $0x6f0] sm:$0xf] }
 0x3d9   : > { %v4258_v20 = vor.u32 %v5171_v18, %v4257_v17  ;;  %1523 = vmatpush.bf16.msrb.mxu3 %v4226_v16  ;;  %v4333_v16 = vld [vmem:[#allocation3 + $0x7a0] sm:$0xf]  ;;  %v5190_v17 = vld [vmem:[#allocation3 + $0x7a4] sm:$0xf0] }
 0x3da   : > { %1307 = vmatpush.bf16.msrb.mxu0 %v4182_v21  ;;  %1532 = vmatpush.bf16.msrb.mxu1 %v4274_v30  ;;  %v5179_v21 = vld [vmem:[#allocation3 + $0x6f4] sm:$0xf0]  ;;  %v4254_v30 = vor.u32 %v5170_v27, %v4253_v25  ;;  %v4365_v18 = vld [vmem:[#allocation3 + $0x820] sm:$0xf]  ;;  %v4329_v25 = vld [vmem:[#allocation3 + $0x790] sm:$0xf] }
 0x3db   : > { %v4290_v22 = vor.u32 %v5179_v21, %v4289_v19  ;;  %v4334_v19 = vor.u32 %v5190_v17, %v4333_v16  ;;  %v4397_v21 = vld [vmem:[#allocation3 + $0x8a0] sm:$0xf]  ;;  %v4361_v27 = vld [vmem:[#allocation3 + $0x810] sm:$0xf] }
 0x3dc   : > { %1545 = vmatpush.bf16.msrb.mxu2 %v4306_v31  ;;  %v4433_v17 = vld [vmem:[#allocation3 + $0x930] sm:$0xf] }
 0x3dd   : > { %1524 = vmatpush.bf16.msrb.mxu3 %v4222_v26  ;;  %v5189_v26 = vld [vmem:[#allocation3 + $0x794] sm:$0xf0] }
 0x3e0   : > { %1546 = vmatpush.bf16.msrb.mxu2 %v4302_v58 }
 0x3e4   : > { %1547 = vmatpush.bf16.msrb.mxu2 %v4298_v3 }
 0x3e8   : > { %1548 = vmatpush.bf16.msrb.mxu2 %v4294_v12 }
 0x3ec   : > { %1549 = vmatpush.bf16.msrb.mxu2 %v4290_v22  ;;  %v5206_v22 = vld [vmem:[#allocation3 + $0x8a4] sm:$0xf0] }
 0x3ed   : > { %v4398_v24 = vor.u32 %v5206_v22, %v4397_v21  ;;  %v5223_v21 = vld [vmem:[#allocation3 + $0x9b4] sm:$0xf0]  ;;  %v4497_v22 = vld [vmem:[#allocation3 + $0xa30] sm:$0xf] }
 0x454   : > { %v1051_v29 = vpop.f32.mrf.mxu0 }
 0x458   : > { %v1038_v32 = vpop.f32.mrf.mxu2 }
 0x459   : > { %v1052_v33 = vadd.f32 %v1051_v29, %v1038_v32  ;;  %v1064_v34 = vpop.f32.mrf.mxu3  ;;  %v5178_v29 = vld [vmem:[#allocation3 + $0x6e4] sm:$0xf0]  ;;  %v4217_v32 = vld [vmem:[#allocation3 + $0x5d0] sm:$0xf] }
 0x45a   : > { %v4286_v31 = vor.u32 %v5178_v29, %v4285_v28  ;;  %v4330_v28 = vor.u32 %v5189_v26, %v4329_v25  ;;  %v5197_v29 = vld [vmem:[#allocation3 + $0x814] sm:$0xf0] }
 0x45b   : > { %v1065_v37 = vadd.f32 %v1064_v34, %v1052_v33  ;;  %v5161_v33 = vld [vmem:[#allocation3 + $0x5d4] sm:$0xf0]  ;;  %v4249_v34 = vld [vmem:[#allocation3 + $0x650] sm:$0xf] }
 0x45c   : > { %v1053_v36 = vpop.f32.mrf.mxu0  ;;  %1550 = vmatpush.bf16.msrb.mxu2 %v4286_v31  ;;  %v5205_v31 = vld [vmem:[#allocation3 + $0x894] sm:$0xf0] }
 0x45d   : > { %v1069_v39 = vmul.f32 %v1068_v35, %v1065_v37  ;;  %v4218_v35 = vor.u32 %v5161_v33, %v4217_v32  ;;  %v5169_v36 = vld [vmem:[#allocation3 + $0x654] sm:$0xf0]  ;;  %v4281_v37 = vld [vmem:[#allocation3 + $0x6d0] sm:$0xf]  ;;  %v4362_v32 = vor.u32 %v5197_v29, %v4361_v27 }
 0x45f   : > { %v1071_v40 = vadd.f32 %v1070_v38, %v1069_v39  ;;  %v5177_v38 = vld [vmem:[#allocation3 + $0x6d4] sm:$0xf0]  ;;  %v4250_v39 = vor.u32 %v5169_v36, %v4249_v34  ;;  %1525 = vmatpush.bf16.msrb.mxu3 %v4218_v35  ;;  %v4325_v34 = vld [vmem:[#allocation3 + $0x780] sm:$0xf]  ;;  %v5188_v35 = vld [vmem:[#allocation3 + $0x784] sm:$0xf0] }
 0x460   : > { %v1040_v41 = vpop.f32.mrf.mxu2  ;;  %v4357_v36 = vld [vmem:[#allocation3 + $0x800] sm:$0xf] }
 0x461   : > { %v5708_v42 = vadd.f32 %v1071_v40, %v5702_v47  ;;  %v1066_v43 = vpop.f32.mrf.mxu3  ;;  %v4269_v47 = vld [vmem:[#allocation3 + $0x6a0] sm:$0xf]  ;;  %v4282_v40 = vor.u32 %v5177_v38, %v4281_v37  ;;  %v4326_v37 = vor.u32 %v5188_v35, %v4325_v34  ;;  %v5196_v38 = vld [vmem:[#allocation3 + $0x804] sm:$0xf0] }
 0x462   : > { %v4270_v57 = vor.u32 %v5174_v55, %v4269_v47  ;;  %v4213_v41 = vld [vmem:[#allocation3 + $0x5c0] sm:$0xf]  ;;  %v5160_v43 = vld [vmem:[#allocation3 + $0x5c4] sm:$0xf0]  ;;  %v5191_v47 = vld [vmem:[#allocation3 + $0x7b4] sm:$0xf0] }
 0x463   : > { %1074 = vst [vmem:[#allocation2 - $0x1] sm:$0x2] %v5708_v42  ;;  %1551 = vmatpush.bf16.msrb.mxu2 %v4282_v40  ;;  %v4338_v55 = vor.u32 %v5191_v47, %v4337_v53  ;;  %v5204_v40 = vld [vmem:[#allocation3 + $0x884] sm:$0xf0]  ;;  %v5203_v53 = vld [vmem:[#allocation3 + $0x874] sm:$0xf0] }
 0x464   : > { %1075 = vst [vmem:[#allocation2 + $0x3] sm:$0x4] %v5708_v42  ;;  %1533 = vmatpush.bf16.msrb.mxu1 %v4270_v57  ;;  %v5207_v57 = vld [vmem:[#allocation3 + $0x8b4] sm:$0xf0] }
 0x465   : > { %1073 = vst [vmem:[#allocation2 + $0x1] sm:$0xf] %v5708_v42  ;;  %v4402_v60 = vor.u32 %v5207_v57, %v4401_v56  ;;  %1764 = vmatpush.bf16.msra.mxu0 %v4338_v55  ;;  %v5186_v55 = vld [vmem:[#allocation3 + $0x764] sm:$0xf0] }
 0x466   : > { %v4318_v56 = vor.u32 %v5186_v55, %v4317_v54  ;;  %v5194_v57 = vld [vmem:[#allocation3 + $0x7e4] sm:$0xf0]  ;;  %v4425_v55 = vld [vmem:[#allocation3 + $0x910] sm:$0xf] }
 0x468   : > { %1534 = vmatpush.bf16.msrb.mxu1 %v4266_v2 }
 0x469   : > { %1765 = vmatpush.bf16.msra.mxu0 %v4334_v19  ;;  %v4465_v19 = vld [vmem:[#allocation3 + $0x9b0] sm:$0xf] }
 0x46c   : > { %v1076_v44 = vld [vmem:[#allocation2] sm:$0xf]  ;;  %1535 = vmatpush.bf16.msrb.mxu1 %v4262_v11 }
 0x46d   : > { %v1077_v45 = vld [vmem:[#allocation2 + $0x1] sm:$0xf]  ;;  %v1127_v49 = vpack.c.bf16 %v1076_v44, %v1076_v44  ;;  %1766 = vmatpush.bf16.msra.mxu0 %v4330_v28 }
 0x46e   : > { %v1078_v46 = vld [vmem:[#allocation2 + $0x2] sm:$0xf]  ;;  %v1128_v50 = vpack.c.bf16 %v1077_v45, %v1077_v45  ;;  %v4214_v45 = vor.u32 %v5160_v43, %v4213_v41  ;;  %v4358_v41 = vor.u32 %v5196_v38, %v4357_v36 }
 0x46f   : > { %v1129_v51 = vpack.c.bf16 %v1078_v46, %v1078_v46  ;;  %1282 = vmatmul.bf16.vlgmr.msra.gmra.mxu1 %v1127_v49  ;;  %v4245_v44 = vld [vmem:[#allocation3 + $0x640] sm:$0xf]  ;;  %v5168_v46 = vld [vmem:[#allocation3 + $0x644] sm:$0xf0] }
 0x470   : > { %1295 = vmatmul.bf16.vlgmr.msra.gmra.mxu2 %v1128_v50  ;;  %1536 = vmatpush.bf16.msrb.mxu1 %v4258_v20  ;;  %v4277_v49 = vld [vmem:[#allocation3 + $0x6c0] sm:$0xf]  ;;  %v5176_v50 = vld [vmem:[#allocation3 + $0x6c4] sm:$0xf0] }
 0x471   : > { %1308 = vmatmul.bf16.vlgmr.msrb.gmra.mxu0 %v1129_v51  ;;  %v4246_v51 = vor.u32 %v5168_v46, %v4245_v44  ;;  %v4278_v52 = vor.u32 %v5176_v50, %v4277_v49  ;;  %1526 = vmatpush.bf16.msrb.mxu3 %v4214_v45  ;;  %v5198_v20 = vld [vmem:[#allocation3 + $0x824] sm:$0xf0]  ;;  %v4321_v44 = vld [vmem:[#allocation3 + $0x770] sm:$0xf]  ;;  %v5187_v45 = vld [vmem:[#allocation3 + $0x774] sm:$0xf0] }
 0x472   : > { %v4366_v23 = vor.u32 %v5198_v20, %v4365_v18  ;;  %1767 = vmatpush.bf16.msra.mxu0 %v4326_v37  ;;  %v4322_v46 = vor.u32 %v5187_v45, %v4321_v44  ;;  %v4353_v49 = vld [vmem:[#allocation3 + $0x7f0] sm:$0xf]  ;;  %v5195_v50 = vld [vmem:[#allocation3 + $0x7f4] sm:$0xf0] }
 0x473   : > { %1552 = vmatpush.bf16.msrb.mxu2 %v4278_v52  ;;  %v4354_v52 = vor.u32 %v5195_v50, %v4353_v49  ;;  %v5215_v18 = vld [vmem:[#allocation3 + $0x934] sm:$0xf0]  ;;  %v5214_v49 = vld [vmem:[#allocation3 + $0x924] sm:$0xf0] }
 0x474   : > { %1537 = vmatpush.bf16.msrb.mxu1 %v4254_v30  ;;  %v4393_v30 = vld [vmem:[#allocation3 + $0x890] sm:$0xf]  ;;  %v4434_v20 = vor.u32 %v5215_v18, %v4433_v17  ;;  %v4413_v18 = vld [vmem:[#allocation3 + $0x8e0] sm:$0xf] }
 0x475   : > { %1777 = vmatpush.bf16.msra.mxu3 %v4370_v59  ;;  %v4394_v33 = vor.u32 %v5205_v31, %v4393_v30  ;;  %v5202_v59 = vld [vmem:[#allocation3 + $0x864] sm:$0xf0]  ;;  %v1558_v30 = vld [vmem:[#allocation5 + $0x14] ss:$0 sm:$0xff] }
 0x476   : > { %1768 = vmatpush.bf16.msra.mxu0 %v4322_v46  ;;  %v4429_v46 = vld [vmem:[#allocation3 + $0x920] sm:$0xf] }
 0x477   : > { %2009 = vmatpush.bf16.msra.mxu2 %v4434_v20  ;;  %v4430_v50 = vor.u32 %v5214_v49, %v4429_v46  ;;  %v4445_v20 = vld [vmem:[#allocation3 + $0x960] sm:$0xf]  ;;  %v4529_v49 = vld [vmem:[#allocation3 + $0xab0] sm:$0xf] }
 0x478   : > { %1538 = vmatpush.bf16.msrb.mxu1 %v4250_v39  ;;  %v4389_v39 = vld [vmem:[#allocation3 + $0x880] sm:$0xf] }
 0x479   : > { %1778 = vmatpush.bf16.msra.mxu3 %v4366_v23  ;;  %v4390_v43 = vor.u32 %v5204_v40, %v4389_v39  ;;  %v5231_v23 = vld [vmem:[#allocation3 + $0xa34] sm:$0xf0] }
 0x47a   : > { %1769 = vmatpush.bf16.msra.mxu0 %v4318_v56  ;;  %v4498_v25 = vor.u32 %v5231_v23, %v4497_v22  ;;  %v4457_v56 = vld [vmem:[#allocation3 + $0x990] sm:$0xf]  ;;  %v5218_v22 = vld [vmem:[#allocation3 + $0x964] sm:$0xf0]  ;;  %v4477_v23 = vld [vmem:[#allocation3 + $0x9e0] sm:$0xf] }
 0x47b   : > { %2010 = vmatpush.bf16.msra.mxu2 %v4430_v50  ;;  %v4561_v50 = vld [vmem:[#allocation3 + $0xb30] sm:$0xf] }
 0x47c   : > { %1539 = vmatpush.bf16.msrb.mxu1 %v4246_v51  ;;  %v4385_v51 = vld [vmem:[#allocation3 + $0x870] sm:$0xf] }
 0x47d   : > { %1779 = vmatpush.bf16.msra.mxu3 %v4362_v32  ;;  %v4386_v47 = vor.u32 %v5203_v53, %v4385_v51  ;;  %v5222_v51 = vld [vmem:[#allocation3 + $0x9a4] sm:$0xf0] }
 0x47e   : > { %v5230_v53 = vld [vmem:[#allocation3 + $0xa24] sm:$0xf0] }
 0x480   : > { %1790 = vmatpush.bf16.msra.mxu1 %v4402_v60  ;;  %v4350_v60 = vor.u32 %v5194_v57, %v4349_v48  ;;  %v5213_v48 = vld [vmem:[#allocation3 + $0x914] sm:$0xf0] }
 0x481   : > { %1780 = vmatpush.bf16.msra.mxu3 %v4358_v41  ;;  %v4426_v57 = vor.u32 %v5213_v48, %v4425_v55  ;;  %v4557_v55 = vld [vmem:[#allocation3 + $0xb20] sm:$0xf]  ;;  %v5246_v48 = vld [vmem:[#allocation3 + $0xb24] sm:$0xf0] }
 0x483   : > { %2011 = vmatpush.bf16.msra.mxu2 %v4426_v57  ;;  %v4521_v57 = vld [vmem:[#allocation3 + $0xa90] sm:$0xf] }
 0x484   : > { %1791 = vmatpush.bf16.msra.mxu1 %v4398_v24  ;;  %v4466_v24 = vor.u32 %v5223_v21, %v4465_v19  ;;  %v5210_v19 = vld [vmem:[#allocation3 + $0x8e4] sm:$0xf0] }
 0x485   : > { %1781 = vmatpush.bf16.msra.mxu3 %v4354_v52  ;;  %v4493_v52 = vld [vmem:[#allocation3 + $0xa20] sm:$0xf]  ;;  %v4414_v21 = vor.u32 %v5210_v19, %v4413_v18 }
 0x486   : > { %v4494_v54 = vor.u32 %v5230_v53, %v4493_v52  ;;  %v5247_v52 = vld [vmem:[#allocation3 + $0xb34] sm:$0xf0]  ;;  %v4525_v53 = vld [vmem:[#allocation3 + $0xaa0] sm:$0xf] }
 0x488   : > { %1792 = vmatpush.bf16.msra.mxu1 %v4394_v33  ;;  %v1560_v33 = vld [vmem:[#allocation5 + $0x15] ss:$0 sm:$0xff] }
 0x489   : > { %1782 = vmatpush.bf16.msra.mxu3 %v4350_v60  ;;  %v5229_v60 = vld [vmem:[#allocation3 + $0xa14] sm:$0xf0] }
 0x48c   : > { %1793 = vmatpush.bf16.msra.mxu1 %v4390_v43 }
 0x490   : > { %1794 = vmatpush.bf16.msra.mxu1 %v4386_v47 }
 0x4ec   : > { %v1283_v58 = vpop.f32.mrf.mxu1 }
 0x4ee   : > { %v1309_v61 = vpop.f32.mrf.mxu0 }
 0x4f3   : > { %v1296_v62 = vpop.f32.mrf.mxu2 }
 0x4f4   : > { %v1297_v63 = vadd.f32 %v1296_v62, %v1283_v58  ;;  %v1285_v1 = vpop.f32.mrf.mxu1  ;;  %v4381_v58 = vld [vmem:[#allocation3 + $0x860] sm:$0xf]  ;;  %v4313_v62 = vld [vmem:[#allocation3 + $0x750] sm:$0xf] }
 0x4f6   : > { %v1310_v2 = vadd.f32 %v1309_v61, %v1297_v63  ;;  %v1311_v3 = vpop.f32.mrf.mxu0  ;;  %v4382_v61 = vor.u32 %v5202_v59, %v4381_v58  ;;  %v5185_v63 = vld [vmem:[#allocation3 + $0x754] sm:$0xf0]  ;;  %v4489_v59 = vld [vmem:[#allocation3 + $0xa10] sm:$0xf] }
 0x4f7   : > { %v4314_v1 = vor.u32 %v5185_v63, %v4313_v62  ;;  %v4377_v3 = vld [vmem:[#allocation3 + $0x850] sm:$0xf]  ;;  %v5221_v58 = vld [vmem:[#allocation3 + $0x994] sm:$0xf0]  ;;  %v4490_v62 = vor.u32 %v5229_v60, %v4489_v59  ;;  %v4421_v63 = vld [vmem:[#allocation3 + $0x900] sm:$0xf]  ;;  %v4558_v59 = vor.u32 %v5246_v48, %v4557_v55 }
 0x4f8   : > { %v1314_v5 = vmul.f32 %v1313_v0, %v1310_v2  ;;  %v4345_v0 = vld [vmem:[#allocation3 + $0x7d0] sm:$0xf]  ;;  %1795 = vmatpush.bf16.msra.mxu1 %v4382_v61  ;;  %v5193_v2 = vld [vmem:[#allocation3 + $0x7d4] sm:$0xf0]  ;;  %v4458_v61 = vor.u32 %v5221_v58, %v4457_v56 }
 0x4f9   : > { %1770 = vmatpush.bf16.msra.mxu0 %v4314_v1  ;;  %v4453_v1 = vld [vmem:[#allocation3 + $0x980] sm:$0xf]  ;;  %v5237_v60 = vld [vmem:[#allocation3 + $0xa94] sm:$0xf0] }
 0x4fa   : > { %v1316_v6 = vadd.f32 %v1315_v4, %v1314_v5  ;;  %v5201_v4 = vld [vmem:[#allocation3 + $0x854] sm:$0xf0]  ;;  %v4346_v5 = vor.u32 %v5193_v2, %v4345_v0  ;;  %v5212_v0 = vld [vmem:[#allocation3 + $0x904] sm:$0xf0] }
 0x4fb   : > { %v1298_v7 = vpop.f32.mrf.mxu2  ;;  %v4422_v2 = vor.u32 %v5212_v0, %v4421_v63  ;;  %v4553_v0 = vld [vmem:[#allocation3 + $0xb10] sm:$0xf]  ;;  %v5241_v48 = vld [vmem:[#allocation3 + $0xad4] sm:$0xf0] }
 0x4fc   : > { %v1317_v8 = vmax.f32 %v1316_v6, 0.0  ;;  %v4378_v6 = vor.u32 %v5201_v4, %v4377_v3  ;;  %v4309_v7 = vld [vmem:[#allocation3 + $0x740] sm:$0xf]  ;;  %1783 = vmatpush.bf16.msra.mxu3 %v4346_v5  ;;  %v5220_v3 = vld [vmem:[#allocation3 + $0x984] sm:$0xf0] }
 0x4fd   : > { %v4485_v4 = vld [vmem:[#allocation3 + $0xa00] sm:$0xf]  ;;  %v5228_v5 = vld [vmem:[#allocation3 + $0xa04] sm:$0xf0]  ;;  %2012 = vmatpush.bf16.msra.mxu2 %v4422_v2 }
 0x4fe   : > { %1319 = vst [vmem:[#allocation2 - $0x1] sm:$0x2] %v1317_v8  ;;  %1796 = vmatpush.bf16.msra.mxu1 %v4378_v6  ;;  %v4454_v6 = vor.u32 %v5220_v3, %v4453_v1  ;;  %v5245_v1 = vld [vmem:[#allocation3 + $0xb14] sm:$0xf0]  ;;  %v4522_v3 = vor.u32 %v5237_v60, %v4521_v57  ;;  %v4501_v60 = vld [vmem:[#allocation3 + $0xa40] sm:$0xf] }
 0x4ff   : > { %1320 = vst [vmem:[#allocation2 + $0x3] sm:$0x4] %v1317_v8 }
 0x500   : > { %1318 = vst [vmem:[#allocation2 + $0x1] sm:$0xf] %v1317_v8  ;;  %v5184_v8 = vld [vmem:[#allocation3 + $0x744] sm:$0xf0] }
 0x507   : > { %v1321_v9 = vld [vmem:[#allocation2] sm:$0xf] }
 0x508   : > { %v1322_v10 = vld [vmem:[#allocation2 + $0x1] sm:$0xf]  ;;  %v1372_v12 = vpack.c.bf16 %v1321_v9, %v1321_v9 }
 0x509   : > { %v1323_v11 = vld [vmem:[#allocation2 + $0x2] sm:$0xf]  ;;  %v1373_v13 = vpack.c.bf16 %v1322_v10, %v1322_v10  ;;  %v4310_v10 = vor.u32 %v5184_v8, %v4309_v7  ;;  %v4486_v7 = vor.u32 %v5228_v5, %v4485_v4  ;;  %v4417_v8 = vld [vmem:[#allocation3 + $0x8f0] sm:$0xf]  ;;  %v4554_v4 = vor.u32 %v5245_v1, %v4553_v0  ;;  %v5240_v0 = vld [vmem:[#allocation3 + $0xac4] sm:$0xf0] }
 0x50a   : > { %v1374_v15 = vpack.c.bf16 %v1323_v11, %v1323_v11  ;;  %1527 = vmatmul.bf16.vlgmr.msrb.gmra.mxu3 %v1372_v12  ;;  %v4341_v9 = vld [vmem:[#allocation3 + $0x7c0] sm:$0xf]  ;;  %v5192_v11 = vld [vmem:[#allocation3 + $0x7c4] sm:$0xf0] }
 0x50b   : > { %1540 = vmatmul.bf16.vlgmr.msrb.gmra.mxu1 %v1373_v13  ;;  %v4373_v12 = vld [vmem:[#allocation3 + $0x840] sm:$0xf]  ;;  %v5200_v13 = vld [vmem:[#allocation3 + $0x844] sm:$0xf0]  ;;  %1771 = vmatpush.bf16.msra.mxu0 %v4310_v10 }
 0x50c   : > { %1553 = vmatmul.bf16.vlgmr.msrb.gmra.mxu2 %v1374_v15  ;;  %v4342_v15 = vor.u32 %v5192_v11, %v4341_v9  ;;  %v4374_v16 = vor.u32 %v5200_v13, %v4373_v12  ;;  %v5211_v9 = vld [vmem:[#allocation3 + $0x8f4] sm:$0xf0]  ;;  %v4449_v11 = vld [vmem:[#allocation3 + $0x970] sm:$0xf]  ;;  %v4573_v1 = vld [vmem:[#allocation3 + $0xb60] sm:$0xf] }
 0x50d   : > { %v4418_v10 = vor.u32 %v5211_v9, %v4417_v8  ;;  %v5219_v12 = vld [vmem:[#allocation3 + $0x974] sm:$0xf0]  ;;  %v4481_v13 = vld [vmem:[#allocation3 + $0x9f0] sm:$0xf] }
 0x50e   : > { %1784 = vmatpush.bf16.msra.mxu3 %v4342_v15  ;;  %1797 = vmatpush.bf16.msra.mxu1 %v4374_v16  ;;  %v4450_v15 = vor.u32 %v5219_v12, %v4449_v11  ;;  %v5227_v16 = vld [vmem:[#allocation3 + $0x9f4] sm:$0xf0] }
 0x50f   : > { %2022 = vmatpush.bf16.msrb.mxu0 %v4466_v24  ;;  %2013 = vmatpush.bf16.msra.mxu2 %v4418_v10  ;;  %v4482_v17 = vor.u32 %v5227_v16, %v4481_v13  ;;  %v5226_v24 = vld [vmem:[#allocation3 + $0x9e4] sm:$0xf0]  ;;  %v1805_v10 = vld [vmem:[#allocation5 + $0x17] ss:$0 sm:$0xff] }
 0x512   : > { %2035 = vmatpush.bf16.msrb.mxu3 %v4498_v25  ;;  %v4446_v25 = vor.u32 %v5218_v22, %v4445_v20 }
 0x513   : > { %2014 = vmatpush.bf16.msra.mxu2 %v4414_v21 }
 0x516   : > { %2036 = vmatpush.bf16.msrb.mxu3 %v4494_v54  ;;  %v4562_v54 = vor.u32 %v5247_v52, %v4561_v50  ;;  %v5252_v50 = vld [vmem:[#allocation3 + $0xb84] sm:$0xf0] }
 0x51a   : > { %2037 = vmatpush.bf16.msrb.mxu3 %v4490_v62  ;;  %v5255_v62 = vld [vmem:[#allocation3 + $0xbb4] sm:$0xf0] }
 0x51e   : > { %2038 = vmatpush.bf16.msrb.mxu3 %v4486_v7  ;;  %v1803_v7 = vld [vmem:[#allocation5 + $0x16] ss:$0 sm:$0xff] }
 0x522   : > { %2039 = vmatpush.bf16.msrb.mxu3 %v4482_v17 }
 0x588   : > { %v1541_v26 = vpop.f32.mrf.mxu1 }
 0x58d   : > { %v1528_v27 = vpop.f32.mrf.mxu3 }
 0x58e   : > { %v1542_v28 = vadd.f32 %v1541_v26, %v1528_v27  ;;  %v4478_v26 = vor.u32 %v5226_v24, %v4477_v23  ;;  %v4409_v27 = vld [vmem:[#allocation3 + $0x8d0] sm:$0xf]  ;;  %v4517_v23 = vld [vmem:[#allocation3 + $0xa80] sm:$0xf]  ;;  %v5236_v24 = vld [vmem:[#allocation3 + $0xa84] sm:$0xf0] }
 0x58f   : > { %v1554_v29 = vpop.f32.mrf.mxu2 }
 0x590   : > { %v1543_v31 = vpop.f32.mrf.mxu1  ;;  %v1555_v32 = vadd.f32 %v1554_v29, %v1542_v28  ;;  %v5209_v28 = vld [vmem:[#allocation3 + $0x8d4] sm:$0xf0]  ;;  %v4441_v29 = vld [vmem:[#allocation3 + $0x950] sm:$0xf]  ;;  %2040 = vmatpush.bf16.msrb.mxu3 %v4478_v26  ;;  %v4518_v26 = vor.u32 %v5236_v24, %v4517_v23 }
 0x591   : > { %v5217_v31 = vld [vmem:[#allocation3 + $0x954] sm:$0xf0] }
 0x592   : > { %v1559_v34 = vmul.f32 %v1558_v30, %v1555_v32  ;;  %v4410_v30 = vor.u32 %v5209_v28, %v4409_v27  ;;  %v4473_v32 = vld [vmem:[#allocation3 + $0x9d0] sm:$0xf]  ;;  %v5244_v27 = vld [vmem:[#allocation3 + $0xb04] sm:$0xf0]  ;;  %v4589_v28 = vld [vmem:[#allocation3 + $0xba0] sm:$0xf] }
 0x594   : > { %v1561_v35 = vadd.f32 %v1560_v33, %v1559_v34  ;;  %v5225_v33 = vld [vmem:[#allocation3 + $0x9d4] sm:$0xf0]  ;;  %v4442_v34 = vor.u32 %v5217_v31, %v4441_v29  ;;  %2015 = vmatpush.bf16.msra.mxu2 %v4410_v30  ;;  %v5254_v29 = vld [vmem:[#allocation3 + $0xba4] sm:$0xf0] }
 0x595   : > { %v1530_v36 = vpop.f32.mrf.mxu3  ;;  %v4590_v31 = vor.u32 %v5254_v29, %v4589_v28  ;;  %v2289_v28 = vld [vmem:[#allocation5 + $0x22] ss:$0 sm:$0xff] }
 0x596   : > { %v5714_v37 = vadd.f32 %v1561_v35, %v5708_v42  ;;  %v4461_v42 = vld [vmem:[#allocation3 + $0x9a0] sm:$0xf]  ;;  %v4474_v35 = vor.u32 %v5225_v33, %v4473_v32  ;;  %v4513_v32 = vld [vmem:[#allocation3 + $0xa70] sm:$0xf]  ;;  %v5235_v33 = vld [vmem:[#allocation3 + $0xa74] sm:$0xf0] }
 0x597   : > { %v1556_v38 = vpop.f32.mrf.mxu2  ;;  %v4462_v47 = vor.u32 %v5222_v51, %v4461_v42  ;;  %v4405_v36 = vld [vmem:[#allocation3 + $0x8c0] sm:$0xf]  ;;  %v5239_v42 = vld [vmem:[#allocation3 + $0xab4] sm:$0xf0] }
 0x598   : > { %1563 = vst [vmem:[#allocation2 + $0x1] sm:$0xf] %v5714_v37  ;;  %v5208_v38 = vld [vmem:[#allocation3 + $0x8c4] sm:$0xf0]  ;;  %2041 = vmatpush.bf16.msrb.mxu3 %v4474_v35  ;;  %v4530_v51 = vor.u32 %v5239_v42, %v4529_v49  ;;  %v4514_v35 = vor.u32 %v5235_v33, %v4513_v32  ;;  %v4581_v42 = vld [vmem:[#allocation3 + $0xb80] sm:$0xf] }
 0x599   : > { %1564 = vst [vmem:[#allocation2 - $0x1] sm:$0x2] %v5714_v37  ;;  %2023 = vmatpush.bf16.msrb.mxu0 %v4462_v47  ;;  %v5238_v47 = vld [vmem:[#allocation3 + $0xaa4] sm:$0xf0]  ;;  %v4582_v52 = vor.u32 %v5252_v50, %v4581_v42  ;;  %v4611_v33 = vld [vmem:[#allocation3 + $0xc10] sm:$0xf] }
 0x59a   : > { %1565 = vst [vmem:[#allocation2 + $0x3] sm:$0x4] %v5714_v37  ;;  %2118 = vmatpush.bf16.msrb.mxu1 %v4530_v51  ;;  %v4526_v56 = vor.u32 %v5238_v47, %v4525_v53  ;;  %v5242_v49 = vld [vmem:[#allocation3 + $0xae4] sm:$0xf0]  ;;  %v4505_v53 = vld [vmem:[#allocation3 + $0xa50] sm:$0xf] }
 0x59b   : > { %v5233_v47 = vld [vmem:[#allocation3 + $0xa54] sm:$0xf0] }
 0x59c   : > { %v4506_v55 = vor.u32 %v5233_v47, %v4505_v53  ;;  %v2298_v53 = vld [vmem:[#allocation3 + $0xbd0] sm:$0xf]  ;;  %v4607_v47 = vld [vmem:[#allocation3 + $0xc00] sm:$0xf] }
 0x59d   : > { %2024 = vmatpush.bf16.msrb.mxu0 %v4458_v61  ;;  %v4593_v61 = vld [vmem:[#allocation3 + $0xbb0] sm:$0xf] }
 0x59e   : > { %v4594_v2 = vor.u32 %v5255_v62, %v4593_v61  ;;  %2119 = vmatpush.bf16.msrb.mxu1 %v4526_v56  ;;  %v4577_v56 = vld [vmem:[#allocation3 + $0xb70] sm:$0xf]  ;;  %v5232_v61 = vld [vmem:[#allocation3 + $0xa44] sm:$0xf0]  ;;  %v4533_v62 = vld [vmem:[#allocation3 + $0xac0] sm:$0xf] }
 0x59f   : > { %v1567_v39 = vld [vmem:[#allocation2 + $0x1] sm:$0xf] }
 0x5a0   : > { %v1566_v40 = vld [vmem:[#allocation2] sm:$0xf]  ;;  %v1618_v41 = vpack.c.bf16 %v1567_v39, %v1567_v39 }
 0x5a1   : > { %v1617_v43 = vpack.c.bf16 %v1566_v40, %v1566_v40  ;;  %v1568_v44 = vld [vmem:[#allocation2 + $0x2] sm:$0xf]  ;;  %2025 = vmatpush.bf16.msrb.mxu0 %v4454_v6  ;;  %v4406_v40 = vor.u32 %v5208_v38, %v4405_v36  ;;  %v5243_v36 = vld [vmem:[#allocation3 + $0xaf4] sm:$0xf0]  ;;  %v4585_v38 = vld [vmem:[#allocation3 + $0xb90] sm:$0xf] }
 0x5a2   : > { %1785 = vmatmul.bf16.vlgmr.msra.gmra.mxu3 %v1618_v41  ;;  %v1619_v45 = vpack.c.bf16 %v1568_v44, %v1568_v44  ;;  %v4437_v39 = vld [vmem:[#allocation3 + $0x940] sm:$0xf]  ;;  %v5216_v41 = vld [vmem:[#allocation3 + $0x944] sm:$0xf0]  ;;  %2120 = vmatpush.bf16.msrb.mxu1 %v4522_v3  ;;  %v4534_v3 = vor.u32 %v5240_v0, %v4533_v62  ;;  %v5267_v62 = vld [vmem:[#allocation3 + $0xc94] sm:$0xf0] }
 0x5a3   : > { %1772 = vmatmul.bf16.vlgmr.msra.gmra.mxu0 %v1617_v43  ;;  %v4469_v43 = vld [vmem:[#allocation3 + $0x9c0] sm:$0xf]  ;;  %v5224_v44 = vld [vmem:[#allocation3 + $0x9c4] sm:$0xf0]  ;;  %2016 = vmatpush.bf16.msra.mxu2 %v4406_v40 }
 0x5a4   : > { %1798 = vmatmul.bf16.vlgmr.msra.gmra.mxu1 %v1619_v45  ;;  %v4438_v45 = vor.u32 %v5216_v41, %v4437_v39  ;;  %v4470_v46 = vor.u32 %v5224_v44, %v4469_v43  ;;  %v5253_v39 = vld [vmem:[#allocation3 + $0xb94] sm:$0xf0]  ;;  %v4509_v43 = vld [vmem:[#allocation3 + $0xa60] sm:$0xf]  ;;  %v5234_v44 = vld [vmem:[#allocation3 + $0xa64] sm:$0xf0] }
 0x5a5   : > { %2026 = vmatpush.bf16.msrb.mxu0 %v4450_v15  ;;  %v4586_v41 = vor.u32 %v5253_v39, %v4585_v38 }
 0x5a6   : > { %2042 = vmatpush.bf16.msrb.mxu3 %v4470_v46  ;;  %2121 = vmatpush.bf16.msrb.mxu1 %v4518_v26  ;;  %v4510_v46 = vor.u32 %v5234_v44, %v4509_v43  ;;  %v2297_v44 = vld [vmem:[#allocation3 + $0xbc0] sm:$0xf] }
 0x5a7   : > { %2263 = vmatpush.bf16.msrb.mxu2 %v4562_v54  ;;  %v4537_v54 = vld [vmem:[#allocation3 + $0xad0] sm:$0xf] }
 0x5a8   : > { %v4538_v57 = vor.u32 %v5241_v48, %v4537_v54  ;;  %v5258_v54 = vld [vmem:[#allocation3 + $0xc04] sm:$0xf0] }
 0x5a9   : > { %2027 = vmatpush.bf16.msrb.mxu0 %v4446_v25  ;;  %v4549_v25 = vld [vmem:[#allocation3 + $0xb00] sm:$0xf]  ;;  %v4608_v48 = vor.u32 %v5258_v54, %v4607_v47 }
 0x5aa   : > { %v4550_v30 = vor.u32 %v5244_v27, %v4549_v25  ;;  %2122 = vmatpush.bf16.msrb.mxu1 %v4514_v35 }
 0x5ab   : > { %2264 = vmatpush.bf16.msrb.mxu2 %v4558_v59 }
 0x5ad   : > { %2028 = vmatpush.bf16.msrb.mxu0 %v4442_v34  ;;  %v4545_v34 = vld [vmem:[#allocation3 + $0xaf0] sm:$0xf] }
 0x5ae   : > { %v4546_v40 = vor.u32 %v5243_v36, %v4545_v34  ;;  %2123 = vmatpush.bf16.msrb.mxu1 %v4510_v46  ;;  %v5259_v34 = vld [vmem:[#allocation3 + $0xc14] sm:$0xf0] }
 0x5af   : > { %2265 = vmatpush.bf16.msrb.mxu2 %v4554_v4 }
 0x5b1   : > { %2029 = vmatpush.bf16.msrb.mxu0 %v4438_v45  ;;  %v4541_v45 = vld [vmem:[#allocation3 + $0xae0] sm:$0xf] }
 0x5b2   : > { %v4542_v51 = vor.u32 %v5242_v49, %v4541_v45  ;;  %2124 = vmatpush.bf16.msrb.mxu1 %v4506_v55  ;;  %v4603_v55 = vld [vmem:[#allocation3 + $0xbf0] sm:$0xf] }
 0x5b3   : > { %2266 = vmatpush.bf16.msrb.mxu2 %v4550_v30  ;;  %v2291_v30 = vld [vmem:[#allocation5 + $0x23] ss:$0 sm:$0xff] }
 0x5b5   : > { %2276 = vmatpush.bf16.msra.mxu0 %v4594_v2  ;;  %v5250_v2 = vld [vmem:[#allocation3 + $0xb64] sm:$0xf0] }
 0x5b6   : > { %v4574_v4 = vor.u32 %v5250_v2, %v4573_v1  ;;  %v5266_v1 = vld [vmem:[#allocation3 + $0xc84] sm:$0xf0] }
 0x5b7   : > { %2267 = vmatpush.bf16.msrb.mxu2 %v4546_v40 }
 0x5b9   : > { %2277 = vmatpush.bf16.msra.mxu0 %v4590_v31 }
 0x5bb   : > { %2268 = vmatpush.bf16.msrb.mxu2 %v4542_v51 }
 0x5bd   : > { %2278 = vmatpush.bf16.msra.mxu0 %v4586_v41 }
 0x5bf   : > { %2269 = vmatpush.bf16.msrb.mxu2 %v4538_v57 }
 0x5c1   : > { %2279 = vmatpush.bf16.msra.mxu0 %v4582_v52 }
 0x5c3   : > { %2270 = vmatpush.bf16.msrb.mxu2 %v4534_v3  ;;  %v4636_v3 = vld [vmem:[#allocation3 + $0xc70] sm:$0xf] }
 0x620   : > { %v1773_v58 = vpop.f32.mrf.mxu0 }
 0x621   : > { %v1799_v63 = vpop.f32.mrf.mxu1 }
 0x625   : > { %v1786_v5 = vpop.f32.mrf.mxu3 }
 0x626   : > { %v1787_v6 = vadd.f32 %v1786_v5, %v1773_v58  ;;  %v5251_v58 = vld [vmem:[#allocation3 + $0xb74] sm:$0xf0]  ;;  %v4569_v5 = vld [vmem:[#allocation3 + $0xb50] sm:$0xf] }
 0x627   : > { %v4578_v59 = vor.u32 %v5251_v58, %v4577_v56  ;;  %v5257_v56 = vld [vmem:[#allocation3 + $0xbf4] sm:$0xf0]  ;;  %v4599_v58 = vld [vmem:[#allocation3 + $0xbe0] sm:$0xf] }
 0x628   : > { %v1800_v8 = vadd.f32 %v1799_v63, %v1787_v6  ;;  %v1775_v9 = vpop.f32.mrf.mxu0  ;;  %v4502_v63 = vor.u32 %v5232_v61, %v4501_v60  ;;  %v5249_v6 = vld [vmem:[#allocation3 + $0xb54] sm:$0xf0]  ;;  %v4604_v57 = vor.u32 %v5257_v56, %v4603_v55  ;;  %v4644_v61 = vld [vmem:[#allocation3 + $0xc90] sm:$0xf] }
 0x629   : > { %v1801_v11 = vpop.f32.mrf.mxu1  ;;  %2280 = vmatpush.bf16.msra.mxu0 %v4578_v59  ;;  %v5248_v9 = vld [vmem:[#allocation3 + $0xb44] sm:$0xf0]  ;;  %v4645_v0 = vor.u32 %v5267_v62, %v4644_v61 }
 0x62a   : > { %v1804_v12 = vmul.f32 %v1803_v7, %v1800_v8  ;;  %2125 = vmatpush.bf16.msrb.mxu1 %v4502_v63  ;;  %v4570_v7 = vor.u32 %v5249_v6, %v4569_v5  ;;  %v4565_v8 = vld [vmem:[#allocation3 + $0xb40] sm:$0xf]  ;;  %v5256_v59 = vld [vmem:[#allocation3 + $0xbe4] sm:$0xf0] }
 0x62b   : > { %v4600_v60 = vor.u32 %v5256_v59, %v4599_v58  ;;  %v4640_v63 = vld [vmem:[#allocation3 + $0xc80] sm:$0xf] }
 0x62c   : > { %v1806_v13 = vadd.f32 %v1805_v10, %v1804_v12  ;;  %v4566_v10 = vor.u32 %v5248_v9, %v4565_v8  ;;  %v4641_v2 = vor.u32 %v5266_v1, %v4640_v63  ;;  %v5264_v8 = vld [vmem:[#allocation3 + $0xc64] sm:$0xf0] }
 0x62d   : > { %v1788_v15 = vpop.f32.mrf.mxu3  ;;  %2281 = vmatpush.bf16.msra.mxu0 %v4574_v4  ;;  %v5265_v4 = vld [vmem:[#allocation3 + $0xc74] sm:$0xf0] }
 0x62e   : > { %v1807_v16 = vmax.f32 %v1806_v13, 0.0  ;;  %v4637_v6 = vor.u32 %v5265_v4, %v4636_v3 }
 0x630   : > { %1808 = vst [vmem:[#allocation2 + $0x1] sm:$0xf] %v1807_v16 }
 0x631   : > { %1809 = vst [vmem:[#allocation2 - $0x1] sm:$0x2] %v1807_v16  ;;  %2282 = vmatpush.bf16.msra.mxu0 %v4570_v7  ;;  %v4632_v7 = vld [vmem:[#allocation3 + $0xc60] sm:$0xf] }
 0x632   : > { %1810 = vst [vmem:[#allocation2 + $0x3] sm:$0x4] %v1807_v16  ;;  %v4633_v9 = vor.u32 %v5264_v8, %v4632_v7 }
 0x635   : > { %2283 = vmatpush.bf16.msra.mxu0 %v4566_v10  ;;  %v4628_v10 = vld [vmem:[#allocation3 + $0xc50] sm:$0xf] }
 0x637   : > { %v1812_v17 = vld [vmem:[#allocation2 + $0x1] sm:$0xf] }
 0x638   : > { %v1811_v18 = vld [vmem:[#allocation2] sm:$0xf]  ;;  %v1863_v19 = vpack.c.bf16 %v1812_v17, %v1812_v17 }
 0x639   : > { %v1862_v20 = vpack.c.bf16 %v1811_v18, %v1811_v18  ;;  %v1813_v21 = vld [vmem:[#allocation2 + $0x2] sm:$0xf]  ;;  %v2048_v17 = vld [vmem:[#allocation5 + $0x20] ss:$0 sm:$0xff] }
 0x63a   : > { %2030 = vmatmul.bf16.vlgmr.msrb.gmra.mxu0 %v1863_v19  ;;  %v1864_v22 = vpack.c.bf16 %v1813_v21, %v1813_v21  ;;  %2132 = vst [vmem:[#allocation2 + $0x4] sm:$0x1] %v5591_v14  ;;  %v2050_v19 = vld [vmem:[#allocation5 + $0x21] ss:$0 sm:$0xff] }
 0x63b   : > { %2017 = vmatmul.bf16.vlgmr.msra.gmra.mxu2 %v1862_v20 }
 0x63c   : > { %2043 = vmatmul.bf16.vlgmr.msrb.gmra.mxu3 %v1864_v22 }
 0x6b7   : > { %v2031_v11 = vpop.f32.mrf.mxu0 }
 0x6be   : > { %v2018_v12 = vpop.f32.mrf.mxu2 }
 0x6bf   : > { %v2032_v13 = vadd.f32 %v2031_v11, %v2018_v12  ;;  %v2044_v15 = vpop.f32.mrf.mxu3  ;;  %v2033_v16 = vpop.f32.mrf.mxu0  ;;  %v5263_v11 = vld [vmem:[#allocation3 + $0xc54] sm:$0xf0] }
 0x6c0   : > { %v5262_v16 = vld [vmem:[#allocation3 + $0xc44] sm:$0xf0] }
 0x6c1   : > { %v2045_v18 = vadd.f32 %v2044_v15, %v2032_v13  ;;  %v4629_v13 = vor.u32 %v5263_v11, %v4628_v10  ;;  %v4624_v15 = vld [vmem:[#allocation3 + $0xc40] sm:$0xf]  ;;  %v4686_v11 = vld [vmem:[#allocation3 + $0xd30] sm:$0xf] }
 0x6c3   : > { %v2049_v20 = vmul.f32 %v2048_v17, %v2045_v18  ;;  %v4625_v17 = vor.u32 %v5262_v16, %v4624_v15  ;;  %v4620_v18 = vld [vmem:[#allocation3 + $0xc30] sm:$0xf]  ;;  %v4682_v15 = vld [vmem:[#allocation3 + $0xd20] sm:$0xf]  ;;  %v5276_v16 = vld [vmem:[#allocation3 + $0xd24] sm:$0xf0] }
 0x6c5   : > { %v2051_v21 = vadd.f32 %v2050_v19, %v2049_v20  ;;  %v5261_v19 = vld [vmem:[#allocation3 + $0xc34] sm:$0xf0] }
 0x6c6   : > { %v2020_v22 = vpop.f32.mrf.mxu2 }
 0x6c7   : > { %v2052_v23 = vadd.f32 %v2051_v21, %v5714_v37  ;;  %v2046_v24 = vpop.f32.mrf.mxu3  ;;  %v4612_v37 = vor.u32 %v5259_v34, %v4611_v33  ;;  %v4621_v22 = vor.u32 %v5261_v19, %v4620_v18  ;;  %v2477_v34 = vld [vmem:[#allocation5 + $0x25] ss:$0 sm:$0xff]  ;;  %v4678_v18 = vld [vmem:[#allocation3 + $0xd10] sm:$0xf]  ;;  %v5275_v19 = vld [vmem:[#allocation3 + $0xd14] sm:$0xf0] }
 0x6c9   : > { %2131 = vst [vmem:[#allocation2] sm:$0xf] %v2052_v23  ;;  %v2053_v25 = vpack.c.bf16 %v2052_v23, %v2052_v23 }
 0x6cb   : > { %2126 = vmatmul.bf16.vlgmr.msrb.gmra.mxu1 %v2053_v25  ;;  %2271 = vmatmul.bf16.vlgmr.msrb.gmra.mxu2 %v2053_v25 }
 0x6d0   : > { %v2133_v26 = vld [vmem:[#allocation2 + $0x1] sm:$0xf] }
 0x6d1   : > { %v2166_v27 = vpack.c.bf16 %v2133_v26, %v2133_v26  ;;  %v4616_v26 = vld [vmem:[#allocation3 + $0xc20] sm:$0xf] }
 0x6d3   : > { %2284 = vmatmul.bf16.vlgmr.msra.gmra.mxu0 %v2166_v27  ;;  %v5260_v27 = vld [vmem:[#allocation3 + $0xc24] sm:$0xf0] }
 0x748   : > { %v2127_v29 = vpop.f32.mrf.mxu1 }
 0x749   : > { %v2290_v31 = vmul.f32 %v2289_v28, %v2127_v29 }
 0x74b   : > { %v2292_v32 = vadd.f32 %v2291_v30, %v2290_v31 }
 0x74d   : > { %v2293_v35 = vmax.f32 %v2292_v32, 0.0  ;;  %v2475_v32 = vld [vmem:[#allocation5 + $0x24] ss:$0 sm:$0xff] }
 0x74e   : > { %v2272_v36 = vpop.f32.mrf.mxu2 }
 0x74f   : > { %v2299_v38 = vpack.c.bf16 %v2293_v35, %v2293_v35 }
 0x750   : > { %v2129_v39 = vpop.f32.mrf.mxu1  ;;  %v2285_v40 = vpop.f32.mrf.mxu0 }
 0x751   : > { %v2286_v41 = vadd.f32 %v2285_v40, %v2272_v36  ;;  %v2325_v43 = vsel %vm2304_vm4, %v2299_v38, 0 }
 0x752   : > { %2334 = vmatpush.bf16.msra.mxu1 %v2325_v43  ;;  %v5268_v43 = vld [vmem:[#allocation3 + $0xca4] sm:$0xf0] }
 0x753   : > { %v2294_v45 = vmul.f32 %v2289_v28, %v2286_v41  ;;  %v4617_v28 = vor.u32 %v5260_v27, %v4616_v26  ;;  %v4653_v41 = vld [vmem:[#allocation3 + $0xca0] sm:$0xf] }
 0x754   : > { %v4706_v27 = vld [vmem:[#allocation3 + $0xd80] sm:$0xf] }
 0x755   : > { %v2295_v46 = vadd.f32 %v2294_v45, %v2291_v30  ;;  %4596 = vmatmul.msk.bf16.vlgmr.msra.gmra.mxu1 %vm206_vm0, %v2297_v44  ;;  %v4654_v44 = vor.u32 %v5268_v43, %v4653_v41  ;;  %v4698_v43 = vld [vmem:[#allocation3 + $0xd60] sm:$0xf] }
 0x756   : > { %2380 = vmatpush.bf16.msrb.mxu1 %v4612_v37  ;;  %v2274_v49 = vpop.f32.mrf.mxu2 }
 0x757   : > { %v2296_v42 = vmax.f32 %v2295_v46, 0.0 }
 0x758   : > { %v2287_v50 = vpop.f32.mrf.mxu0 }
 0x759   : > { %v2300_v51 = vpack.c.bf16 %v2296_v42, %v2296_v42  ;;  %v4648_v50 = vld [vmem:[#allocation3 + $0xcb0] sm:$0xf] }
 0x75a   : > { %2381 = vmatpush.bf16.msrb.mxu1 %v4608_v48 }
 0x75b   : > { %v2306_v52 = vsel %vm2304_vm4, %v2300_v51, 0  ;;  %v5269_v51 = vld [vmem:[#allocation3 + $0xcb4] sm:$0xf0]  ;;  %vm2544_vm4 = vcmask 260102  }
 0x75c   : > { %2315 = vmatpush.bf16.msra.mxu3 %v2306_v52  ;;  %v4649_v54 = vor.u32 %v5269_v51, %v4648_v50  ;;  %v4694_v50 = vld [vmem:[#allocation3 + $0xd50] sm:$0xf]  ;;  %v5279_v51 = vld [vmem:[#allocation3 + $0xd54] sm:$0xf0] }
 0x75e   : > { %2382 = vmatpush.bf16.msrb.mxu1 %v4604_v57 }
 0x75f   : > { %4595 = vmatmul.msk.bf16.vlgmr.msra.gmra.mxu3 %vm206_vm0, %v2298_v53 }
 0x760   : > { %2462 = vmatpush.bf16.msrb.mxu3 %v4645_v0 }
 0x762   : > { %2383 = vmatpush.bf16.msrb.mxu1 %v4600_v60 }
 0x764   : > { %2463 = vmatpush.bf16.msrb.mxu3 %v4641_v2 }
 0x768   : > { %2464 = vmatpush.bf16.msrb.mxu3 %v4637_v6 }
 0x76c   : > { %2465 = vmatpush.bf16.msrb.mxu3 %v4633_v9 }
 0x770   : > { %2466 = vmatpush.bf16.msrb.mxu3 %v4629_v13 }
 0x774   : > { %2467 = vmatpush.bf16.msrb.mxu3 %v4625_v17  ;;  %v4683_v17 = vor.u32 %v5276_v16, %v4682_v15 }
 0x778   : > { %2468 = vmatpush.bf16.msrb.mxu3 %v4621_v22  ;;  %v5274_v22 = vld [vmem:[#allocation3 + $0xd04] sm:$0xf0] }
 0x77c   : > { %2469 = vmatpush.bf16.msrb.mxu3 %v4617_v28  ;;  %v5282_v28 = vld [vmem:[#allocation3 + $0xd84] sm:$0xf0] }
 0x7d2   : > { %v2336_v5 = vpop.f32.mrf.mxu1 }
 0x7da   : > { %v2338_v12 = vpop.f32.mrf.mxu1 }
 0x7db   : > { %v5277_v12 = vld [vmem:[#allocation3 + $0xd34] sm:$0xf0] }
 0x7dc   : > { %v4687_v13 = vor.u32 %v5277_v12, %v4686_v11 }
 0x7de   : > { %2735 = vmatpush.bf16.msra.mxu2 %v4687_v13 }
 0x7e2   : > { %v2317_v20 = vpop.f32.mrf.mxu3  ;;  %2736 = vmatpush.bf16.msra.mxu2 %v4683_v17 }
 0x7e3   : > { %v2337_v21 = vadd.f32 %v2336_v5, %v2317_v20  ;;  %v4679_v20 = vor.u32 %v5275_v19, %v4678_v18 }
 0x7e5   : > { %v2340_v23 = vpack.c.bf16 %v2337_v21, %v2337_v21  ;;  %2389 = vst.msk [vmem:[#allocation2] sm:$0xff] %vm366_vm1, %v2337_v21 }
 0x7e6   : > { %2737 = vmatpush.bf16.msra.mxu2 %v4679_v20 }
 0x7e7   : > { %4613 = vmatmul.msk.bf16.vlgmr.msrb.gmra.mxu1 %vm366_vm1, %v2340_v23  ;;  %v4710_v23 = vld [vmem:[#allocation3 + $0xd90] sm:$0xf] }
 0x7ea   : > { %v2319_v24 = vpop.f32.mrf.mxu3 }
 0x7eb   : > { %v5283_v24 = vld [vmem:[#allocation3 + $0xd94] sm:$0xf0] }
 0x7ec   : > { %v2391_v25 = vld [vmem:[#allocation2 + $0x1] sm:$0xff]  ;;  %v4711_v26 = vor.u32 %v5283_v24, %v4710_v23 }
 0x7ed   : > { %2393 = vrot.lane.b32.xlu0 %v2391_v25, %s5597_s13  ;;  %v2763_v24 = vld [vmem:[#allocation5 + $0x26] ss:$0 sm:$0xff] }
 0x85f   : > { %v2394_v29 = vpop.permute.xlu0 %2393 }
 0x860   : > { %v2396_v30 = vsel %vm366_vm1, %v2337_v21, %v2394_v29  ;;  %v4674_v21 = vld [vmem:[#allocation3 + $0xd00] sm:$0xf]  ;;  %v4670_v29 = vld [vmem:[#allocation3 + $0xcf0] sm:$0xf] }
 0x861   : > { %v2413_v31 = vpack.c.bf16 %v2396_v30, %v2396_v30  ;;  %v4675_v25 = vor.u32 %v5274_v22, %v4674_v21  ;;  %v5273_v30 = vld [vmem:[#allocation3 + $0xcf4] sm:$0xf0] }
 0x863   : > { %2470 = vmatmul.bf16.vlgmr.msrb.gmra.mxu3 %v2413_v31  ;;  %v4707_v31 = vor.u32 %v5282_v28, %v4706_v27  ;;  %2738 = vmatpush.bf16.msra.mxu2 %v4675_v25 }
 0x864   : > { %v2385_v33 = vpop.f32.mrf.mxu1 }
 0x865   : > { %v2476_v35 = vmul.f32 %v2475_v32, %v2385_v33  ;;  %v5281_v33 = vld [vmem:[#allocation3 + $0xd74] sm:$0xf0] }
 0x867   : > { %v2478_v36 = vadd.f32 %v2477_v34, %v2476_v35  ;;  %v4666_v35 = vld [vmem:[#allocation3 + $0xce0] sm:$0xf] }
 0x869   : > { %v2479_v38 = vmax.f32 %v2478_v36, 0.0  ;;  %v5272_v36 = vld [vmem:[#allocation3 + $0xce4] sm:$0xf0] }
 0x86b   : > { %v2487_v37 = vpack.c.bf16 %v2479_v38, %v2479_v38 }
 0x86c   : > { %v2387_v39 = vpop.f32.mrf.mxu1 }
 0x86d   : > { %v2524_v40 = vsel %vm2497_vm5, %v2487_v37, 0  ;;  %v4667_v37 = vor.u32 %v5272_v36, %v4666_v35  ;;  %v4662_v39 = vld [vmem:[#allocation3 + $0xcd0] sm:$0xf] }
 0x86e   : > { %2533 = vmatpush.bf16.msra.mxu1 %v2524_v40  ;;  %v5271_v40 = vld [vmem:[#allocation3 + $0xcd4] sm:$0xf0] }
 0x86f   : > { %v4663_v41 = vor.u32 %v5271_v40, %v4662_v39 }
 0x871   : > { %4655 = vmatmul.msk.bf16.vlgmr.msra.gmra.mxu1 %vm285_vm9, %v4654_v44  ;;  %v5280_v44 = vld [vmem:[#allocation3 + $0xd64] sm:$0xf0] }
 0x8e6   : > { %v2471_v45 = vpop.f32.mrf.mxu3 }
 0x8e7   : > { %v2480_v46 = vmul.f32 %v2475_v32, %v2471_v45  ;;  %v4702_v32 = vld [vmem:[#allocation3 + $0xd70] sm:$0xf]  ;;  %v4699_v45 = vor.u32 %v5280_v44, %v4698_v43 }
 0x8e8   : > { %v4703_v38 = vor.u32 %v5281_v33, %v4702_v32 }
 0x8e9   : > { %v2481_v49 = vadd.f32 %v2480_v46, %v2477_v34  ;;  %v4671_v34 = vor.u32 %v5273_v30, %v4670_v29  ;;  %v4658_v46 = vld [vmem:[#allocation3 + $0xcc0] sm:$0xf] }
 0x8eb   : > { %v2482_v42 = vmax.f32 %v2481_v49, 0.0  ;;  %2739 = vmatpush.bf16.msra.mxu2 %v4671_v34  ;;  %v5270_v49 = vld [vmem:[#allocation3 + $0xcc4] sm:$0xf0] }
 0x8ed   : > { %v2488_v52 = vpack.c.bf16 %v2482_v42, %v2482_v42  ;;  %v4659_v42 = vor.u32 %v5270_v49, %v4658_v46 }
 0x8ee   : > { %v2473_v53 = vpop.f32.mrf.mxu3  ;;  %v2535_v55 = vpop.f32.mrf.mxu1 }
 0x8ef   : > { %v2499_v47 = vsel %vm2497_vm5, %v2488_v52, 0  ;;  %vm2548_vm5 = vcmask 259077   ;;  %2740 = vmatpush.bf16.msra.mxu2 %v4667_v37  ;;  %v4695_v52 = vor.u32 %v5279_v51, %v4694_v50  ;;  %v4690_v53 = vld [vmem:[#allocation3 + $0xd40] sm:$0xf] }
 0x8f0   : > { %2508 = vmatpush.bf16.msrb.mxu0 %v2499_v47  ;;  %v5278_v47 = vld [vmem:[#allocation3 + $0xd44] sm:$0xf0] }
 0x8f3   : > { %4650 = vmatmul.msk.bf16.vlgmr.msrb.gmra.mxu0 %vm285_vm9, %v4649_v54  ;;  %2741 = vmatpush.bf16.msra.mxu2 %v4663_v41  ;;  %v4691_v54 = vor.u32 %v5278_v47, %v4690_v53 }
 0x8f4   : > { %2751 = vmatpush.bf16.msra.mxu0 %v4711_v26  ;;  %v2766_v26 = vld [vmem:[#allocation5 + $0x27] ss:$0 sm:$0xff] }
 0x8f6   : > { %v2537_v58 = vpop.f32.mrf.mxu1 }
 0x8f7   : > { %2742 = vmatpush.bf16.msra.mxu2 %v4659_v42 }
 0x8f8   : > { %2752 = vmatpush.bf16.msra.mxu0 %v4707_v31 }
 0x8fc   : > { %2753 = vmatpush.bf16.msra.mxu0 %v4703_v38 }
 0x900   : > { %2754 = vmatpush.bf16.msra.mxu0 %v4699_v45 }
 0x904   : > { %2755 = vmatpush.bf16.msra.mxu0 %v4695_v52 }
 0x908   : > { %2756 = vmatpush.bf16.msra.mxu0 %v4691_v54 }
 0x970   : > { %v2510_v48 = vpop.f32.mrf.mxu0 }
 0x971   : > { %v2536_v56 = vadd.f32 %v2535_v55, %v2510_v48 }
 0x973   : > { %2543 = vst.msk [vmem:[#allocation2 - $0x3] sm:$0x8] %vm2542_vm6, %v2536_v56 }
 0x974   : > { %2540 = vst.msk [vmem:[#allocation2 + $0x3] sm:$0xff] %vm346_vm15, %v2536_v56 }
 0x975   : > { %2551 = vst.msk [vmem:[#allocation2 + $0x1] sm:$0x2] %vm2550_vm7, %v2536_v56 }
 0x976   : > { %2547 = vst.msk [vmem:[#allocation2 - $0x1] sm:$0x4] %vm2546_vm3, %v2536_v56 }
 0x978   : > { %v2512_v57 = vpop.f32.mrf.mxu0 }
 0x979   : > { %v2538_v59 = vadd.f32 %v2537_v58, %v2512_v57 }
 0x97b   : > { %2545 = vst.msk [vmem:[#allocation2 + $0xd] sm:$0x40] %vm2544_vm4, %v2538_v59  ;;  %v2560_v62 = vld [vmem:[#allocation2 + $0x3] sm:$0xff] }
 0x97c   : > { %2549 = vst.msk [vmem:[#allocation2 + $0xf] sm:$0x20] %vm2548_vm5, %v2538_v59  ;;  %v2558_v60 = vld [vmem:[#allocation2 + $0x2] sm:$0xff] }
 0x97d   : > { %2553 = vst.msk [vmem:[#allocation2 + $0x11] sm:$0x10] %vm2552_vm14, %v2538_v59  ;;  %v2556_v61 = vld [vmem:[#allocation2 + $0x1] sm:$0xff]  ;;  %vm2773_vm14 = vcmask 26624  }
 0x97e   : > { %2541 = vst.msk [vmem:[#allocation2 + $0xb] sm:$0xff] %vm346_vm15, %v2538_v59 }
 0x985   : > { %v2559_v63 = vld [vmem:[#allocation2 + $0xa] sm:$0xff] }
 0x986   : > { %v2557_v0 = vld [vmem:[#allocation2 + $0x9] sm:$0xff]  ;;  %v5454_v2 = vpack.i.bf16 %v2559_v63, %v2558_v60 }
 0x987   : > { %v2561_v1 = vld [vmem:[#allocation2 + $0xb] sm:$0xff]  ;;  %v5449_v3 = vpack.i.bf16 %v2557_v0, %v2556_v61  ;;  %v2554_v61 = vld [vmem:[#allocation2] sm:$0xff] }
 0x988   : > { %v5459_v4 = vpack.i.bf16 %v2561_v1, %v2560_v62  ;;  %5455 = vrot.lane.b32.xlu2 %v5454_v2, %s5597_s13  ;;  %v2566_v5 = vld [vmem:[#allocation2 + $0x6] sm:$0xff]  ;;  %v2567_v6 = vld [vmem:[#allocation2 + $0xe] sm:$0xff]  ;;  %2774 = vst.msk [vmem:[#allocation2] sm:$0x7] %vm2773_vm14, %v5591_v14 }
 0x989   : > { %5450 = vrot.lane.b32.xlu1 %v5449_v3, %s5598_s14  ;;  %v2564_v7 = vld [vmem:[#allocation2 + $0x5] sm:$0xff]  ;;  %v2565_v8 = vld [vmem:[#allocation2 + $0xd] sm:$0xff]  ;;  %v5469_v9 = vpack.i.bf16 %v2567_v6, %v2566_v5 }
 0x98a   : > { %5460 = vrot.lane.b32.xlu0 %v5459_v4, %s5599_s15  ;;  %v5464_v10 = vpack.i.bf16 %v2565_v8, %v2564_v7  ;;  %v2555_v62 = vld [vmem:[#allocation2 + $0x8] sm:$0xff] }
 0x98b   : > { %v2562_v15 = vld [vmem:[#allocation2 + $0x4] sm:$0xff]  ;;  %v2563_v16 = vld [vmem:[#allocation2 + $0xc] sm:$0xff] }
 0x98c   : > { %2775 = vst.msk [vmem:[#allocation2 + $0x13] sm:$0x7] %vm2773_vm14, %v5591_v14 }
 0x990   : > { %5470 = vrot.lane.b32.xlu2 %v5469_v9, %s5597_s13 }
 0x991   : > { %5465 = vrot.lane.b32.xlu1 %v5464_v10, %s5598_s14 }
 0x9e2   : > { %v5456_v55 = vpop.permute.xlu2 %5455 }
 0x9e3   : > { %v5458_v59 = vunpack.i.h.bf16 %v5456_v55  ;;  %v5457_v60 = vunpack.i.l.bf16 %v5456_v55  ;;  %v4719_v55 = vld [vmem:[#allocation3 + $0xdb0] sm:$0xf] }
 0x9ea   : > { %v5471_v8 = vpop.permute.xlu2 %5470 }
 0x9eb   : > { %v5473_v12 = vunpack.i.h.bf16 %v5471_v8  ;;  %v5472_v13 = vunpack.i.l.bf16 %v5471_v8 }
 0x9fb   : > { %v5451_v48 = vpop.permute.xlu1 %5450 }
 0x9fc   : > { %v5453_v56 = vunpack.i.h.bf16 %v5451_v48  ;;  %v5452_v57 = vunpack.i.l.bf16 %v5451_v48  ;;  %v5461_v58 = vpop.permute.xlu0 %5460  ;;  %v5285_v48 = vld [vmem:[#allocation3 + $0xdb4] sm:$0x30] }
 0x9fd   : > { %v5463_v1 = vunpack.i.h.bf16 %v5461_v58  ;;  %v5462_v2 = vunpack.i.l.bf16 %v5461_v58  ;;  %v4715_v58 = vld [vmem:[#allocation3 + $0xda0] sm:$0xf] }
 0x9fe   : > { %v2608_v63 = vsel %vm346_vm15, %v2554_v61, %v5452_v57  ;;  %v2609_v0 = vsel %vm346_vm15, %v2555_v62, %v5453_v56  ;;  %v4720_v56 = vor.u32 %v5285_v48, %v4719_v55  ;;  %v4796_v48 = vld [vmem:[#allocation3 + $0xee0] sm:$0xf] }
 0x9ff   : > { %v2610_v3 = vsel %vm366_vm1, %v2608_v63, %v5457_v60  ;;  %v2611_v4 = vsel %vm366_vm1, %v2609_v0, %v5458_v59  ;;  %v5284_v59 = vld [vmem:[#allocation3 + $0xda4] sm:$0xf0] }
 0xa00   : > { %v2612_v5 = vsel %vm417_vm2, %v2610_v3, %v5462_v2  ;;  %v2613_v6 = vsel %vm417_vm2, %v2611_v4, %v5463_v1  ;;  %v2870_v57 = vsel %vm320_vm8, %v4720_v56, 0  ;;  %v4716_v60 = vor.u32 %v5284_v59, %v4715_v58  ;;  %v5304_v56 = vld [vmem:[#allocation3 + $0xee4] sm:$0x30]  ;;  %v4740_v59 = vld [vmem:[#allocation3 + $0xe00] sm:$0xf] }
 0xa01   : > { %v2646_v7 = vpack.c.bf16 %v2613_v6, %v2612_v5  ;;  %2878 = vmatpush.bf16.msrb.mxu1 %v2870_v57 }
 0xa03   : > { %v5466_v9 = vpop.permute.xlu1 %5465  ;;  %2743 = vmatmul.bf16.vlgmr.msra.gmra.mxu2 %v2646_v7 }
 0xa04   : > { %v5468_v10 = vunpack.i.h.bf16 %v5466_v9  ;;  %v5467_v11 = vunpack.i.l.bf16 %v5466_v9 }
 0xa05   : > { %2879 = vmatpush.bf16.msrb.mxu1 %v4716_v60  ;;  %v5290_v60 = vld [vmem:[#allocation3 + $0xe04] sm:$0xf0] }
 0xa06   : > { %v2615_v17 = vsel %vm346_vm15, %v2563_v16, %v5468_v10  ;;  %v2614_v18 = vsel %vm346_vm15, %v2562_v15, %v5467_v11 }
 0xa07   : > { %v2617_v19 = vsel %vm366_vm1, %v2615_v17, %v5473_v12  ;;  %v2616_v20 = vsel %vm366_vm1, %v2614_v18, %v5472_v13 }
 0xa08   : > { %v2647_v21 = vpack.c.bf16 %v2617_v19, %v2616_v20 }
 0xa0a   : > { %4712 = vmatmul.msk.bf16.vlgmr.msra.gmra.mxu0 %vm417_vm2, %v2647_v21 }
 0xa86   : > { %v2744_v22 = vpop.f32.mrf.mxu2 }
 0xa87   : > { %v2758_v23 = vpop.f32.mrf.mxu0 }
 0xa88   : > { %v2759_v25 = vadd.f32 %v2758_v23, %v2744_v22 }
 0xa8a   : > { %v2764_v27 = vmul.f32 %v2763_v24, %v2759_v25 }
 0xa8c   : > { %v2767_v28 = vadd.f32 %v2766_v26, %v2764_v27 }
 0xa8e   : > { %5504 = vtanh.f32 %v2767_v28  ;;  %v2746_v29 = vpop.f32.mrf.mxu2 }
 0xa8f   : > { %v2760_v30 = vpop.f32.mrf.mxu0 }
 0xa90   : > { %v2761_v31 = vadd.f32 %v2760_v30, %v2746_v29 }
 0xa92   : > { %v2765_v32 = vmul.f32 %v2763_v24, %v2761_v31  ;;  %v2886_v31 = vld [vmem:[#allocation5 + $0x30] ss:$0 sm:$0xff] }
 0xa94   : > { %v5505_v33 = vpop.eup %5504  ;;  %v2768_v34 = vadd.f32 %v2766_v26, %v2765_v32 }
 0xa95   : > { %2771 = vst.msk [vmem:[#allocation2 + $0x3] sm:$0xff] %vm206_vm0, %v5505_v33  ;;  %v2889_v33 = vld [vmem:[#allocation5 + $0x31] ss:$0 sm:$0xff] }
 0xa96   : > { %5506 = vtanh.f32 %v2768_v34 }
 0xa9c   : > { %v5507_v35 = vpop.eup %5506  ;;  %v2782_v36 = vld [vmem:[#allocation2 + $0x3] sm:$0xff] }
 0xa9d   : > { %2772 = vst.msk [vmem:[#allocation2 + $0xb] sm:$0xff] %vm206_vm0, %v5507_v35  ;;  %v2780_v38 = vld [vmem:[#allocation2 + $0x2] sm:$0xff]  ;;  %v4752_v35 = vld [vmem:[#allocation3 + $0xe30] sm:$0xf] }
 0xa9e   : > { %v2778_v37 = vld [vmem:[#allocation2 + $0x1] sm:$0xff] }
 0xa9f   : > { %v2776_v4 = vld [vmem:[#allocation2] sm:$0xff] }
 0xaa4   : > { %v2783_v39 = vld [vmem:[#allocation2 + $0xb] sm:$0xff] }
 0xaa5   : > { %v2781_v40 = vld [vmem:[#allocation2 + $0xa] sm:$0xff]  ;;  %v5484_v43 = vpack.i.bf16 %v2783_v39, %v2782_v36  ;;  %v5293_v36 = vld [vmem:[#allocation3 + $0xe34] sm:$0xf0] }
 0xaa6   : > { %v2779_v41 = vld [vmem:[#allocation2 + $0x9] sm:$0xff]  ;;  %v5479_v44 = vpack.i.bf16 %v2781_v40, %v2780_v38  ;;  %v5301_v39 = vld [vmem:[#allocation3 + $0xeb4] sm:$0xf0]  ;;  %v4748_v40 = vld [vmem:[#allocation3 + $0xe20] sm:$0xf] }
 0xaa7   : > { %v5474_v45 = vpack.i.bf16 %v2779_v41, %v2778_v37  ;;  %5485 = vrot.lane.b32.xlu2 %v5484_v43, %s5590_s6  ;;  %v2788_v46 = vld [vmem:[#allocation2 + $0x6] sm:$0xff]  ;;  %v2789_v49 = vld [vmem:[#allocation2 + $0xe] sm:$0xff]  ;;  %v4753_v37 = vor.u32 %v5293_v36, %v4752_v35  ;;  %v4724_v35 = vld [vmem:[#allocation3 + $0xdc0] sm:$0xf] }
 0xaa8   : > { %5480 = vrot.lane.b32.xlu1 %v5479_v44, %s5596_s11  ;;  %v2786_v42 = vld [vmem:[#allocation2 + $0x5] sm:$0xff]  ;;  %v2787_v50 = vld [vmem:[#allocation2 + $0xd] sm:$0xff]  ;;  %v5499_v53 = vpack.i.bf16 %v2789_v49, %v2788_v46 }
 0xaa9   : > { %5475 = vrot.lane.b32.xlu0 %v5474_v45, %s5593_s8  ;;  %v2784_v51 = vld [vmem:[#allocation2 + $0x4] sm:$0xff]  ;;  %v2785_v52 = vld [vmem:[#allocation2 + $0xc] sm:$0xff]  ;;  %v5494_v47 = vpack.i.bf16 %v2787_v50, %v2786_v42  ;;  %v4780_v45 = vld [vmem:[#allocation3 + $0xea0] sm:$0xf]  ;;  %3079 = vmatpush.bf16.msra.mxu3 %v4753_v37 }
 0xaaa   : > { %v5489_v54 = vpack.i.bf16 %v2785_v52, %v2784_v51  ;;  %v2777_v5 = vld [vmem:[#allocation2 + $0x8] sm:$0xff]  ;;  %v4784_v38 = vld [vmem:[#allocation3 + $0xeb0] sm:$0xf]  ;;  %v5291_v52 = vld [vmem:[#allocation3 + $0xe14] sm:$0xf0] }
 0xaab   : > { %v5292_v41 = vld [vmem:[#allocation3 + $0xe24] sm:$0xf0]  ;;  %v4785_v44 = vor.u32 %v5301_v39, %v4784_v38  ;;  %v4744_v51 = vld [vmem:[#allocation3 + $0xe10] sm:$0xf]  ;;  %v4756_v38 = vld [vmem:[#allocation3 + $0xe40] sm:$0xf] }
 0xaac   : > { %v5300_v46 = vld [vmem:[#allocation3 + $0xea4] sm:$0xf0]  ;;  %v4749_v49 = vor.u32 %v5292_v41, %v4748_v40  ;;  %v4745_v55 = vor.u32 %v5291_v52, %v4744_v51  ;;  %v4857_v52 = vld [vmem:[#allocation3 + $0xf60] sm:$0xf] }
 0xaad   : > { %3092 = vmatpush.bf16.msra.mxu1 %v4785_v44  ;;  %v4781_v50 = vor.u32 %v5300_v46, %v4780_v45  ;;  %v5286_v36 = vld [vmem:[#allocation3 + $0xdc4] sm:$0xf0] }
 0xaae   : > { %3080 = vmatpush.bf16.msra.mxu3 %v4749_v49  ;;  %v5294_v37 = vld [vmem:[#allocation3 + $0xe44] sm:$0xf0] }
 0xaaf   : > { %5500 = vrot.lane.b32.xlu2 %v5499_v53, %s5595_s10  ;;  %v4776_v53 = vld [vmem:[#allocation3 + $0xe90] sm:$0xf]  ;;  %v4757_v39 = vor.u32 %v5294_v37, %v4756_v38 }
 0xab0   : > { %5495 = vrot.lane.b32.xlu1 %v5494_v47, %s5592_s7  ;;  %v5299_v47 = vld [vmem:[#allocation3 + $0xe94] sm:$0xf0] }
 0xab1   : > { %5490 = vrot.lane.b32.xlu0 %v5489_v54, %s5594_s9  ;;  %3093 = vmatpush.bf16.msra.mxu1 %v4781_v50  ;;  %v4777_v58 = vor.u32 %v5299_v47, %v4776_v53  ;;  %v5320_v53 = vld [vmem:[#allocation3 + $0xf64] sm:$0xf0]  ;;  %v4849_v47 = vld [vmem:[#allocation3 + $0xf50] sm:$0xf] }
 0xab2   : > { %3081 = vmatpush.bf16.msra.mxu3 %v4745_v55  ;;  %v5318_v55 = vld [vmem:[#allocation3 + $0xf54] sm:$0xf0] }
 0xab5   : > { %3094 = vmatpush.bf16.msra.mxu1 %v4777_v58 }
 0xb01   : > { %v5486_v61 = vpop.permute.xlu2 %5485 }
 0xb02   : > { %v5488_v11 = vunpack.i.h.bf16 %v5486_v61  ;;  %v5487_v12 = vunpack.i.l.bf16 %v5486_v61  ;;  %v4772_v61 = vld [vmem:[#allocation3 + $0xe80] sm:$0xf] }
 0xb09   : > { %v5501_v13 = vpop.permute.xlu2 %5500 }
 0xb0a   : > { %v5503_v22 = vunpack.i.h.bf16 %v5501_v13  ;;  %v5502_v23 = vunpack.i.l.bf16 %v5501_v13  ;;  %v5297_v13 = vld [vmem:[#allocation3 + $0xe74] sm:$0xf0] }
 0xb1a   : > { %v5481_v62 = vpop.permute.xlu1 %5480 }
 0xb1b   : > { %v5476_v63 = vpop.permute.xlu0 %5475  ;;  %v5483_v2 = vunpack.i.h.bf16 %v5481_v62  ;;  %v5482_v3 = vunpack.i.l.bf16 %v5481_v62  ;;  %v4797_v62 = vor.u32 %v5304_v56, %v4796_v48 }
 0xb1c   : > { %v5478_v0 = vunpack.i.h.bf16 %v5476_v63  ;;  %v5477_v1 = vunpack.i.l.bf16 %v5476_v63  ;;  %v5298_v63 = vld [vmem:[#allocation3 + $0xe84] sm:$0xf0] }
 0xb1e   : > { %v2838_v6 = vsel %vm206_vm0, %v2776_v4, %v5477_v1  ;;  %v2839_v7 = vsel %vm206_vm0, %v2777_v5, %v5478_v0  ;;  %vm5806_vm0 = vcmask 228352   ;;  %v4792_v0 = vld [vmem:[#allocation3 + $0xed0] sm:$0xf]  ;;  %v5303_v1 = vld [vmem:[#allocation3 + $0xed4] sm:$0xf0]  ;;  %v4741_v4 = vor.u32 %v5290_v60, %v4740_v59 }
 0xb1f   : > { %v2840_v8 = vsel %vm285_vm9, %v2838_v6, %v5482_v3  ;;  %v2841_v9 = vsel %vm285_vm9, %v2839_v7, %v5483_v2  ;;  %vm2894_vm9 = vcmask 818176   ;;  %v3077_v3 = vsel %vm320_vm8, %v4797_v62, 0  ;;  %v4736_v5 = vld [vmem:[#allocation3 + $0xdf0] sm:$0xf]  ;;  %v5289_v6 = vld [vmem:[#allocation3 + $0xdf4] sm:$0xf0] }
 0xb20   : > { %v2842_v20 = vsel %vm288_vm10, %v2840_v8, %v5487_v12  ;;  %v2843_v21 = vsel %vm288_vm10, %v2841_v9, %v5488_v11  ;;  %3110 = vmatpush.bf16.msrb.mxu0 %v3077_v3  ;;  %v4793_v7 = vor.u32 %v5303_v1, %v4792_v0  ;;  %v4773_v9 = vor.u32 %v5298_v63, %v4772_v61  ;;  %v5302_v11 = vld [vmem:[#allocation3 + $0xec4] sm:$0xf0]  ;;  %v4768_v12 = vld [vmem:[#allocation3 + $0xe70] sm:$0xf]  ;;  %v4841_v61 = vld [vmem:[#allocation3 + $0xf40] sm:$0xf] }
 0xb21   : > { %3082 = vmatpush.bf16.msra.mxu3 %v4741_v4  ;;  %vm2901_vm8 = vcmask 811008   ;;  %vm2916_vm10 = vcmask 588800   ;;  %v4850_v59 = vor.u32 %v5318_v55, %v4849_v47  ;;  %v5316_v62 = vld [vmem:[#allocation3 + $0xf44] sm:$0xf0]  ;;  %v4921_v63 = vld [vmem:[#allocation3 + $0xfe0] sm:$0xf] }
 0xb22   : > { %v5496_v10 = vpop.permute.xlu1 %5495  ;;  %3095 = vmatpush.bf16.msra.mxu1 %v4773_v9  ;;  %v5336_v1 = vld [vmem:[#allocation3 + $0xfe4] sm:$0xf0]  ;;  %v4913_v4 = vld [vmem:[#allocation3 + $0xfd0] sm:$0xf]  ;;  %v5314_v9 = vld [vmem:[#allocation3 + $0xf34] sm:$0xf0] }
 0xb23   : > { %v5498_v15 = vunpack.i.h.bf16 %v5496_v10  ;;  %v5497_v16 = vunpack.i.l.bf16 %v5496_v10  ;;  %v5491_v17 = vpop.permute.xlu0 %5490  ;;  %v4788_v10 = vld [vmem:[#allocation3 + $0xec0] sm:$0xf]  ;;  %v4922_v3 = vor.u32 %v5336_v1, %v4921_v63  ;;  %v4843_v47 = vld [vmem:[#allocation3 + $0xf48] sm:$0xf0]  ;;  %v4977_v55 = vld [vmem:[#allocation3 + $0x1050] sm:$0xf] }
 0xb24   : > { %v5493_v18 = vunpack.i.h.bf16 %v5491_v17  ;;  %v5492_v19 = vunpack.i.l.bf16 %v5491_v17  ;;  %3111 = vmatpush.bf16.msrb.mxu0 %v4793_v7  ;;  %v4769_v17 = vor.u32 %v5297_v13, %v4768_v12  ;;  %v4842_v7 = vor.u32 %v5316_v62, %v4841_v61  ;;  %v5332_v13 = vld [vmem:[#allocation3 + $0xfc4] sm:$0xf0]  ;;  %v5326_v61 = vld [vmem:[#allocation3 + $0xf94] sm:$0xf0]  ;;  %v4969_v63 = vld [vmem:[#allocation3 + $0x1040] sm:$0xf] }
 0xb25   : > { %v5311_v1 = vld [vmem:[#allocation3 + $0xf24] sm:$0xf] }
 0xb26   : > { %v2844_v24 = vsel %vm291_vm11, %v2842_v20, %v5492_v19  ;;  %v2845_v25 = vsel %vm291_vm11, %v2843_v21, %v5493_v18  ;;  %v4732_v18 = vld [vmem:[#allocation3 + $0xde0] sm:$0xf]  ;;  %v5288_v19 = vld [vmem:[#allocation3 + $0xde4] sm:$0xf0]  ;;  %3096 = vmatpush.bf16.msra.mxu1 %v4769_v17 }
 0xb27   : > { %v2846_v26 = vsel %vm294_vm12, %v2844_v24, %v5497_v16  ;;  %v2847_v27 = vsel %vm294_vm12, %v2845_v25, %v5498_v15  ;;  %v4737_v15 = vor.u32 %v5289_v6, %v4736_v5  ;;  %v4789_v16 = vor.u32 %v5302_v11, %v4788_v10  ;;  %v4764_v20 = vld [vmem:[#allocation3 + $0xe60] sm:$0xf]  ;;  %v5296_v21 = vld [vmem:[#allocation3 + $0xe64] sm:$0xf0]  ;;  %v4728_v24 = vld [vmem:[#allocation3 + $0xdd0] sm:$0xf] }
 0xb28   : > { %v2848_v28 = vsel %vm297_vm13, %v2846_v26, %v5502_v23  ;;  %v2849_v29 = vsel %vm297_vm13, %v2847_v27, %v5503_v22  ;;  %v4733_v22 = vor.u32 %v5288_v19, %v4732_v18  ;;  %v4765_v23 = vor.u32 %v5296_v21, %v4764_v20  ;;  %v5287_v25 = vld [vmem:[#allocation3 + $0xdd4] sm:$0xf0]  ;;  %v4760_v26 = vld [vmem:[#allocation3 + $0xe50] sm:$0xf]  ;;  %v4905_v11 = vld [vmem:[#allocation3 + $0xfc0] sm:$0xf] }
 0xb29   : > { %v2854_v30 = vpack.c.bf16 %v2849_v29, %v2848_v28  ;;  %3083 = vmatpush.bf16.msra.mxu3 %v4737_v15  ;;  %3112 = vmatpush.bf16.msrb.mxu0 %v4789_v16  ;;  %v5295_v29 = vld [vmem:[#allocation3 + $0xe54] sm:$0xf0]  ;;  %vm3072_vm12 = vcmask 359424   ;;  %v4985_v15 = vld [vmem:[#allocation3 + $0x1060] sm:$0xf]  ;;  %vm3127_vm13 = vcmask 814080  }
 0xb2a   : > { %3097 = vmatpush.bf16.msra.mxu1 %v4765_v23  ;;  %v5334_v5 = vld [vmem:[#allocation3 + $0xfd4] sm:$0xf0]  ;;  %v5352_v16 = vld [vmem:[#allocation3 + $0x1064] sm:$0xf0]  ;;  %v4825_v21 = vld [vmem:[#allocation3 + $0xf20] sm:$0xf]  ;;  %v4906_v23 = vor.u32 %v5332_v13, %v4905_v11 }
 0xb2b   : > { %4721 = vmatmul.msk.bf16.vlgmr.msrb.gmra.mxu1 %vm5806_vm0, %v2854_v30  ;;  %v4914_v10 = vor.u32 %v5334_v5, %v4913_v4  ;;  %v4986_v18 = vor.u32 %v5352_v16, %v4985_v15  ;;  %v4873_v4 = vld [vmem:[#allocation3 + $0xf80] sm:$0xf]  ;;  %v5324_v5 = vld [vmem:[#allocation3 + $0xf84] sm:$0xf0]  ;;  %v4993_v13 = vld [vmem:[#allocation3 + $0x1070] sm:$0xf] }
 0xb2c   : > { %v5354_v15 = vld [vmem:[#allocation3 + $0x1074] sm:$0xf0] }
 0xb2d   : > { %3084 = vmatpush.bf16.msra.mxu3 %v4733_v22  ;;  %3468 = vmatpush.bf16.msra.mxu0 %v4922_v3  ;;  %v5312_v22 = vld [vmem:[#allocation3 + $0xf24] sm:$0xf0]  ;;  %v4827_v3 = vld [vmem:[#allocation3 + $0xf28] sm:$0xf0] }
 0xb31   : > { %3469 = vmatpush.bf16.msra.mxu0 %v4914_v10  ;;  %v5309_v10 = vld [vmem:[#allocation3 + $0xf14] sm:$0xf] }
 0xb35   : > { %3470 = vmatpush.bf16.msra.mxu0 %v4906_v23  ;;  %v5344_v23 = vld [vmem:[#allocation3 + $0x1024] sm:$0xf0] }
 0xba8   : > { %v2881_v32 = vpop.f32.mrf.mxu1 }
 0xba9   : > { %v2887_v34 = vmul.f32 %v2886_v31, %v2881_v32  ;;  %v4761_v32 = vor.u32 %v5295_v29, %v4760_v26  ;;  %v4826_v26 = vor.u32 %v5312_v22, %v4825_v21  ;;  %v4923_v21 = vld [vmem:[#allocation3 + $0xfe8] sm:$0xf0]  ;;  %v4953_v22 = vld [vmem:[#allocation3 + $0x1020] sm:$0xf] }
 0xbab   : > { %v2890_v43 = vadd.f32 %v2889_v33, %v2887_v34  ;;  %3098 = vmatpush.bf16.msra.mxu1 %v4761_v32 }
 0xbad   : > { %v2892_v42 = vmax.f32 %v2890_v43, 0.0 }
 0xbaf   : > { %2895 = vst.msk [vmem:[#allocation2] sm:$0xff] %vm2894_vm9, %v2892_v42  ;;  %3099 = vmatpush.bf16.msra.mxu1 %v4757_v39  ;;  %v4801_v39 = vld [vmem:[#allocation3 + $0xef0] sm:$0xf] }
 0xbb0   : > { %v2883_v54 = vpop.f32.mrf.mxu1 }
 0xbb1   : > { %v2888_v57 = vmul.f32 %v2886_v31, %v2883_v54  ;;  %v4729_v31 = vor.u32 %v5287_v25, %v4728_v24  ;;  %v4858_v54 = vor.u32 %v5320_v53, %v4857_v52  ;;  %v4897_v24 = vld [vmem:[#allocation3 + $0xfb0] sm:$0xf]  ;;  %v5330_v25 = vld [vmem:[#allocation3 + $0xfb4] sm:$0xf0]  ;;  %v5315_v53 = vld [vmem:[#allocation3 + $0xf44] sm:$0xf] }
 0xbb2   : > { %v4898_v29 = vor.u32 %v5330_v25, %v4897_v24 }
 0xbb3   : > { %v2891_v2 = vadd.f32 %v2889_v33, %v2888_v57  ;;  %3085 = vmatpush.bf16.msra.mxu3 %v4729_v31  ;;  %v3118_v57 = vld [vmem:[#allocation5 + $0x32] ss:$0 sm:$0xff]  ;;  %3455 = vmatpush.bf16.msrb.mxu2 %v4858_v54  ;;  %v5328_v31 = vld [vmem:[#allocation3 + $0xfa4] sm:$0xf0]  ;;  %v4846_v54 = vor.u32 %v5315_v53, %v4843_v47  ;;  %v4971_v53 = vld [vmem:[#allocation3 + $0x1048] sm:$0xf0] }
 0xbb4   : > { %3471 = vmatpush.bf16.msra.mxu0 %v4898_v29  ;;  %v4954_v29 = vor.u32 %v5344_v23, %v4953_v22  ;;  %v5329_v47 = vld [vmem:[#allocation3 + $0xfb4] sm:$0xf] }
 0xbb5   : > { %v2893_v8 = vmax.f32 %v2891_v2, 0.0  ;;  %v3120_v2 = vld [vmem:[#allocation5 + $0x33] ss:$0 sm:$0xff]  ;;  %v5321_v23 = vld [vmem:[#allocation3 + $0xf74] sm:$0xf] }
 0xbb7   : > { %2896 = vst.msk [vmem:[#allocation2 + $0x8] sm:$0xff] %vm2894_vm9, %v2893_v8  ;;  %3456 = vmatpush.bf16.msrb.mxu2 %v4850_v59  ;;  %v4833_v8 = vld [vmem:[#allocation3 + $0xf30] sm:$0xf] }
 0xbb8   : > { %v4834_v20 = vor.u32 %v5314_v9, %v4833_v8  ;;  %v4961_v8 = vld [vmem:[#allocation3 + $0x1030] sm:$0xf]  ;;  %v5346_v9 = vld [vmem:[#allocation3 + $0x1034] sm:$0xf0] }
 0xbb9   : > { %v4962_v11 = vor.u32 %v5346_v9, %v4961_v8  ;;  %v5323_v9 = vld [vmem:[#allocation3 + $0xf84] sm:$0xf] }
 0xbbb   : > { %3457 = vmatpush.bf16.msrb.mxu2 %v4842_v7  ;;  %v4874_v7 = vor.u32 %v5324_v5, %v4873_v4  ;;  %v4883_v5 = vld [vmem:[#allocation3 + $0xf98] sm:$0xf0] }
 0xbbe   : > { %v2897_v27 = vld [vmem:[#allocation2] ss:$2 sm:$0xff]  ;;  %v2898_v28 = vld [vmem:[#allocation2 + $0x1] ss:$2 sm:$0xff] }
 0xbbf   : > { %v2899_v30 = vmax.f32 %v2897_v27, %v2898_v28  ;;  %2903 = vst.msk [vmem:[#allocation2 + $0x9] sm:$0x1] %vm2901_vm8, %v5591_v14  ;;  %3458 = vmatpush.bf16.msrb.mxu2 %v4834_v20  ;;  %v4817_v27 = vld [vmem:[#allocation3 + $0xf10] sm:$0xf]  ;;  %v5310_v28 = vld [vmem:[#allocation3 + $0xf14] sm:$0xf0] }
 0xbc0   : > { %2902 = vst.msk [vmem:[#allocation2] sm:$0x1] %vm2901_vm8, %v5591_v14  ;;  %v4725_v14 = vor.u32 %v5286_v36, %v4724_v35  ;;  %v4818_v32 = vor.u32 %v5310_v28, %v4817_v27  ;;  %v5335_v20 = vld [vmem:[#allocation3 + $0xfe4] sm:$0xf]  ;;  %v4811_v27 = vld [vmem:[#allocation3 + $0xf08] sm:$0xf0] }
 0xbc1   : > { %2900 = vst.msk [vmem:[#allocation2 + $0x1] sm:$0xff] %vm2894_vm9, %v2899_v30  ;;  %v4889_v30 = vld [vmem:[#allocation3 + $0xfa0] sm:$0xf]  ;;  %v4926_v25 = vor.u32 %v5335_v20, %v4923_v21  ;;  %v5351_v28 = vld [vmem:[#allocation3 + $0x1064] sm:$0xf] }
 0xbc2   : > { %3086 = vmatpush.bf16.msra.mxu3 %v4725_v14  ;;  %v4890_v38 = vor.u32 %v5328_v31, %v4889_v30  ;;  %v4987_v30 = vld [vmem:[#allocation3 + $0x1068] sm:$0xf0]  ;;  %v5333_v31 = vld [vmem:[#allocation3 + $0xfd4] sm:$0xf] }
 0xbc3   : > { %3459 = vmatpush.bf16.msrb.mxu2 %v4826_v26  ;;  %v5307_v26 = vld [vmem:[#allocation3 + $0xf04] sm:$0xf] }
 0xbc4   : > { %3472 = vmatpush.bf16.msra.mxu0 %v4890_v38  ;;  %v5342_v38 = vld [vmem:[#allocation3 + $0x1014] sm:$0xf0] }
 0xbc6   : > { %3481 = vmatpush.bf16.msrb.mxu3 %v4986_v18  ;;  %v4865_v18 = vld [vmem:[#allocation3 + $0xf70] sm:$0xf] }
 0xbc7   : > { %3460 = vmatpush.bf16.msrb.mxu2 %v4818_v32  ;;  %v4915_v32 = vld [vmem:[#allocation3 + $0xfd8] sm:$0xf0] }
 0xbc8   : > { %v2906_v33 = vld [vmem:[#allocation2 + $0x2] sm:$0xff] }
 0xbc9   : > { %v2905_v34 = vld [vmem:[#allocation2 + $0x1] sm:$0xff]  ;;  %2912 = vrot.lane.b32.xlu1 %v2906_v33, %s5600_s17 }
 0xbca   : > { %2908 = vrot.lane.b32.xlu0 %v2905_v34, %s5601_s18  ;;  %v2904_v43 = vld [vmem:[#allocation2] sm:$0xff]  ;;  %v5308_v34 = vld [vmem:[#allocation3 + $0xf04] sm:$0xf0] }
 0xbcb   : > { %v4809_v33 = vld [vmem:[#allocation3 + $0xf00] sm:$0xf] }
 0xbcc   : > { %v4810_v37 = vor.u32 %v5308_v34, %v4809_v33  ;;  %v4814_v33 = vor.u32 %v5307_v26, %v4811_v27  ;;  %v4990_v34 = vor.u32 %v5351_v28, %v4987_v30  ;;  %v5337_v26 = vld [vmem:[#allocation3 + $0xff4] sm:$0xf]  ;;  %v4931_v27 = vld [vmem:[#allocation3 + $0xff8] sm:$0xf0] }
 0xbce   : > { %3461 = vmatpush.bf16.msrb.mxu2 %v4810_v37  ;;  %v4803_v37 = vld [vmem:[#allocation3 + $0xef8] sm:$0xf0] }
 0xc3b   : > { %v2913_v40 = vpop.permute.xlu1 %2912 }
 0xc3c   : > { %v2909_v41 = vpop.permute.xlu0 %2908  ;;  %v2958_v44 = vpack.c.bf16 %v2913_v40, %v2913_v40 }
 0xc3d   : > { %v2915_v45 = vsel %vm2894_vm9, %v2904_v43, %v2909_v41  ;;  %v2917_v46 = vsel %vm2916_vm10, %v2909_v41, %v2913_v40  ;;  %v5306_v40 = vld [vmem:[#allocation3 + $0xef4] sm:$0xf0]  ;;  %v5319_v41 = vld [vmem:[#allocation3 + $0xf64] sm:$0xf]  ;;  %v4859_v43 = vld [vmem:[#allocation3 + $0xf68] sm:$0xf0] }
 0xc3e   : > { %v2956_v49 = vpack.c.bf16 %v2915_v45, %v2915_v45  ;;  %v2957_v42 = vpack.c.bf16 %v2917_v46, %v2917_v46  ;;  %4798 = vmatmul.msk.bf16.vlgmr.msrb.gmra.mxu0 %vm3072_vm12, %v2958_v44  ;;  %v4802_v44 = vor.u32 %v5306_v40, %v4801_v39  ;;  %v4862_v45 = vor.u32 %v5319_v41, %v4859_v43  ;;  %v5317_v46 = vld [vmem:[#allocation3 + $0xf54] sm:$0xf]  ;;  %v4979_v40 = vld [vmem:[#allocation3 + $0x1058] sm:$0xf0] }
 0xc3f   : > { %v5349_v39 = vld [vmem:[#allocation3 + $0x1054] sm:$0xf] }
 0xc40   : > { %3087 = vmatmul.bf16.vlgmr.msra.gmra.mxu3 %v2956_v49  ;;  %3100 = vmatmul.bf16.vlgmr.msra.gmra.mxu1 %v2957_v42  ;;  %v4851_v49 = vld [vmem:[#allocation3 + $0xf58] sm:$0xf0]  ;;  %v4982_v43 = vor.u32 %v5349_v39, %v4979_v40  ;;  %v5027_v39 = vld [vmem:[#allocation3 + $0x10e0] sm:$0xf]  ;;  %v5361_v40 = vld [vmem:[#allocation3 + $0x10e4] sm:$0xf0] }
 0xc41   : > { %3462 = vmatpush.bf16.msrb.mxu2 %v4802_v44  ;;  %v4854_v52 = vor.u32 %v5317_v46, %v4851_v49  ;;  %v4907_v46 = vld [vmem:[#allocation3 + $0xfc8] sm:$0xf0] }
 0xc45   : > { %3507 = vmatpush.bf16.msra.mxu2 %v4862_v45  ;;  %v5331_v45 = vld [vmem:[#allocation3 + $0xfc4] sm:$0xf] }
 0xc46   : > { %v4910_v49 = vor.u32 %v5331_v45, %v4907_v46  ;;  %v5019_v46 = vld [vmem:[#allocation3 + $0x10c0] sm:$0xf] }
 0xc49   : > { %3508 = vmatpush.bf16.msra.mxu2 %v4854_v52 }
 0xc4d   : > { %3509 = vmatpush.bf16.msra.mxu2 %v4846_v54  ;;  %v4899_v54 = vld [vmem:[#allocation3 + $0xfb8] sm:$0xf0] }
 0xcbb   : > { %v3114_v50 = vpop.f32.mrf.mxu0 }
 0xcbd   : > { %v3101_v51 = vpop.f32.mrf.mxu1 }
 0xcc3   : > { %v3088_v48 = vpop.f32.mrf.mxu3  ;;  %v3116_v58 = vpop.f32.mrf.mxu0 }
 0xcc4   : > { %v3102_v56 = vadd.f32 %v3101_v51, %v3088_v48  ;;  %v5350_v48 = vld [vmem:[#allocation3 + $0x1054] sm:$0xf0]  ;;  %v4835_v58 = vld [vmem:[#allocation3 + $0xf38] sm:$0xf0] }
 0xcc5   : > { %v3103_v60 = vpop.f32.mrf.mxu1 }
 0xcc6   : > { %v3115_v0 = vadd.f32 %v3114_v50, %v3102_v56  ;;  %v5313_v56 = vld [vmem:[#allocation3 + $0xf34] sm:$0xf]  ;;  %v4881_v60 = vld [vmem:[#allocation3 + $0xf90] sm:$0xf] }
 0xcc7   : > { %v4838_v59 = vor.u32 %v5313_v56, %v4835_v58  ;;  %v4882_v62 = vor.u32 %v5326_v61, %v4881_v60  ;;  %v4929_v56 = vld [vmem:[#allocation3 + $0xff0] sm:$0xf]  ;;  %v5345_v58 = vld [vmem:[#allocation3 + $0x1034] sm:$0xf]  ;;  %v4963_v60 = vld [vmem:[#allocation3 + $0x1038] sm:$0xf0] }
 0xcc8   : > { %v3119_v6 = vmul.f32 %v3118_v57, %v3115_v0  ;;  %v4978_v57 = vor.u32 %v5350_v48, %v4977_v55  ;;  %v5348_v0 = vld [vmem:[#allocation3 + $0x1044] sm:$0xf0]  ;;  %v4902_v48 = vor.u32 %v5329_v47, %v4899_v54  ;;  %v4966_v61 = vor.u32 %v5345_v58, %v4963_v60  ;;  %v5358_v47 = vld [vmem:[#allocation3 + $0x10b4] sm:$0xf0]  ;;  %v5055_v60 = vld [vmem:[#allocation3 + $0x1150] sm:$0xf] }
 0xcc9   : > { %3510 = vmatpush.bf16.msra.mxu2 %v4838_v59  ;;  %3473 = vmatpush.bf16.msra.mxu0 %v4882_v62  ;;  %v5327_v62 = vld [vmem:[#allocation3 + $0xfa4] sm:$0xf]  ;;  %v5357_v58 = vld [vmem:[#allocation3 + $0x10a4] sm:$0xf0] }
 0xcca   : > { %v3121_v12 = vadd.f32 %v3120_v2, %v3119_v6  ;;  %3482 = vmatpush.bf16.msrb.mxu3 %v4978_v57  ;;  %v4970_v2 = vor.u32 %v5348_v0, %v4969_v63  ;;  %v4830_v6 = vor.u32 %v5311_v1, %v4827_v3  ;;  %v5338_v57 = vld [vmem:[#allocation3 + $0xff4] sm:$0xf0]  ;;  %v4891_v63 = vld [vmem:[#allocation3 + $0xfa8] sm:$0xf0]  ;;  %v5343_v1 = vld [vmem:[#allocation3 + $0x1024] sm:$0xf] }
 0xccb   : > { %v3090_v17 = vpop.f32.mrf.mxu3  ;;  %v4930_v59 = vor.u32 %v5338_v57, %v4929_v56  ;;  %v4894_v0 = vor.u32 %v5327_v62, %v4891_v63  ;;  %v5325_v3 = vld [vmem:[#allocation3 + $0xf94] sm:$0xf]  ;;  %v5011_v57 = vld [vmem:[#allocation3 + $0x10a0] sm:$0xf]  ;;  %v5007_v63 = vld [vmem:[#allocation3 + $0x1090] sm:$0xf] }
 0xccc   : > { %v3122_v19 = vmax.f32 %v3121_v12, 0.0  ;;  %v4819_v12 = vld [vmem:[#allocation3 + $0xf18] sm:$0xf0]  ;;  %v4994_v17 = vor.u32 %v5354_v15, %v4993_v13  ;;  %v4886_v8 = vor.u32 %v5325_v3, %v4883_v5  ;;  %v5353_v13 = vld [vmem:[#allocation3 + $0x1074] sm:$0xf] }
 0xccd   : > { %3511 = vmatpush.bf16.msra.mxu2 %v4830_v6  ;;  %v4822_v16 = vor.u32 %v5309_v10, %v4819_v12  ;;  %3474 = vmatpush.bf16.msra.mxu0 %v4874_v7  ;;  %v5341_v6 = vld [vmem:[#allocation3 + $0x1014] sm:$0xf]  ;;  %v4947_v7 = vld [vmem:[#allocation3 + $0x1018] sm:$0xf0]  ;;  %v4875_v10 = vld [vmem:[#allocation3 + $0xf88] sm:$0xf0] }
 0xcce   : > { %3123 = vst.msk [vmem:[#allocation2] sm:$0xff] %vm2894_vm9, %v3122_v19  ;;  %3483 = vmatpush.bf16.msrb.mxu3 %v4970_v2  ;;  %v5322_v19 = vld [vmem:[#allocation3 + $0xf74] sm:$0xf0]  ;;  %3501 = vmatpush.bf16.msrb.mxu1 %v4994_v17  ;;  %v4955_v2 = vld [vmem:[#allocation3 + $0x1028] sm:$0xf0]  ;;  %v4950_v12 = vor.u32 %v5341_v6, %v4947_v7  ;;  %v4878_v20 = vor.u32 %v5323_v9, %v4875_v10 }
 0xccf   : > { %v4866_v24 = vor.u32 %v5322_v19, %v4865_v18  ;;  %v4958_v4 = vor.u32 %v5343_v1, %v4955_v2  ;;  %v4939_v17 = vld [vmem:[#allocation3 + $0x1008] sm:$0xf0]  ;;  %v4995_v18 = vld [vmem:[#allocation3 + $0x1078] sm:$0xf0]  ;;  %v5051_v2 = vld [vmem:[#allocation3 + $0x1140] sm:$0xf] }
 0xcd0   : > { %v4998_v21 = vor.u32 %v5353_v13, %v4995_v18  ;;  %v5367_v3 = vld [vmem:[#allocation3 + $0x1144] sm:$0xf0]  ;;  %v5003_v6 = vld [vmem:[#allocation3 + $0x1080] sm:$0xf]  ;;  %v5047_v9 = vld [vmem:[#allocation3 + $0x1130] sm:$0xf] }
 0xcd1   : > { %3512 = vmatpush.bf16.msra.mxu2 %v4822_v16  ;;  %3475 = vmatpush.bf16.msra.mxu0 %v4866_v24  ;;  %v5339_v16 = vld [vmem:[#allocation3 + $0x1004] sm:$0xf]  ;;  %v4867_v24 = vld [vmem:[#allocation3 + $0xf78] sm:$0xf0]  ;;  %v5355_v7 = vld [vmem:[#allocation3 + $0x1084] sm:$0xf0] }
 0xcd2   : > { %3484 = vmatpush.bf16.msrb.mxu3 %v4962_v11  ;;  %3520 = vmatpush.bf16.msra.mxu1 %v4926_v25  ;;  %v4942_v25 = vor.u32 %v5339_v16, %v4939_v17  ;;  %v4870_v28 = vor.u32 %v5321_v23, %v4867_v24  ;;  %v5366_v10 = vld [vmem:[#allocation3 + $0x1134] sm:$0xf0]  ;;  %v5365_v13 = vld [vmem:[#allocation3 + $0x1124] sm:$0xf0]  ;;  %v5039_v17 = vld [vmem:[#allocation3 + $0x1110] sm:$0xf] }
 0xcd3   : > { %v5364_v18 = vld [vmem:[#allocation3 + $0x1114] sm:$0xf0] }
 0xcd5   : > { %v3124_v35 = vld [vmem:[#allocation2] ss:$2 sm:$0xf]  ;;  %v3125_v36 = vld [vmem:[#allocation2 + $0x1] ss:$2 sm:$0xf]  ;;  %3533 = vmatpush.bf16.msrb.mxu0 %v4990_v34  ;;  %3513 = vmatpush.bf16.msra.mxu2 %v4814_v33 }
 0xcd6   : > { %v3126_v14 = vmax.f32 %v3124_v35, %v3125_v36  ;;  %v4918_v35 = vor.u32 %v5333_v31, %v4915_v32  ;;  %v4945_v36 = vld [vmem:[#allocation3 + $0x1010] sm:$0xf]  ;;  %3485 = vmatpush.bf16.msrb.mxu3 %v4954_v29  ;;  %v4934_v29 = vor.u32 %v5337_v26, %v4931_v27  ;;  %v3560_v26 = vld [vmem:[#allocation5 + $0x34] ss:$8 sm:$0x3] }
 0xcd7   : > { %v4946_v41 = vor.u32 %v5342_v38, %v4945_v36  ;;  %v5031_v38 = vld [vmem:[#allocation3 + $0x10f0] sm:$0xf] }
 0xcd8   : > { %3128 = vst.msk [vmem:[#allocation2] sm:$0xf] %vm3127_vm13, %v3126_v14  ;;  %v5305_v14 = vld [vmem:[#allocation3 + $0xef4] sm:$0xf]  ;;  %3521 = vmatpush.bf16.msra.mxu1 %v4918_v35 }
 0xcd9   : > { %v4806_v44 = vor.u32 %v5305_v14, %v4803_v37  ;;  %3534 = vmatpush.bf16.msrb.mxu0 %v4982_v43  ;;  %v5362_v14 = vld [vmem:[#allocation3 + $0x10f4] sm:$0xf0]  ;;  %v5028_v43 = vor.u32 %v5361_v40, %v5027_v39 }
 0xcda   : > { %3486 = vmatpush.bf16.msrb.mxu3 %v4946_v41  ;;  %v5032_v37 = vor.u32 %v5362_v14, %v5031_v38  ;;  %v5023_v41 = vld [vmem:[#allocation3 + $0x10d0] sm:$0xf] }
 0xcdb   : > { %3514 = vmatpush.bf16.msra.mxu2 %v4806_v44  ;;  %v5360_v44 = vld [vmem:[#allocation3 + $0x10d4] sm:$0xf0] }
 0xcdc   : > { %3522 = vmatpush.bf16.msra.mxu1 %v4910_v49  ;;  %v5024_v45 = vor.u32 %v5360_v44, %v5023_v41  ;;  %v5359_v49 = vld [vmem:[#allocation3 + $0x10c4] sm:$0xf0] }
 0xcdf   : > { %v3132_v42 = vld [vmem:[#allocation2 + $0x3] sm:$0x1]  ;;  %v3131_v50 = vld [vmem:[#allocation2 + $0x2] sm:$0x1]  ;;  %v3130_v51 = vld [vmem:[#allocation2 + $0x1] sm:$0x1] }
 0xce0   : > { %3142 = vrot.lane.b32.xlu1 %v3132_v42, %s5602_s19  ;;  %3138 = vrot.lane.b32.xlu0 %v3131_v50, %s5600_s17  ;;  %v4937_v42 = vld [vmem:[#allocation3 + $0x1000] sm:$0xf]  ;;  %v5340_v50 = vld [vmem:[#allocation3 + $0x1004] sm:$0xf0] }
 0xce1   : > { %3134 = vrot.lane.b32.xlu2 %v3130_v51, %s5601_s18  ;;  %v5347_v51 = vld [vmem:[#allocation3 + $0x1044] sm:$0xf]  ;;  %v4938_v52 = vor.u32 %v5340_v50, %v4937_v42  ;;  %3523 = vmatpush.bf16.msra.mxu1 %v4902_v48  ;;  %v3129_v11 = vld [vmem:[#allocation2] sm:$0x1]  ;;  %v5020_v42 = vor.u32 %v5359_v49, %v5019_v46  ;;  %v5063_v50 = vld [vmem:[#allocation3 + $0x1170] sm:$0xf] }
 0xce2   : > { %v4974_v55 = vor.u32 %v5347_v51, %v4971_v53  ;;  %v5370_v51 = vld [vmem:[#allocation3 + $0x1174] sm:$0xf0]  ;;  %v5369_v48 = vld [vmem:[#allocation3 + $0x1164] sm:$0xf0]  ;;  %v3563_v46 = vperm.slane %v3560_v26, 1 }
 0xce3   : > { %3487 = vmatpush.bf16.msrb.mxu3 %v4938_v52  ;;  %v5015_v52 = vld [vmem:[#allocation3 + $0x10b0] sm:$0xf]  ;;  %v5064_v53 = vor.u32 %v5370_v51, %v5063_v50 }
 0xce4   : > { %3535 = vmatpush.bf16.msrb.mxu0 %v4974_v55  ;;  %v5016_v54 = vor.u32 %v5358_v47, %v5015_v52  ;;  %v5059_v55 = vld [vmem:[#allocation3 + $0x1160] sm:$0xf] }
 0xce5   : > { %3524 = vmatpush.bf16.msra.mxu1 %v4894_v0  ;;  %v5060_v56 = vor.u32 %v5369_v48, %v5059_v55  ;;  %v5356_v0 = vld [vmem:[#allocation3 + $0x1094] sm:$0xf0] }
 0xce6   : > { %v5008_v1 = vor.u32 %v5356_v0, %v5007_v63  ;;  %v3740_v0 = vld [vmem:[#allocation5 + $0x40] ss:$0 sm:$0xff] }
 0xce7   : > { %3488 = vmatpush.bf16.msrb.mxu3 %v4930_v59  ;;  %v5012_v59 = vor.u32 %v5357_v58, %v5011_v57 }
 0xce8   : > { %3536 = vmatpush.bf16.msrb.mxu0 %v4966_v61  ;;  %v5368_v61 = vld [vmem:[#allocation3 + $0x1154] sm:$0xf0] }
 0xce9   : > { %3525 = vmatpush.bf16.msra.mxu1 %v4886_v8  ;;  %v5056_v62 = vor.u32 %v5368_v61, %v5055_v60  ;;  %v5004_v8 = vor.u32 %v5355_v7, %v5003_v6  ;;  %v3737_v61 = vld [vmem:[#allocation5 + $0x37] ss:$0 sm:$0xff] }
 0xceb   : > { %3553 = vmatpush.bf16.msra.mxu3 %v4998_v21  ;;  %v5363_v21 = vld [vmem:[#allocation3 + $0x1104] sm:$0xf0] }
 0xcec   : > { %3537 = vmatpush.bf16.msrb.mxu0 %v4958_v4  ;;  %v5052_v4 = vor.u32 %v5367_v3, %v5051_v2 }
 0xced   : > { %3526 = vmatpush.bf16.msra.mxu1 %v4878_v20  ;;  %v5035_v20 = vld [vmem:[#allocation3 + $0x1100] sm:$0xf] }
 0xcf0   : > { %3538 = vmatpush.bf16.msrb.mxu0 %v4950_v12  ;;  %v5043_v12 = vld [vmem:[#allocation3 + $0x1120] sm:$0xf] }
 0xcf1   : > { %3527 = vmatpush.bf16.msra.mxu1 %v4870_v28 }
 0xcf4   : > { %3539 = vmatpush.bf16.msrb.mxu0 %v4942_v25 }
 0xcf8   : > { %3540 = vmatpush.bf16.msrb.mxu0 %v4934_v29  ;;  %v3569_v29 = vld [vmem:[#allocation5 + $0x35] ss:$8 sm:$0x3] }
 0xcf9   : > { %v3572_v50 = vperm.slane %v3569_v29, 1 }
 0xd3b   : > { %v3135_v15 = vpop.permute.xlu2 %3134 }
 0xd3c   : > { %v3145_v19 = vsel %vm2894_vm9, %v3129_v11, %v3135_v15  ;;  %v5048_v11 = vor.u32 %v5366_v10, %v5047_v9 }
 0xd3d   : > { %v3198_v22 = vpack.c.bf16 %v3145_v19, %v3145_v19  ;;  %v5040_v19 = vor.u32 %v5364_v18, %v5039_v17 }
 0xd3f   : > { %3463 = vmatmul.bf16.vlgmr.msrb.gmra.mxu2 %v3198_v22 }
 0xd40   : > { %3709 = vmatpush.bf16.msrb.mxu2 %v5032_v37 }
 0xd44   : > { %3710 = vmatpush.bf16.msrb.mxu2 %v5028_v43 }
 0xd48   : > { %3711 = vmatpush.bf16.msrb.mxu2 %v5024_v45 }
 0xd4c   : > { %3712 = vmatpush.bf16.msrb.mxu2 %v5020_v42 }
 0xd4f   : > { %3515 = vmatmul.bf16.vlgmr.msra.gmra.mxu2 %v3198_v22  ;;  %v5036_v22 = vor.u32 %v5363_v21, %v5035_v20 }
 0xd50   : > { %3713 = vmatpush.bf16.msrb.mxu2 %v5016_v54 }
 0xd52   : > { %v3143_v30 = vpop.permute.xlu1 %3142  ;;  %v3139_v31 = vpop.permute.xlu0 %3138 }
 0xd53   : > { %v3201_v32 = vpack.c.bf16 %v3143_v30, %v3143_v30  ;;  %v3146_v33 = vsel %vm2916_vm10, %v3135_v15, %v3139_v31  ;;  %v3147_v34 = vsel %vm3072_vm12, %v3139_v31, %v3143_v30  ;;  %v5044_v15 = vor.u32 %v5365_v13, %v5043_v12 }
 0xd54   : > { %v3199_v35 = vpack.c.bf16 %v3146_v33, %v3146_v33  ;;  %v3200_v36 = vpack.c.bf16 %v3147_v34, %v3147_v34  ;;  %3714 = vmatpush.bf16.msrb.mxu2 %v5012_v59  ;;  %v3562_v31 = vperm.slane %v3560_v26, 0  ;;  %v3735_v59 = vld [vmem:[#allocation5 + $0x36] ss:$0 sm:$0xff] }
 0xd55   : > { %4999 = vmatmul.msk.bf16.vlgmr.msrb.gmra.mxu1 %vm291_vm11, %v3201_v32 }
 0xd56   : > { %3476 = vmatmul.bf16.vlgmr.msra.gmra.mxu0 %v3199_v35  ;;  %3489 = vmatmul.bf16.vlgmr.msrb.gmra.mxu3 %v3200_v36 }
 0xd57   : > { %3722 = vmatpush.bf16.msrb.mxu3 %v5064_v53 }
 0xd58   : > { %3715 = vmatpush.bf16.msrb.mxu2 %v5008_v1 }
 0xd5b   : > { %3723 = vmatpush.bf16.msrb.mxu3 %v5060_v56 }
 0xd5c   : > { %3716 = vmatpush.bf16.msrb.mxu2 %v5004_v8 }
 0xd5f   : > { %3724 = vmatpush.bf16.msrb.mxu3 %v5056_v62 }
 0xd63   : > { %3725 = vmatpush.bf16.msrb.mxu3 %v5052_v4 }
 0xd65   : > { %3528 = vmatmul.bf16.vlgmr.msra.gmra.mxu1 %v3199_v35 }
 0xd66   : > { %3541 = vmatmul.bf16.vlgmr.msrb.gmra.mxu0 %v3200_v36  ;;  %5000 = vmatmul.msk.bf16.vlgmr.msra.gmra.mxu3 %vm291_vm11, %v3201_v32  ;;  %v3571_v36 = vperm.slane %v3569_v29, 0  ;;  %vm3743_vm11 = vcmask 1040384  }
 0xd67   : > { %3726 = vmatpush.bf16.msrb.mxu3 %v5048_v11 }
 0xd6b   : > { %3727 = vmatpush.bf16.msrb.mxu3 %v5044_v15 }
 0xd6f   : > { %3728 = vmatpush.bf16.msrb.mxu3 %v5040_v19 }
 0xd73   : > { %3729 = vmatpush.bf16.msrb.mxu3 %v5036_v22 }
 0xdc2   : > { %v3464_v5 = vpop.f32.mrf.mxu2 }
 0xdca   : > { %v3466_v16 = vpop.f32.mrf.mxu2 }
 0xdd2   : > { %v3516_v23 = vpop.f32.mrf.mxu2  ;;  %v3503_v24 = vpop.f32.mrf.mxu1 }
 0xdd3   : > { %v3477_v25 = vpop.f32.mrf.mxu0 }
 0xdd4   : > { %v3478_v27 = vadd.f32 %v3477_v25, %v3464_v5  ;;  %v3741_v5 = vld [vmem:[#allocation5 + $0x41] ss:$0 sm:$0xff] }
 0xdd9   : > { %v3490_v28 = vpop.f32.mrf.mxu3 }
 0xdda   : > { %v3491_v30 = vadd.f32 %v3490_v28, %v3478_v27  ;;  %v3518_v32 = vpop.f32.mrf.mxu2  ;;  %v3505_v33 = vpop.f32.mrf.mxu1 }
 0xddb   : > { %v3479_v34 = vpop.f32.mrf.mxu0 }
 0xddc   : > { %v3504_v35 = vadd.f32 %v3503_v24, %v3491_v30 }
 0xdde   : > { %v3566_v38 = vmul.f32 %v3562_v31, %v3504_v35 }
 0xde0   : > { %v3575_v14 = vadd.f32 %v3571_v36, %v3566_v38 }
 0xde1   : > { %v3492_v37 = vpop.f32.mrf.mxu3 }
 0xde2   : > { %v3577_v39 = vmax.f32 %v3575_v14, 0.0  ;;  %v3529_v40 = vpop.f32.mrf.mxu1 }
 0xde3   : > { %v3542_v41 = vpop.f32.mrf.mxu0  ;;  %v3530_v43 = vadd.f32 %v3529_v40, %v3516_v23 }
 0xde4   : > { %v3611_v44 = vpack.c.bf16 %v3577_v39, %v3577_v39 }
 0xde5   : > { %v3543_v45 = vadd.f32 %v3542_v41, %v3530_v43 }
 0xde6   : > { %3717 = vmatmul.bf16.vlgmr.msrb.gmra.mxu2 %v3611_v44 }
 0xde9   : > { %v3555_v49 = vpop.f32.mrf.mxu3 }
 0xdea   : > { %v3556_v42 = vadd.f32 %v3555_v49, %v3543_v45  ;;  %v3531_v51 = vpop.f32.mrf.mxu1 }
 0xdeb   : > { %v3544_v52 = vpop.f32.mrf.mxu0 }
 0xdec   : > { %v3567_v53 = vmul.f32 %v3563_v46, %v3556_v42 }
 0xdee   : > { %v3576_v47 = vadd.f32 %v3572_v50, %v3567_v53 }
 0xdf0   : > { %v3578_v54 = vmax.f32 %v3576_v47, 0.0 }
 0xdf1   : > { %v3557_v55 = vpop.f32.mrf.mxu3 }
 0xdf2   : > { %v3612_v48 = vpack.c.bf16 %v3578_v54, %v3578_v54 }
 0xdf4   : > { %3730 = vmatmul.bf16.vlgmr.msrb.gmra.mxu3 %v3612_v48 }
 0xe69   : > { %v3718_v56 = vpop.f32.mrf.mxu2 }
 0xe71   : > { %v3720_v57 = vpop.f32.mrf.mxu2 }
 0xe77   : > { %v3731_v58 = vpop.f32.mrf.mxu3 }
 0xe78   : > { %v3732_v60 = vadd.f32 %v3731_v58, %v3718_v56 }
 0xe7a   : > { %v3736_v62 = vmul.f32 %v3735_v59, %v3732_v60 }
 0xe7c   : > { %v3738_v63 = vadd.f32 %v3737_v61, %v3736_v62 }
 0xe7e   : > { %v3739_v1 = vmax.f32 %v3738_v63, 0.0 }
 0xe7f   : > { %v3733_v2 = vpop.f32.mrf.mxu3 }
 0xe80   : > { %v3742_v3 = vmul.f32 %v3740_v0, %v3739_v1 }
 0xe82   : > { %v3744_v4 = vsel %vm3743_vm11, %v3742_v3, 0.0 }
 0xe83   : > { %3745 = vadd.xlane.f32.xlu2 %v3744_v4 }
 0xef6   : > { %v3746_v6 = vpop.xlane.xlu2 %3745 }
 0xef7   : > { %v3747_v7 = vadd.f32 %v3746_v6, %v3741_v5 }
 0xef9   : > { %5371 = vpush %v3747_v7 }
 0xf2a   : > { %s5372_s24 = spop %5371 }
 0xf2b   : > { %v3750_v8 = vstv %s5372_s24 }
 0xf2c   : > { %3752 = vst [vmem:[%s202_s23] sm:$0xff] %v3750_v8 }
 0xf2d PF: > { %s15_s12 = sadd.s32 1, %s5582_s12  }
 0xf2e   : > { %p12_p7 = scmp.ge.s32.totalorder %s15_s12, 4  }
 0xf30   :  { %14 = sbr.rel (!%p12_p7) target bundleno = 2 (0x2), region = 75 }
 0xf35   :  { %3772 = vsyncpa [#allocation4], 1 }
 0xf36   :  { %3774 = vsyncpa [#allocation4 + $0x1], 1 }
 0xf37   :  { %3775 = vsyncpa [#allocation6], 1 }

</bundles_post_ra>
